<compile_context>
chip_gen: v7x
topology: tpu7x:2x2x1
jax: 0.10.0
libtpu: 0.0.40
codegen_flags: <defaults>
</compile_context>

<pallas_src>
import functools

import jax
import jax.numpy as jnp
from jax import lax
from jax.experimental import pallas as pl
from jax.experimental.pallas import tpu as pltpu


# ---------------------------------------------------------------------------
# Pallas kernel
# ---------------------------------------------------------------------------
def rnn_attention_kernel(
        x_ref, tgt_ref,
        w_ih0_ref, b0_ref, w_hh0_ref, w1_ref, b1_ref,
        wa_ref, wb_ref, vrow_ref, urow_ref, ff1b_ref,
        lin2w_ref, lin2b_ref, ff2aw_ref, ff2ab_ref, ff2bw_ref, ff2bb_ref,
        out_ref,
        xw_ref, hseq_ref, outlh_ref, pre_ref,
        *, lp, lh, H):
    f32 = jnp.float32
    TB, T, D = x_ref.shape
    W = lh + 1                      # window length
    R = lp * TB                     # batched rows: row = window_i * TB + b
    H4 = 4 * H

    X = x_ref[...].astype(f32)                                # (TB, T, D)
    tgt_log = jnp.log(tgt_ref[...].astype(f32) + 1e-5)        # (TB, T)

    # Output block doubles as the autoregressive y-buffer.
    out_ref[:, :lh] = tgt_log[:, :lh]

    # ---- hoisted input->hidden projection (one matmul for all timesteps) ----
    xp = (jnp.dot(X.reshape(TB * T, D), w_ih0_ref[...],
                  preferred_element_type=f32)
          + b0_ref[...]).reshape(TB, T, H4)                   # (TB, T, 4H)

    # Window-expand the projection once (off the serial path): row i*TB+b of
    # step t holds timestep (t+i) of batch b.
    for t in range(W):
        xw_ref[t] = jnp.concatenate([xp[:, t + i, :] for i in range(lp)],
                                    axis=0)                   # (R, 4H)

    w_hh0 = w_hh0_ref[...]          # (H, 4H)
    w1 = w1_ref[...]                # (2H, 4H) = [w_ih1_T; w_hh1_T]
    b1 = b1_ref[...]                # (1, 4H)

    def gates_to_state(g, c):
        # Full-vreg transcendentals (EUP), then slice per gate. [i, f, g, o].
        sig = jax.nn.sigmoid(g)
        th = jnp.tanh(g)
        c_new = sig[:, H:2 * H] * c + sig[:, :H] * th[:, 2 * H:3 * H]
        h_new = sig[:, 3 * H:] * jnp.tanh(c_new)
        return h_new, c_new

    def lstm_step(t, carry):
        h0, c0, h1, c1 = carry
        # Layer 0: x-projection is precomputed, only h @ W_hh on the serial path.
        g0 = xw_ref[t] + jnp.dot(h0, w_hh0, preferred_element_type=f32)
        h0, c0 = gates_to_state(g0, c0)
        # Layer 1: single fused matmul with stacked weights.
        g1 = jnp.dot(jnp.concatenate([h0, h1], axis=-1), w1,
                     preferred_element_type=f32) + b1
        h1, c1 = gates_to_state(g1, c1)
        hseq_ref[t] = h1
        return h0, c0, h1, c1

    z0 = jnp.zeros((R, H), f32)
    h0, c0, h1, c1 = lax.fori_loop(0, W, lstm_step, (z0, z0, z0, z0),
                                   unroll=True)

    # time-major -> batch(window)-major copy of the first lh outputs (once).
    for t in range(lh):
        outlh_ref[:, t:t + 1, :] = hseq_ref[t][:, None, :]

    # ---- attention pre-activation, batched over all lp windows ----
    ht = jnp.concatenate([h0, h1], axis=-1)                   # (R, 2H)
    htb = jnp.dot(ht, wb_ref[...], preferred_element_type=f32) + ff1b_ref[...]
    pre = jnp.dot(outlh_ref[...].reshape(R * lh, H), wa_ref[...],
                  preferred_element_type=f32).reshape(R, lh, H4)
    pre_ref[...] = pre + htb[:, None, :]

    vrow = vrow_ref[...].reshape(1, 1, H4)      # lin1_w @ Wc
    urow = urow_ref[...].reshape(1, 1, H4)      # lin1_b @ Wc
    lin2w = lin2w_ref[...].reshape(1, 1, H4)

    # ---- serial decode loop (lp is small & static; static slices on out_ref) ----
    for i in range(lp):
        y = out_ref[:, i:i + lh]                               # (TB, lh)
        z = jnp.tanh(pre_ref[i * TB:(i + 1) * TB]
                     + y[:, :, None] * vrow + urow)            # (TB, lh, 4H)
        # lin2 (4H -> 1) as VPU multiply + lane reduce -> lane-dense logits.
        e = jnp.sum(z * lin2w, axis=-1) + lin2b_ref[...]       # (TB, lh)
        e = e - jnp.max(e, axis=-1, keepdims=True)
        p = jnp.exp(e)
        attn = p * pl.reciprocal(jnp.sum(p, axis=-1, keepdims=True),
                                 approx=True)                  # (TB, lh)
        st = jnp.sum(attn[:, :, None] * outlh_ref[i * TB:(i + 1) * TB],
                     axis=1)                                   # (TB, H)
        s1 = jnp.tanh(jnp.dot(st, ff2aw_ref[...],
                              preferred_element_type=f32) + ff2ab_ref[...])
        # ff2b (H -> 1) as VPU multiply + lane reduce.
        s2 = jnp.sum(s1 * ff2bw_ref[...], axis=-1, keepdims=True) + ff2bb_ref[...]
        out_ref[:, lh + i:lh + i + 1] = s2


# ---------------------------------------------------------------------------
# Wrapper
# ---------------------------------------------------------------------------
def rnn_attention_forward(X, tgt, packed, *, lp, lh, d_hid, block_b=None):
    B, T, D = X.shape
    assert T == lp + lh
    H = d_hid
    TB = B if block_b is None else block_b
    assert B % TB == 0, "batch must be divisible by the batch tile"
    W = lh + 1
    R = lp * TB

    kern = functools.partial(rnn_attention_kernel, lp=lp, lh=lh, H=H)

    grid_spec = pltpu.PrefetchScalarGridSpec(
        num_scalar_prefetch=0,
        grid=(B // TB,),
        in_specs=[
            pl.BlockSpec((TB, T, D), lambda b: (b, 0, 0)),
            pl.BlockSpec((TB, T), lambda b: (b, 0)),
            # parameters: full blocks, replicated across the batch grid
            *[pl.BlockSpec(p.shape, lambda b: (0, 0)) for p in packed],
        ],
        out_specs=pl.BlockSpec((TB, lh + lp), lambda b: (b, 0)),
        scratch_shapes=[
            pltpu.VMEM((W, R, 4 * H), jnp.float32),   # window-expanded x-projection
            pltpu.VMEM((W, R, H), jnp.float32),       # per-step top-layer h (time-major)
            pltpu.VMEM((R, lh, H), jnp.float32),      # out_lh, batch(window)-major
            pltpu.VMEM((R, lh, 4 * H), jnp.float32),  # attention pre-activation
        ],
    )
    return pl.pallas_call(
        kern,
        out_shape=jax.ShapeDtypeStruct((B, lh + lp), jnp.float32),
        grid_spec=grid_spec,
        compiler_params=pltpu.CompilerParams(
            dimension_semantics=("parallel",)),
    )(X, tgt, *packed)


# ---------------------------------------------------------------------------
# Parameters: raw (PyTorch-shaped) init + packing into kernel-friendly layout.
# ---------------------------------------------------------------------------
def init_raw_params(key, d_inp, H):
    ks = jax.random.split(key, 18)

    def u(k, shape, fan_in):
        s = 1.0 / float(fan_in) ** 0.5
        return jax.random.uniform(k, shape, jnp.float32, -s, s)

    w_ih0 = u(ks[0], (4 * H, d_inp), H)
    w_hh0 = u(ks[1], (4 * H, H), H)
    b_ih0 = u(ks[2], (4 * H,), H)
    b_hh0 = u(ks[3], (4 * H,), H)
    w_ih1 = u(ks[4], (4 * H, H), H)
    w_hh1 = u(ks[5], (4 * H, H), H)
    b_ih1 = u(ks[6], (4 * H,), H)
    b_hh1 = u(ks[7], (4 * H,), H)
    lin1_w = u(ks[8], (H, 1), 1)
    lin1_b = u(ks[9], (H,), 1)
    ff1_w = u(ks[10], (4 * H, 4 * H), 4 * H)
    ff1_b = u(ks[11], (4 * H,), 4 * H)
    lin2_w = u(ks[12], (1, 4 * H), 4 * H)
    lin2_b = u(ks[13], (1,), 4 * H)
    ff2a_w = u(ks[14], (H, H), H)
    ff2a_b = u(ks[15], (H,), H)
    ff2b_w = u(ks[16], (1, H), H)
    ff2b_b = u(ks[17], (1,), H)
    return (w_ih0, w_hh0, b_ih0, b_hh0, w_ih1, w_hh1, b_ih1, b_hh1,
            lin1_w, lin1_b, ff1_w, ff1_b, lin2_w, lin2_b,
            ff2a_w, ff2a_b, ff2b_w, ff2b_b)


def pack_params(raw, H):
    (w_ih0, w_hh0, b_ih0, b_hh0, w_ih1, w_hh1, b_ih1, b_hh1,
     lin1_w, lin1_b, ff1_w, ff1_b, lin2_w, lin2_b,
     ff2a_w, ff2a_b, ff2b_w, ff2b_b) = raw
    H4 = 4 * H
    ff1_wt = ff1_w.T                      # (4H_in, 4H_out); inputs = [out(H), ht(2H), yt(H)]
    wa = ff1_wt[:H]                       # out_lh part
    wb = ff1_wt[H:3 * H]                  # ht part
    wc = ff1_wt[3 * H:]                   # yt part (folded through lin1)
    vrow = (lin1_w[:, 0] @ wc).reshape(1, H4)
    urow = (lin1_b @ wc).reshape(1, H4)
    return (
        w_ih0.T,                                      # (D, 4H)
        (b_ih0 + b_hh0).reshape(1, H4),               # layer-0 bias (folded into x-proj)
        w_hh0.T,                                      # (H, 4H)
        jnp.concatenate([w_ih1.T, w_hh1.T], axis=0),  # (2H, 4H) fused layer-1 weights
        (b_ih1 + b_hh1).reshape(1, H4),
        wa, wb, vrow, urow, ff1_b.reshape(1, H4),
        lin2_w.reshape(1, H4), lin2_b.reshape(1, 1),
        ff2a_w.T, ff2a_b.reshape(1, H),
        ff2b_w.reshape(1, H), ff2b_b.reshape(1, 1),
    )


# ---------------------------------------------------------------------------
# Independent pure-JAX f32 reference (direct mirror of the PyTorch module,
# inference path).
# ---------------------------------------------------------------------------
def reference_forward(X, tgt_raw, raw, lp, lh, H):
    (w_ih0, w_hh0, b_ih0, b_hh0, w_ih1, w_hh1, b_ih1, b_hh1,
     lin1_w, lin1_b, ff1_w, ff1_b, lin2_w, lin2_b,
     ff2a_w, ff2a_b, ff2b_w, ff2b_b) = raw
    window = lh + 1
    tgt = jnp.log(tgt_raw + 1e-5)
    bz = X.shape[0]

    def cell(x, h, c, w_ih, w_hh, bi, bh):
        g = x @ w_ih.T + h @ w_hh.T + bi + bh
        ig = jax.nn.sigmoid(g[:, :H])
        fg = jax.nn.sigmoid(g[:, H:2 * H])
        gg = jnp.tanh(g[:, 2 * H:3 * H])
        og = jax.nn.sigmoid(g[:, 3 * H:])
        c = fg * c + ig * gg
        return og * jnp.tanh(c), c

    preds = []
    for i in range(lp):
        Xi = X[:, i:i + window, :]
        if i == 0:
            y = tgt[:, :lh]
        elif i >= lh:
            y = jnp.concatenate(preds[i - lh:i], axis=1)
        else:
            y = jnp.concatenate([tgt[:, i:lh]] + preds[:i], axis=1)

        h0 = c0 = h1 = c1 = jnp.zeros((bz, H), jnp.float32)
        outs = []
        for t in range(window):
            h0, c0 = cell(Xi[:, t, :], h0, c0, w_ih0, w_hh0, b_ih0, b_hh0)
            h1, c1 = cell(h0, h1, c1, w_ih1, w_hh1, b_ih1, b_hh1)
            outs.append(h1)
        out_seq = jnp.stack(outs, axis=1)[:, :lh, :]            # (B, lh, H)
        ht = jnp.concatenate([h0, h1], axis=-1)                 # (B, 2H)
        ht_rep = jnp.broadcast_to(ht[:, None, :], (bz, lh, 2 * H))
        yt = y[:, :, None] * lin1_w[:, 0][None, None, :] + lin1_b[None, None, :]
        cat = jnp.concatenate([out_seq, ht_rep, yt], axis=-1)   # (B, lh, 4H)
        z = jnp.tanh(cat @ ff1_w.T + ff1_b)
        e = (z @ lin2_w.T + lin2_b)[..., 0]                     # (B, lh)
        e = jax.nn.softmax(e, axis=-1)
        st = jnp.einsum('bl,blh->bh', e, out_seq)
        s1 = jnp.tanh(st @ ff2a_w.T + ff2a_b)
        s2 = s1 @ ff2b_w.T + ff2b_b                             # (B, 1)
        preds.append(s2)
    return jnp.concatenate([tgt[:, :lh]] + preds, axis=-1)


# ---------------------------------------------------------------------------
def _run_and_check(lp, lh, d_inp, d_hid, bz, seed):
    key = jax.random.PRNGKey(seed)
    kx, kt, kp = jax.random.split(key, 3)
    X = jax.random.normal(kx, (bz, lp + lh, d_inp), jnp.float32)
    tgt = jax.random.uniform(kt, (bz, lp + lh), jnp.float32, 0.1, 2.0)
    raw = init_raw_params(kp, d_inp, d_hid)
    packed = pack_params(raw, d_hid)

    out = rnn_attention_forward(X, tgt, packed, lp=lp, lh=lh, d_hid=d_hid)
    out = jax.block_until_ready(out)
    assert out.shape == (bz, lh + lp), out.shape

    ref = reference_forward(X, tgt, raw, lp, lh, d_hid)
    assert bool(jnp.all(jnp.isfinite(out)))
    # tolerance covers pl.reciprocal(approx=True) in the softmax normalization
    assert bool(jnp.allclose(out, ref, atol=1e-2, rtol=1e-2)), (out, ref)


if __name__ == "__main__":
    # primary config (lp <= lh)
    _run_and_check(lp=4, lh=8, d_inp=16, d_hid=32, bz=2, seed=0)
    # secondary config exercising the i >= lh prediction-feedback branch (lp > lh)
    _run_and_check(lp=6, lh=3, d_inp=16, d_hid=32, bz=2, seed=0)
    print("KERNEL_OK")
</pallas_src>

<mosaic_0001>
module attributes {stable_mosaic.version = 11 : i64} {
  func.func @rnn_attention_kernel(%arg0: i32, %arg1: memref<2x12x16xf32, #tpu.memory_space<vmem>>, %arg2: memref<2x12xf32, #tpu.memory_space<vmem>>, %arg3: memref<16x128xf32, #tpu.memory_space<vmem>>, %arg4: memref<1x128xf32, #tpu.memory_space<vmem>>, %arg5: memref<32x128xf32, #tpu.memory_space<vmem>>, %arg6: memref<64x128xf32, #tpu.memory_space<vmem>>, %arg7: memref<1x128xf32, #tpu.memory_space<vmem>>, %arg8: memref<32x128xf32, #tpu.memory_space<vmem>>, %arg9: memref<64x128xf32, #tpu.memory_space<vmem>>, %arg10: memref<1x128xf32, #tpu.memory_space<vmem>>, %arg11: memref<1x128xf32, #tpu.memory_space<vmem>>, %arg12: memref<1x128xf32, #tpu.memory_space<vmem>>, %arg13: memref<1x128xf32, #tpu.memory_space<vmem>>, %arg14: memref<1x1xf32, #tpu.memory_space<vmem>>, %arg15: memref<32x32xf32, #tpu.memory_space<vmem>>, %arg16: memref<1x32xf32, #tpu.memory_space<vmem>>, %arg17: memref<1x32xf32, #tpu.memory_space<vmem>>, %arg18: memref<1x1xf32, #tpu.memory_space<vmem>>, %arg19: memref<2x12xf32, #tpu.memory_space<vmem>>, %arg20: memref<9x8x128xf32, #tpu.memory_space<vmem>>, %arg21: memref<9x8x32xf32, #tpu.memory_space<vmem>>, %arg22: memref<8x8x32xf32, #tpu.memory_space<vmem>>, %arg23: memref<8x8x128xf32, #tpu.memory_space<vmem>>) attributes {dimension_semantics = [#tpu.dimension_semantics<parallel>], iteration_bounds = array<i64: 1>, scalar_prefetch = 0 : i64, scratch_operands = 4 : i64, tpu.core_type = #tpu.core_type<tc>, window_params = [{transform_indices = @transform_0, window_bounds = array<i64: 2, 12, 16>}, {transform_indices = @transform_1, window_bounds = array<i64: 2, 12>}, {pipeline_mode = #tpu.pipeline_mode<synchronous>, transform_indices = @transform_2, window_bounds = array<i64: 16, 128>}, {pipeline_mode = #tpu.pipeline_mode<synchronous>, transform_indices = @transform_3, window_bounds = array<i64: 1, 128>}, {pipeline_mode = #tpu.pipeline_mode<synchronous>, transform_indices = @transform_4, window_bounds = array<i64: 32, 128>}, {pipeline_mode = #tpu.pipeline_mode<synchronous>, transform_indices = @transform_5, window_bounds = array<i64: 64, 128>}, {pipeline_mode = #tpu.pipeline_mode<synchronous>, transform_indices = @transform_6, window_bounds = array<i64: 1, 128>}, {pipeline_mode = #tpu.pipeline_mode<synchronous>, transform_indices = @transform_7, window_bounds = array<i64: 32, 128>}, {pipeline_mode = #tpu.pipeline_mode<synchronous>, transform_indices = @transform_8, window_bounds = array<i64: 64, 128>}, {pipeline_mode = #tpu.pipeline_mode<synchronous>, transform_indices = @transform_9, window_bounds = array<i64: 1, 128>}, {pipeline_mode = #tpu.pipeline_mode<synchronous>, transform_indices = @transform_10, window_bounds = array<i64: 1, 128>}, {pipeline_mode = #tpu.pipeline_mode<synchronous>, transform_indices = @transform_11, window_bounds = array<i64: 1, 128>}, {pipeline_mode = #tpu.pipeline_mode<synchronous>, transform_indices = @transform_12, window_bounds = array<i64: 1, 128>}, {pipeline_mode = #tpu.pipeline_mode<synchronous>, transform_indices = @transform_13, window_bounds = array<i64: 1, 1>}, {pipeline_mode = #tpu.pipeline_mode<synchronous>, transform_indices = @transform_14, window_bounds = array<i64: 32, 32>}, {pipeline_mode = #tpu.pipeline_mode<synchronous>, transform_indices = @transform_15, window_bounds = array<i64: 1, 32>}, {pipeline_mode = #tpu.pipeline_mode<synchronous>, transform_indices = @transform_16, window_bounds = array<i64: 1, 32>}, {pipeline_mode = #tpu.pipeline_mode<synchronous>, transform_indices = @transform_17, window_bounds = array<i64: 1, 1>}, {transform_indices = @transform_18, window_bounds = array<i64: 2, 12>}]} {
    %c0 = arith.constant 0 : index
    %c0_0 = arith.constant 0 : index
    %c0_1 = arith.constant 0 : index
    %0 = vector.load %arg1[%c0, %c0_0, %c0_1] : memref<2x12x16xf32, #tpu.memory_space<vmem>>, vector<2x12x16xf32>
    %c0_2 = arith.constant 0 : index
    %c0_3 = arith.constant 0 : index
    %1 = vector.load %arg2[%c0_2, %c0_3] : memref<2x12xf32, #tpu.memory_space<vmem>>, vector<2x12xf32>
    %cst = arith.constant 9.99999974E-6 : f32
    %2 = vector.broadcast %cst : f32 to vector<2x12xf32>
    %3 = arith.addf %1, %2 : vector<2x12xf32>
    %4 = math.log %3 : vector<2x12xf32>
    %5 = vector.extract_strided_slice %4 {offsets = [0, 0], sizes = [2, 8], strides = [1, 1]} : vector<2x12xf32> to vector<2x8xf32>
    %c0_4 = arith.constant 0 : index
    %c0_5 = arith.constant 0 : index
    %6 = vector.load %arg19[%c0_4, %c0_5] : memref<2x12xf32, #tpu.memory_space<vmem>>, vector<2x8xf32>
    tpu.vector_store %arg19[%c0_4, %c0_5], %5 {strides = array<i32>} : memref<2x12xf32, #tpu.memory_space<vmem>>, vector<2x8xf32>,
    %7 = vector.shape_cast %0 : vector<2x12x16xf32> to vector<24x16xf32>
    %c0_6 = arith.constant 0 : index
    %c0_7 = arith.constant 0 : index
    %8 = vector.load %arg3[%c0_6, %c0_7] : memref<16x128xf32, #tpu.memory_space<vmem>>, vector<16x128xf32>
    %cst_8 = arith.constant dense<0.000000e+00> : vector<24x128xf32>
    %9 = tpu.matmul %7, %8, %cst_8 {dimension_numbers = #tpu.dot_dimension_numbers<[1], [0], [0], [1], [0, 0, 1, 1], [], []>} : vector<24x16xf32>, vector<16x128xf32>, vector<24x128xf32> -> vector<24x128xf32>
    %c0_9 = arith.constant 0 : index
    %c0_10 = arith.constant 0 : index
    %10 = vector.load %arg4[%c0_9, %c0_10] : memref<1x128xf32, #tpu.memory_space<vmem>>, vector<1x128xf32>
    %11 = vector.broadcast %10 : vector<1x128xf32> to vector<24x128xf32>
    %12 = arith.addf %9, %11 : vector<24x128xf32>
    %13 = vector.shape_cast %12 : vector<24x128xf32> to vector<2x12x128xf32>
    %14 = vector.extract_strided_slice %13 {offsets = [0, 0, 0], sizes = [2, 1, 128], strides = [1, 1, 1]} : vector<2x12x128xf32> to vector<2x1x128xf32>
    %15 = vector.shape_cast %14 : vector<2x1x128xf32> to vector<2x128xf32>
    %16 = vector.extract_strided_slice %13 {offsets = [0, 1, 0], sizes = [2, 1, 128], strides = [1, 1, 1]} : vector<2x12x128xf32> to vector<2x1x128xf32>
    %17 = vector.shape_cast %16 : vector<2x1x128xf32> to vector<2x128xf32>
    %18 = vector.extract_strided_slice %13 {offsets = [0, 2, 0], sizes = [2, 1, 128], strides = [1, 1, 1]} : vector<2x12x128xf32> to vector<2x1x128xf32>
    %19 = vector.shape_cast %18 : vector<2x1x128xf32> to vector<2x128xf32>
    %20 = vector.extract_strided_slice %13 {offsets = [0, 3, 0], sizes = [2, 1, 128], strides = [1, 1, 1]} : vector<2x12x128xf32> to vector<2x1x128xf32>
    %21 = vector.shape_cast %20 : vector<2x1x128xf32> to vector<2x128xf32>
    %22 = tpu.concatenate %15, %17, %19, %21 in 0 : vector<2x128xf32>, vector<2x128xf32>, vector<2x128xf32>, vector<2x128xf32> -> vector<8x128xf32>
    %c0_11 = arith.constant 0 : index
    %c0_12 = arith.constant 0 : index
    %c0_13 = arith.constant 0 : index
    %23 = vector.load %arg20[%c0_11, %c0_12, %c0_13] : memref<9x8x128xf32, #tpu.memory_space<vmem>>, vector<1x8x128xf32>
    %24 = vector.shape_cast %23 : vector<1x8x128xf32> to vector<8x128xf32>
    %25 = vector.shape_cast %22 : vector<8x128xf32> to vector<1x8x128xf32>
    tpu.vector_store %arg20[%c0_11, %c0_12, %c0_13], %25 {strides = array<i32>} : memref<9x8x128xf32, #tpu.memory_space<vmem>>, vector<1x8x128xf32>,
    %26 = vector.extract_strided_slice %13 {offsets = [0, 1, 0], sizes = [2, 1, 128], strides = [1, 1, 1]} : vector<2x12x128xf32> to vector<2x1x128xf32>
    %27 = vector.shape_cast %26 : vector<2x1x128xf32> to vector<2x128xf32>
    %28 = vector.extract_strided_slice %13 {offsets = [0, 2, 0], sizes = [2, 1, 128], strides = [1, 1, 1]} : vector<2x12x128xf32> to vector<2x1x128xf32>
    %29 = vector.shape_cast %28 : vector<2x1x128xf32> to vector<2x128xf32>
    %30 = vector.extract_strided_slice %13 {offsets = [0, 3, 0], sizes = [2, 1, 128], strides = [1, 1, 1]} : vector<2x12x128xf32> to vector<2x1x128xf32>
    %31 = vector.shape_cast %30 : vector<2x1x128xf32> to vector<2x128xf32>
    %32 = vector.extract_strided_slice %13 {offsets = [0, 4, 0], sizes = [2, 1, 128], strides = [1, 1, 1]} : vector<2x12x128xf32> to vector<2x1x128xf32>
    %33 = vector.shape_cast %32 : vector<2x1x128xf32> to vector<2x128xf32>
    %34 = tpu.concatenate %27, %29, %31, %33 in 0 : vector<2x128xf32>, vector<2x128xf32>, vector<2x128xf32>, vector<2x128xf32> -> vector<8x128xf32>
    %c1 = arith.constant 1 : index
    %c0_14 = arith.constant 0 : index
    %c0_15 = arith.constant 0 : index
    %35 = vector.load %arg20[%c1, %c0_14, %c0_15] : memref<9x8x128xf32, #tpu.memory_space<vmem>>, vector<1x8x128xf32>
    %36 = vector.shape_cast %35 : vector<1x8x128xf32> to vector<8x128xf32>
    %37 = vector.shape_cast %34 : vector<8x128xf32> to vector<1x8x128xf32>
    tpu.vector_store %arg20[%c1, %c0_14, %c0_15], %37 {strides = array<i32>} : memref<9x8x128xf32, #tpu.memory_space<vmem>>, vector<1x8x128xf32>,
    %38 = vector.extract_strided_slice %13 {offsets = [0, 2, 0], sizes = [2, 1, 128], strides = [1, 1, 1]} : vector<2x12x128xf32> to vector<2x1x128xf32>
    %39 = vector.shape_cast %38 : vector<2x1x128xf32> to vector<2x128xf32>
    %40 = vector.extract_strided_slice %13 {offsets = [0, 3, 0], sizes = [2, 1, 128], strides = [1, 1, 1]} : vector<2x12x128xf32> to vector<2x1x128xf32>
    %41 = vector.shape_cast %40 : vector<2x1x128xf32> to vector<2x128xf32>
    %42 = vector.extract_strided_slice %13 {offsets = [0, 4, 0], sizes = [2, 1, 128], strides = [1, 1, 1]} : vector<2x12x128xf32> to vector<2x1x128xf32>
    %43 = vector.shape_cast %42 : vector<2x1x128xf32> to vector<2x128xf32>
    %44 = vector.extract_strided_slice %13 {offsets = [0, 5, 0], sizes = [2, 1, 128], strides = [1, 1, 1]} : vector<2x12x128xf32> to vector<2x1x128xf32>
    %45 = vector.shape_cast %44 : vector<2x1x128xf32> to vector<2x128xf32>
    %46 = tpu.concatenate %39, %41, %43, %45 in 0 : vector<2x128xf32>, vector<2x128xf32>, vector<2x128xf32>, vector<2x128xf32> -> vector<8x128xf32>
    %c2 = arith.constant 2 : index
    %c0_16 = arith.constant 0 : index
    %c0_17 = arith.constant 0 : index
    %47 = vector.load %arg20[%c2, %c0_16, %c0_17] : memref<9x8x128xf32, #tpu.memory_space<vmem>>, vector<1x8x128xf32>
    %48 = vector.shape_cast %47 : vector<1x8x128xf32> to vector<8x128xf32>
    %49 = vector.shape_cast %46 : vector<8x128xf32> to vector<1x8x128xf32>
    tpu.vector_store %arg20[%c2, %c0_16, %c0_17], %49 {strides = array<i32>} : memref<9x8x128xf32, #tpu.memory_space<vmem>>, vector<1x8x128xf32>,
    %50 = vector.extract_strided_slice %13 {offsets = [0, 3, 0], sizes = [2, 1, 128], strides = [1, 1, 1]} : vector<2x12x128xf32> to vector<2x1x128xf32>
    %51 = vector.shape_cast %50 : vector<2x1x128xf32> to vector<2x128xf32>
    %52 = vector.extract_strided_slice %13 {offsets = [0, 4, 0], sizes = [2, 1, 128], strides = [1, 1, 1]} : vector<2x12x128xf32> to vector<2x1x128xf32>
    %53 = vector.shape_cast %52 : vector<2x1x128xf32> to vector<2x128xf32>
    %54 = vector.extract_strided_slice %13 {offsets = [0, 5, 0], sizes = [2, 1, 128], strides = [1, 1, 1]} : vector<2x12x128xf32> to vector<2x1x128xf32>
    %55 = vector.shape_cast %54 : vector<2x1x128xf32> to vector<2x128xf32>
    %56 = vector.extract_strided_slice %13 {offsets = [0, 6, 0], sizes = [2, 1, 128], strides = [1, 1, 1]} : vector<2x12x128xf32> to vector<2x1x128xf32>
    %57 = vector.shape_cast %56 : vector<2x1x128xf32> to vector<2x128xf32>
    %58 = tpu.concatenate %51, %53, %55, %57 in 0 : vector<2x128xf32>, vector<2x128xf32>, vector<2x128xf32>, vector<2x128xf32> -> vector<8x128xf32>
    %c3 = arith.constant 3 : index
    %c0_18 = arith.constant 0 : index
    %c0_19 = arith.constant 0 : index
    %59 = vector.load %arg20[%c3, %c0_18, %c0_19] : memref<9x8x128xf32, #tpu.memory_space<vmem>>, vector<1x8x128xf32>
    %60 = vector.shape_cast %59 : vector<1x8x128xf32> to vector<8x128xf32>
    %61 = vector.shape_cast %58 : vector<8x128xf32> to vector<1x8x128xf32>
    tpu.vector_store %arg20[%c3, %c0_18, %c0_19], %61 {strides = array<i32>} : memref<9x8x128xf32, #tpu.memory_space<vmem>>, vector<1x8x128xf32>,
    %62 = vector.extract_strided_slice %13 {offsets = [0, 4, 0], sizes = [2, 1, 128], strides = [1, 1, 1]} : vector<2x12x128xf32> to vector<2x1x128xf32>
    %63 = vector.shape_cast %62 : vector<2x1x128xf32> to vector<2x128xf32>
    %64 = vector.extract_strided_slice %13 {offsets = [0, 5, 0], sizes = [2, 1, 128], strides = [1, 1, 1]} : vector<2x12x128xf32> to vector<2x1x128xf32>
    %65 = vector.shape_cast %64 : vector<2x1x128xf32> to vector<2x128xf32>
    %66 = vector.extract_strided_slice %13 {offsets = [0, 6, 0], sizes = [2, 1, 128], strides = [1, 1, 1]} : vector<2x12x128xf32> to vector<2x1x128xf32>
    %67 = vector.shape_cast %66 : vector<2x1x128xf32> to vector<2x128xf32>
    %68 = vector.extract_strided_slice %13 {offsets = [0, 7, 0], sizes = [2, 1, 128], strides = [1, 1, 1]} : vector<2x12x128xf32> to vector<2x1x128xf32>
    %69 = vector.shape_cast %68 : vector<2x1x128xf32> to vector<2x128xf32>
    %70 = tpu.concatenate %63, %65, %67, %69 in 0 : vector<2x128xf32>, vector<2x128xf32>, vector<2x128xf32>, vector<2x128xf32> -> vector<8x128xf32>
    %c4 = arith.constant 4 : index
    %c0_20 = arith.constant 0 : index
    %c0_21 = arith.constant 0 : index
    %71 = vector.load %arg20[%c4, %c0_20, %c0_21] : memref<9x8x128xf32, #tpu.memory_space<vmem>>, vector<1x8x128xf32>
    %72 = vector.shape_cast %71 : vector<1x8x128xf32> to vector<8x128xf32>
    %73 = vector.shape_cast %70 : vector<8x128xf32> to vector<1x8x128xf32>
    tpu.vector_store %arg20[%c4, %c0_20, %c0_21], %73 {strides = array<i32>} : memref<9x8x128xf32, #tpu.memory_space<vmem>>, vector<1x8x128xf32>,
    %74 = vector.extract_strided_slice %13 {offsets = [0, 5, 0], sizes = [2, 1, 128], strides = [1, 1, 1]} : vector<2x12x128xf32> to vector<2x1x128xf32>
    %75 = vector.shape_cast %74 : vector<2x1x128xf32> to vector<2x128xf32>
    %76 = vector.extract_strided_slice %13 {offsets = [0, 6, 0], sizes = [2, 1, 128], strides = [1, 1, 1]} : vector<2x12x128xf32> to vector<2x1x128xf32>
    %77 = vector.shape_cast %76 : vector<2x1x128xf32> to vector<2x128xf32>
    %78 = vector.extract_strided_slice %13 {offsets = [0, 7, 0], sizes = [2, 1, 128], strides = [1, 1, 1]} : vector<2x12x128xf32> to vector<2x1x128xf32>
    %79 = vector.shape_cast %78 : vector<2x1x128xf32> to vector<2x128xf32>
    %80 = vector.extract_strided_slice %13 {offsets = [0, 8, 0], sizes = [2, 1, 128], strides = [1, 1, 1]} : vector<2x12x128xf32> to vector<2x1x128xf32>
    %81 = vector.shape_cast %80 : vector<2x1x128xf32> to vector<2x128xf32>
    %82 = tpu.concatenate %75, %77, %79, %81 in 0 : vector<2x128xf32>, vector<2x128xf32>, vector<2x128xf32>, vector<2x128xf32> -> vector<8x128xf32>
    %c5 = arith.constant 5 : index
    %c0_22 = arith.constant 0 : index
    %c0_23 = arith.constant 0 : index
    %83 = vector.load %arg20[%c5, %c0_22, %c0_23] : memref<9x8x128xf32, #tpu.memory_space<vmem>>, vector<1x8x128xf32>
    %84 = vector.shape_cast %83 : vector<1x8x128xf32> to vector<8x128xf32>
    %85 = vector.shape_cast %82 : vector<8x128xf32> to vector<1x8x128xf32>
    tpu.vector_store %arg20[%c5, %c0_22, %c0_23], %85 {strides = array<i32>} : memref<9x8x128xf32, #tpu.memory_space<vmem>>, vector<1x8x128xf32>,
    %86 = vector.extract_strided_slice %13 {offsets = [0, 6, 0], sizes = [2, 1, 128], strides = [1, 1, 1]} : vector<2x12x128xf32> to vector<2x1x128xf32>
    %87 = vector.shape_cast %86 : vector<2x1x128xf32> to vector<2x128xf32>
    %88 = vector.extract_strided_slice %13 {offsets = [0, 7, 0], sizes = [2, 1, 128], strides = [1, 1, 1]} : vector<2x12x128xf32> to vector<2x1x128xf32>
    %89 = vector.shape_cast %88 : vector<2x1x128xf32> to vector<2x128xf32>
    %90 = vector.extract_strided_slice %13 {offsets = [0, 8, 0], sizes = [2, 1, 128], strides = [1, 1, 1]} : vector<2x12x128xf32> to vector<2x1x128xf32>
    %91 = vector.shape_cast %90 : vector<2x1x128xf32> to vector<2x128xf32>
    %92 = vector.extract_strided_slice %13 {offsets = [0, 9, 0], sizes = [2, 1, 128], strides = [1, 1, 1]} : vector<2x12x128xf32> to vector<2x1x128xf32>
    %93 = vector.shape_cast %92 : vector<2x1x128xf32> to vector<2x128xf32>
    %94 = tpu.concatenate %87, %89, %91, %93 in 0 : vector<2x128xf32>, vector<2x128xf32>, vector<2x128xf32>, vector<2x128xf32> -> vector<8x128xf32>
    %c6 = arith.constant 6 : index
    %c0_24 = arith.constant 0 : index
    %c0_25 = arith.constant 0 : index
    %95 = vector.load %arg20[%c6, %c0_24, %c0_25] : memref<9x8x128xf32, #tpu.memory_space<vmem>>, vector<1x8x128xf32>
    %96 = vector.shape_cast %95 : vector<1x8x128xf32> to vector<8x128xf32>
    %97 = vector.shape_cast %94 : vector<8x128xf32> to vector<1x8x128xf32>
    tpu.vector_store %arg20[%c6, %c0_24, %c0_25], %97 {strides = array<i32>} : memref<9x8x128xf32, #tpu.memory_space<vmem>>, vector<1x8x128xf32>,
    %98 = vector.extract_strided_slice %13 {offsets = [0, 7, 0], sizes = [2, 1, 128], strides = [1, 1, 1]} : vector<2x12x128xf32> to vector<2x1x128xf32>
    %99 = vector.shape_cast %98 : vector<2x1x128xf32> to vector<2x128xf32>
    %100 = vector.extract_strided_slice %13 {offsets = [0, 8, 0], sizes = [2, 1, 128], strides = [1, 1, 1]} : vector<2x12x128xf32> to vector<2x1x128xf32>
    %101 = vector.shape_cast %100 : vector<2x1x128xf32> to vector<2x128xf32>
    %102 = vector.extract_strided_slice %13 {offsets = [0, 9, 0], sizes = [2, 1, 128], strides = [1, 1, 1]} : vector<2x12x128xf32> to vector<2x1x128xf32>
    %103 = vector.shape_cast %102 : vector<2x1x128xf32> to vector<2x128xf32>
    %104 = vector.extract_strided_slice %13 {offsets = [0, 10, 0], sizes = [2, 1, 128], strides = [1, 1, 1]} : vector<2x12x128xf32> to vector<2x1x128xf32>
    %105 = vector.shape_cast %104 : vector<2x1x128xf32> to vector<2x128xf32>
    %106 = tpu.concatenate %99, %101, %103, %105 in 0 : vector<2x128xf32>, vector<2x128xf32>, vector<2x128xf32>, vector<2x128xf32> -> vector<8x128xf32>
    %c7 = arith.constant 7 : index
    %c0_26 = arith.constant 0 : index
    %c0_27 = arith.constant 0 : index
    %107 = vector.load %arg20[%c7, %c0_26, %c0_27] : memref<9x8x128xf32, #tpu.memory_space<vmem>>, vector<1x8x128xf32>
    %108 = vector.shape_cast %107 : vector<1x8x128xf32> to vector<8x128xf32>
    %109 = vector.shape_cast %106 : vector<8x128xf32> to vector<1x8x128xf32>
    tpu.vector_store %arg20[%c7, %c0_26, %c0_27], %109 {strides = array<i32>} : memref<9x8x128xf32, #tpu.memory_space<vmem>>, vector<1x8x128xf32>,
    %110 = vector.extract_strided_slice %13 {offsets = [0, 8, 0], sizes = [2, 1, 128], strides = [1, 1, 1]} : vector<2x12x128xf32> to vector<2x1x128xf32>
    %111 = vector.shape_cast %110 : vector<2x1x128xf32> to vector<2x128xf32>
    %112 = vector.extract_strided_slice %13 {offsets = [0, 9, 0], sizes = [2, 1, 128], strides = [1, 1, 1]} : vector<2x12x128xf32> to vector<2x1x128xf32>
    %113 = vector.shape_cast %112 : vector<2x1x128xf32> to vector<2x128xf32>
    %114 = vector.extract_strided_slice %13 {offsets = [0, 10, 0], sizes = [2, 1, 128], strides = [1, 1, 1]} : vector<2x12x128xf32> to vector<2x1x128xf32>
    %115 = vector.shape_cast %114 : vector<2x1x128xf32> to vector<2x128xf32>
    %116 = vector.extract_strided_slice %13 {offsets = [0, 11, 0], sizes = [2, 1, 128], strides = [1, 1, 1]} : vector<2x12x128xf32> to vector<2x1x128xf32>
    %117 = vector.shape_cast %116 : vector<2x1x128xf32> to vector<2x128xf32>
    %118 = tpu.concatenate %111, %113, %115, %117 in 0 : vector<2x128xf32>, vector<2x128xf32>, vector<2x128xf32>, vector<2x128xf32> -> vector<8x128xf32>
    %c8 = arith.constant 8 : index
    %c0_28 = arith.constant 0 : index
    %c0_29 = arith.constant 0 : index
    %119 = vector.load %arg20[%c8, %c0_28, %c0_29] : memref<9x8x128xf32, #tpu.memory_space<vmem>>, vector<1x8x128xf32>
    %120 = vector.shape_cast %119 : vector<1x8x128xf32> to vector<8x128xf32>
    %121 = vector.shape_cast %118 : vector<8x128xf32> to vector<1x8x128xf32>
    tpu.vector_store %arg20[%c8, %c0_28, %c0_29], %121 {strides = array<i32>} : memref<9x8x128xf32, #tpu.memory_space<vmem>>, vector<1x8x128xf32>,
    %c0_30 = arith.constant 0 : index
    %c0_31 = arith.constant 0 : index
    %122 = vector.load %arg5[%c0_30, %c0_31] : memref<32x128xf32, #tpu.memory_space<vmem>>, vector<32x128xf32>
    %c0_32 = arith.constant 0 : index
    %c0_33 = arith.constant 0 : index
    %123 = vector.load %arg6[%c0_32, %c0_33] : memref<64x128xf32, #tpu.memory_space<vmem>>, vector<64x128xf32>
    %c0_34 = arith.constant 0 : index
    %c0_35 = arith.constant 0 : index
    %124 = vector.load %arg7[%c0_34, %c0_35] : memref<1x128xf32, #tpu.memory_space<vmem>>, vector<1x128xf32>
    %cst_36 = arith.constant 0.000000e+00 : f32
    %125 = vector.broadcast %cst_36 : f32 to vector<8x32xf32>
    %c0_i32 = arith.constant 0 : i32
    %126 = arith.index_cast %c0_i32 : i32 to index
    %c0_37 = arith.constant 0 : index
    %c0_38 = arith.constant 0 : index
    %127 = vector.load %arg20[%126, %c0_37, %c0_38] : memref<9x8x128xf32, #tpu.memory_space<vmem>>, vector<1x8x128xf32>
    %128 = vector.shape_cast %127 : vector<1x8x128xf32> to vector<8x128xf32>
    %cst_39 = arith.constant dense<0.000000e+00> : vector<8x128xf32>
    %129 = tpu.matmul %125, %122, %cst_39 {dimension_numbers = #tpu.dot_dimension_numbers<[1], [0], [0], [1], [0, 0, 1, 1], [], []>} : vector<8x32xf32>, vector<32x128xf32>, vector<8x128xf32> -> vector<8x128xf32>
    %130 = arith.addf %128, %129 : vector<8x128xf32>
    %131 = arith.negf %130 : vector<8x128xf32>
    %132 = math.exp %131 : vector<8x128xf32>
    %cst_40 = arith.constant 1.000000e+00 : f32
    %133 = vector.broadcast %cst_40 : f32 to vector<8x128xf32>
    %134 = arith.addf %133, %132 : vector<8x128xf32>
    %135 = arith.divf %133, %134 : vector<8x128xf32>
    %136 = math.tanh %130 : vector<8x128xf32>
    %137 = vector.extract_strided_slice %135 {offsets = [0, 32], sizes = [8, 32], strides = [1, 1]} : vector<8x128xf32> to vector<8x32xf32>
    %138 = arith.mulf %137, %125 : vector<8x32xf32>
    %139 = vector.extract_strided_slice %135 {offsets = [0, 0], sizes = [8, 32], strides = [1, 1]} : vector<8x128xf32> to vector<8x32xf32>
    %140 = vector.extract_strided_slice %136 {offsets = [0, 64], sizes = [8, 32], strides = [1, 1]} : vector<8x128xf32> to vector<8x32xf32>
    %141 = arith.mulf %139, %140 : vector<8x32xf32>
    %142 = arith.addf %138, %141 : vector<8x32xf32>
    %143 = vector.extract_strided_slice %135 {offsets = [0, 96], sizes = [8, 32], strides = [1, 1]} : vector<8x128xf32> to vector<8x32xf32>
    %144 = math.tanh %142 : vector<8x32xf32>
    %145 = arith.mulf %143, %144 : vector<8x32xf32>
    %146 = tpu.concatenate %145, %125 in 1 : vector<8x32xf32>, vector<8x32xf32> -> vector<8x64xf32>
    %cst_41 = arith.constant dense<0.000000e+00> : vector<8x128xf32>
    %147 = tpu.matmul %146, %123, %cst_41 {dimension_numbers = #tpu.dot_dimension_numbers<[1], [0], [0], [1], [0, 0, 1, 1], [], []>} : vector<8x64xf32>, vector<64x128xf32>, vector<8x128xf32> -> vector<8x128xf32>
    %148 = vector.broadcast %124 : vector<1x128xf32> to vector<8x128xf32>
    %149 = arith.addf %147, %148 : vector<8x128xf32>
    %150 = arith.negf %149 : vector<8x128xf32>
    %151 = math.exp %150 : vector<8x128xf32>
    %cst_42 = arith.constant 1.000000e+00 : f32
    %152 = vector.broadcast %cst_42 : f32 to vector<8x128xf32>
    %153 = arith.addf %152, %151 : vector<8x128xf32>
    %154 = arith.divf %152, %153 : vector<8x128xf32>
    %155 = math.tanh %149 : vector<8x128xf32>
    %156 = vector.extract_strided_slice %154 {offsets = [0, 32], sizes = [8, 32], strides = [1, 1]} : vector<8x128xf32> to vector<8x32xf32>
    %157 = arith.mulf %156, %125 : vector<8x32xf32>
    %158 = vector.extract_strided_slice %154 {offsets = [0, 0], sizes = [8, 32], strides = [1, 1]} : vector<8x128xf32> to vector<8x32xf32>
    %159 = vector.extract_strided_slice %155 {offsets = [0, 64], sizes = [8, 32], strides = [1, 1]} : vector<8x128xf32> to vector<8x32xf32>
    %160 = arith.mulf %158, %159 : vector<8x32xf32>
    %161 = arith.addf %157, %160 : vector<8x32xf32>
    %162 = vector.extract_strided_slice %154 {offsets = [0, 96], sizes = [8, 32], strides = [1, 1]} : vector<8x128xf32> to vector<8x32xf32>
    %163 = math.tanh %161 : vector<8x32xf32>
    %164 = arith.mulf %162, %163 : vector<8x32xf32>
    %165 = arith.index_cast %c0_i32 : i32 to index
    %c0_43 = arith.constant 0 : index
    %c0_44 = arith.constant 0 : index
    %166 = vector.load %arg21[%165, %c0_43, %c0_44] : memref<9x8x32xf32, #tpu.memory_space<vmem>>, vector<1x8x32xf32>
    %167 = vector.shape_cast %166 : vector<1x8x32xf32> to vector<8x32xf32>
    %168 = vector.shape_cast %164 : vector<8x32xf32> to vector<1x8x32xf32>
    tpu.vector_store %arg21[%165, %c0_43, %c0_44], %168 {strides = array<i32>} : memref<9x8x32xf32, #tpu.memory_space<vmem>>, vector<1x8x32xf32>,
    %c1_i32 = arith.constant 1 : i32
    %169 = arith.index_cast %c1_i32 : i32 to index
    %c0_45 = arith.constant 0 : index
    %c0_46 = arith.constant 0 : index
    %170 = vector.load %arg20[%169, %c0_45, %c0_46] : memref<9x8x128xf32, #tpu.memory_space<vmem>>, vector<1x8x128xf32>
    %171 = vector.shape_cast %170 : vector<1x8x128xf32> to vector<8x128xf32>
    %cst_47 = arith.constant dense<0.000000e+00> : vector<8x128xf32>
    %172 = tpu.matmul %145, %122, %cst_47 {dimension_numbers = #tpu.dot_dimension_numbers<[1], [0], [0], [1], [0, 0, 1, 1], [], []>} : vector<8x32xf32>, vector<32x128xf32>, vector<8x128xf32> -> vector<8x128xf32>
    %173 = arith.addf %171, %172 : vector<8x128xf32>
    %174 = arith.negf %173 : vector<8x128xf32>
    %175 = math.exp %174 : vector<8x128xf32>
    %cst_48 = arith.constant 1.000000e+00 : f32
    %176 = vector.broadcast %cst_48 : f32 to vector<8x128xf32>
    %177 = arith.addf %176, %175 : vector<8x128xf32>
    %178 = arith.divf %176, %177 : vector<8x128xf32>
    %179 = math.tanh %173 : vector<8x128xf32>
    %180 = vector.extract_strided_slice %178 {offsets = [0, 32], sizes = [8, 32], strides = [1, 1]} : vector<8x128xf32> to vector<8x32xf32>
    %181 = arith.mulf %180, %142 : vector<8x32xf32>
    %182 = vector.extract_strided_slice %178 {offsets = [0, 0], sizes = [8, 32], strides = [1, 1]} : vector<8x128xf32> to vector<8x32xf32>
    %183 = vector.extract_strided_slice %179 {offsets = [0, 64], sizes = [8, 32], strides = [1, 1]} : vector<8x128xf32> to vector<8x32xf32>
    %184 = arith.mulf %182, %183 : vector<8x32xf32>
    %185 = arith.addf %181, %184 : vector<8x32xf32>
    %186 = vector.extract_strided_slice %178 {offsets = [0, 96], sizes = [8, 32], strides = [1, 1]} : vector<8x128xf32> to vector<8x32xf32>
    %187 = math.tanh %185 : vector<8x32xf32>
    %188 = arith.mulf %186, %187 : vector<8x32xf32>
    %189 = tpu.concatenate %188, %164 in 1 : vector<8x32xf32>, vector<8x32xf32> -> vector<8x64xf32>
    %cst_49 = arith.constant dense<0.000000e+00> : vector<8x128xf32>
    %190 = tpu.matmul %189, %123, %cst_49 {dimension_numbers = #tpu.dot_dimension_numbers<[1], [0], [0], [1], [0, 0, 1, 1], [], []>} : vector<8x64xf32>, vector<64x128xf32>, vector<8x128xf32> -> vector<8x128xf32>
    %191 = vector.broadcast %124 : vector<1x128xf32> to vector<8x128xf32>
    %192 = arith.addf %190, %191 : vector<8x128xf32>
    %193 = arith.negf %192 : vector<8x128xf32>
    %194 = math.exp %193 : vector<8x128xf32>
    %cst_50 = arith.constant 1.000000e+00 : f32
    %195 = vector.broadcast %cst_50 : f32 to vector<8x128xf32>
    %196 = arith.addf %195, %194 : vector<8x128xf32>
    %197 = arith.divf %195, %196 : vector<8x128xf32>
    %198 = math.tanh %192 : vector<8x128xf32>
    %199 = vector.extract_strided_slice %197 {offsets = [0, 32], sizes = [8, 32], strides = [1, 1]} : vector<8x128xf32> to vector<8x32xf32>
    %200 = arith.mulf %199, %161 : vector<8x32xf32>
    %201 = vector.extract_strided_slice %197 {offsets = [0, 0], sizes = [8, 32], strides = [1, 1]} : vector<8x128xf32> to vector<8x32xf32>
    %202 = vector.extract_strided_slice %198 {offsets = [0, 64], sizes = [8, 32], strides = [1, 1]} : vector<8x128xf32> to vector<8x32xf32>
    %203 = arith.mulf %201, %202 : vector<8x32xf32>
    %204 = arith.addf %200, %203 : vector<8x32xf32>
    %205 = vector.extract_strided_slice %197 {offsets = [0, 96], sizes = [8, 32], strides = [1, 1]} : vector<8x128xf32> to vector<8x32xf32>
    %206 = math.tanh %204 : vector<8x32xf32>
    %207 = arith.mulf %205, %206 : vector<8x32xf32>
    %208 = arith.index_cast %c1_i32 : i32 to index
    %c0_51 = arith.constant 0 : index
    %c0_52 = arith.constant 0 : index
    %209 = vector.load %arg21[%208, %c0_51, %c0_52] : memref<9x8x32xf32, #tpu.memory_space<vmem>>, vector<1x8x32xf32>
    %210 = vector.shape_cast %209 : vector<1x8x32xf32> to vector<8x32xf32>
    %211 = vector.shape_cast %207 : vector<8x32xf32> to vector<1x8x32xf32>
    tpu.vector_store %arg21[%208, %c0_51, %c0_52], %211 {strides = array<i32>} : memref<9x8x32xf32, #tpu.memory_space<vmem>>, vector<1x8x32xf32>,
    %c2_i32 = arith.constant 2 : i32
    %212 = arith.index_cast %c2_i32 : i32 to index
    %c0_53 = arith.constant 0 : index
    %c0_54 = arith.constant 0 : index
    %213 = vector.load %arg20[%212, %c0_53, %c0_54] : memref<9x8x128xf32, #tpu.memory_space<vmem>>, vector<1x8x128xf32>
    %214 = vector.shape_cast %213 : vector<1x8x128xf32> to vector<8x128xf32>
    %cst_55 = arith.constant dense<0.000000e+00> : vector<8x128xf32>
    %215 = tpu.matmul %188, %122, %cst_55 {dimension_numbers = #tpu.dot_dimension_numbers<[1], [0], [0], [1], [0, 0, 1, 1], [], []>} : vector<8x32xf32>, vector<32x128xf32>, vector<8x128xf32> -> vector<8x128xf32>
    %216 = arith.addf %214, %215 : vector<8x128xf32>
    %217 = arith.negf %216 : vector<8x128xf32>
    %218 = math.exp %217 : vector<8x128xf32>
    %cst_56 = arith.constant 1.000000e+00 : f32
    %219 = vector.broadcast %cst_56 : f32 to vector<8x128xf32>
    %220 = arith.addf %219, %218 : vector<8x128xf32>
    %221 = arith.divf %219, %220 : vector<8x128xf32>
    %222 = math.tanh %216 : vector<8x128xf32>
    %223 = vector.extract_strided_slice %221 {offsets = [0, 32], sizes = [8, 32], strides = [1, 1]} : vector<8x128xf32> to vector<8x32xf32>
    %224 = arith.mulf %223, %185 : vector<8x32xf32>
    %225 = vector.extract_strided_slice %221 {offsets = [0, 0], sizes = [8, 32], strides = [1, 1]} : vector<8x128xf32> to vector<8x32xf32>
    %226 = vector.extract_strided_slice %222 {offsets = [0, 64], sizes = [8, 32], strides = [1, 1]} : vector<8x128xf32> to vector<8x32xf32>
    %227 = arith.mulf %225, %226 : vector<8x32xf32>
    %228 = arith.addf %224, %227 : vector<8x32xf32>
    %229 = vector.extract_strided_slice %221 {offsets = [0, 96], sizes = [8, 32], strides = [1, 1]} : vector<8x128xf32> to vector<8x32xf32>
    %230 = math.tanh %228 : vector<8x32xf32>
    %231 = arith.mulf %229, %230 : vector<8x32xf32>
    %232 = tpu.concatenate %231, %207 in 1 : vector<8x32xf32>, vector<8x32xf32> -> vector<8x64xf32>
    %cst_57 = arith.constant dense<0.000000e+00> : vector<8x128xf32>
    %233 = tpu.matmul %232, %123, %cst_57 {dimension_numbers = #tpu.dot_dimension_numbers<[1], [0], [0], [1], [0, 0, 1, 1], [], []>} : vector<8x64xf32>, vector<64x128xf32>, vector<8x128xf32> -> vector<8x128xf32>
    %234 = vector.broadcast %124 : vector<1x128xf32> to vector<8x128xf32>
    %235 = arith.addf %233, %234 : vector<8x128xf32>
    %236 = arith.negf %235 : vector<8x128xf32>
    %237 = math.exp %236 : vector<8x128xf32>
    %cst_58 = arith.constant 1.000000e+00 : f32
    %238 = vector.broadcast %cst_58 : f32 to vector<8x128xf32>
    %239 = arith.addf %238, %237 : vector<8x128xf32>
    %240 = arith.divf %238, %239 : vector<8x128xf32>
    %241 = math.tanh %235 : vector<8x128xf32>
    %242 = vector.extract_strided_slice %240 {offsets = [0, 32], sizes = [8, 32], strides = [1, 1]} : vector<8x128xf32> to vector<8x32xf32>
    %243 = arith.mulf %242, %204 : vector<8x32xf32>
    %244 = vector.extract_strided_slice %240 {offsets = [0, 0], sizes = [8, 32], strides = [1, 1]} : vector<8x128xf32> to vector<8x32xf32>
    %245 = vector.extract_strided_slice %241 {offsets = [0, 64], sizes = [8, 32], strides = [1, 1]} : vector<8x128xf32> to vector<8x32xf32>
    %246 = arith.mulf %244, %245 : vector<8x32xf32>
    %247 = arith.addf %243, %246 : vector<8x32xf32>
    %248 = vector.extract_strided_slice %240 {offsets = [0, 96], sizes = [8, 32], strides = [1, 1]} : vector<8x128xf32> to vector<8x32xf32>
    %249 = math.tanh %247 : vector<8x32xf32>
    %250 = arith.mulf %248, %249 : vector<8x32xf32>
    %251 = arith.index_cast %c2_i32 : i32 to index
    %c0_59 = arith.constant 0 : index
    %c0_60 = arith.constant 0 : index
    %252 = vector.load %arg21[%251, %c0_59, %c0_60] : memref<9x8x32xf32, #tpu.memory_space<vmem>>, vector<1x8x32xf32>
    %253 = vector.shape_cast %252 : vector<1x8x32xf32> to vector<8x32xf32>
    %254 = vector.shape_cast %250 : vector<8x32xf32> to vector<1x8x32xf32>
    tpu.vector_store %arg21[%251, %c0_59, %c0_60], %254 {strides = array<i32>} : memref<9x8x32xf32, #tpu.memory_space<vmem>>, vector<1x8x32xf32>,
    %c3_i32 = arith.constant 3 : i32
    %255 = arith.index_cast %c3_i32 : i32 to index
    %c0_61 = arith.constant 0 : index
    %c0_62 = arith.constant 0 : index
    %256 = vector.load %arg20[%255, %c0_61, %c0_62] : memref<9x8x128xf32, #tpu.memory_space<vmem>>, vector<1x8x128xf32>
    %257 = vector.shape_cast %256 : vector<1x8x128xf32> to vector<8x128xf32>
    %cst_63 = arith.constant dense<0.000000e+00> : vector<8x128xf32>
    %258 = tpu.matmul %231, %122, %cst_63 {dimension_numbers = #tpu.dot_dimension_numbers<[1], [0], [0], [1], [0, 0, 1, 1], [], []>} : vector<8x32xf32>, vector<32x128xf32>, vector<8x128xf32> -> vector<8x128xf32>
    %259 = arith.addf %257, %258 : vector<8x128xf32>
    %260 = arith.negf %259 : vector<8x128xf32>
    %261 = math.exp %260 : vector<8x128xf32>
    %cst_64 = arith.constant 1.000000e+00 : f32
    %262 = vector.broadcast %cst_64 : f32 to vector<8x128xf32>
    %263 = arith.addf %262, %261 : vector<8x128xf32>
    %264 = arith.divf %262, %263 : vector<8x128xf32>
    %265 = math.tanh %259 : vector<8x128xf32>
    %266 = vector.extract_strided_slice %264 {offsets = [0, 32], sizes = [8, 32], strides = [1, 1]} : vector<8x128xf32> to vector<8x32xf32>
    %267 = arith.mulf %266, %228 : vector<8x32xf32>
    %268 = vector.extract_strided_slice %264 {offsets = [0, 0], sizes = [8, 32], strides = [1, 1]} : vector<8x128xf32> to vector<8x32xf32>
    %269 = vector.extract_strided_slice %265 {offsets = [0, 64], sizes = [8, 32], strides = [1, 1]} : vector<8x128xf32> to vector<8x32xf32>
    %270 = arith.mulf %268, %269 : vector<8x32xf32>
    %271 = arith.addf %267, %270 : vector<8x32xf32>
    %272 = vector.extract_strided_slice %264 {offsets = [0, 96], sizes = [8, 32], strides = [1, 1]} : vector<8x128xf32> to vector<8x32xf32>
    %273 = math.tanh %271 : vector<8x32xf32>
    %274 = arith.mulf %272, %273 : vector<8x32xf32>
    %275 = tpu.concatenate %274, %250 in 1 : vector<8x32xf32>, vector<8x32xf32> -> vector<8x64xf32>
    %cst_65 = arith.constant dense<0.000000e+00> : vector<8x128xf32>
    %276 = tpu.matmul %275, %123, %cst_65 {dimension_numbers = #tpu.dot_dimension_numbers<[1], [0], [0], [1], [0, 0, 1, 1], [], []>} : vector<8x64xf32>, vector<64x128xf32>, vector<8x128xf32> -> vector<8x128xf32>
    %277 = vector.broadcast %124 : vector<1x128xf32> to vector<8x128xf32>
    %278 = arith.addf %276, %277 : vector<8x128xf32>
    %279 = arith.negf %278 : vector<8x128xf32>
    %280 = math.exp %279 : vector<8x128xf32>
    %cst_66 = arith.constant 1.000000e+00 : f32
    %281 = vector.broadcast %cst_66 : f32 to vector<8x128xf32>
    %282 = arith.addf %281, %280 : vector<8x128xf32>
    %283 = arith.divf %281, %282 : vector<8x128xf32>
    %284 = math.tanh %278 : vector<8x128xf32>
    %285 = vector.extract_strided_slice %283 {offsets = [0, 32], sizes = [8, 32], strides = [1, 1]} : vector<8x128xf32> to vector<8x32xf32>
    %286 = arith.mulf %285, %247 : vector<8x32xf32>
    %287 = vector.extract_strided_slice %283 {offsets = [0, 0], sizes = [8, 32], strides = [1, 1]} : vector<8x128xf32> to vector<8x32xf32>
    %288 = vector.extract_strided_slice %284 {offsets = [0, 64], sizes = [8, 32], strides = [1, 1]} : vector<8x128xf32> to vector<8x32xf32>
    %289 = arith.mulf %287, %288 : vector<8x32xf32>
    %290 = arith.addf %286, %289 : vector<8x32xf32>
    %291 = vector.extract_strided_slice %283 {offsets = [0, 96], sizes = [8, 32], strides = [1, 1]} : vector<8x128xf32> to vector<8x32xf32>
    %292 = math.tanh %290 : vector<8x32xf32>
    %293 = arith.mulf %291, %292 : vector<8x32xf32>
    %294 = arith.index_cast %c3_i32 : i32 to index
    %c0_67 = arith.constant 0 : index
    %c0_68 = arith.constant 0 : index
    %295 = vector.load %arg21[%294, %c0_67, %c0_68] : memref<9x8x32xf32, #tpu.memory_space<vmem>>, vector<1x8x32xf32>
    %296 = vector.shape_cast %295 : vector<1x8x32xf32> to vector<8x32xf32>
    %297 = vector.shape_cast %293 : vector<8x32xf32> to vector<1x8x32xf32>
    tpu.vector_store %arg21[%294, %c0_67, %c0_68], %297 {strides = array<i32>} : memref<9x8x32xf32, #tpu.memory_space<vmem>>, vector<1x8x32xf32>,
    %c4_i32 = arith.constant 4 : i32
    %298 = arith.index_cast %c4_i32 : i32 to index
    %c0_69 = arith.constant 0 : index
    %c0_70 = arith.constant 0 : index
    %299 = vector.load %arg20[%298, %c0_69, %c0_70] : memref<9x8x128xf32, #tpu.memory_space<vmem>>, vector<1x8x128xf32>
    %300 = vector.shape_cast %299 : vector<1x8x128xf32> to vector<8x128xf32>
    %cst_71 = arith.constant dense<0.000000e+00> : vector<8x128xf32>
    %301 = tpu.matmul %274, %122, %cst_71 {dimension_numbers = #tpu.dot_dimension_numbers<[1], [0], [0], [1], [0, 0, 1, 1], [], []>} : vector<8x32xf32>, vector<32x128xf32>, vector<8x128xf32> -> vector<8x128xf32>
    %302 = arith.addf %300, %301 : vector<8x128xf32>
    %303 = arith.negf %302 : vector<8x128xf32>
    %304 = math.exp %303 : vector<8x128xf32>
    %cst_72 = arith.constant 1.000000e+00 : f32
    %305 = vector.broadcast %cst_72 : f32 to vector<8x128xf32>
    %306 = arith.addf %305, %304 : vector<8x128xf32>
    %307 = arith.divf %305, %306 : vector<8x128xf32>
    %308 = math.tanh %302 : vector<8x128xf32>
    %309 = vector.extract_strided_slice %307 {offsets = [0, 32], sizes = [8, 32], strides = [1, 1]} : vector<8x128xf32> to vector<8x32xf32>
    %310 = arith.mulf %309, %271 : vector<8x32xf32>
    %311 = vector.extract_strided_slice %307 {offsets = [0, 0], sizes = [8, 32], strides = [1, 1]} : vector<8x128xf32> to vector<8x32xf32>
    %312 = vector.extract_strided_slice %308 {offsets = [0, 64], sizes = [8, 32], strides = [1, 1]} : vector<8x128xf32> to vector<8x32xf32>
    %313 = arith.mulf %311, %312 : vector<8x32xf32>
    %314 = arith.addf %310, %313 : vector<8x32xf32>
    %315 = vector.extract_strided_slice %307 {offsets = [0, 96], sizes = [8, 32], strides = [1, 1]} : vector<8x128xf32> to vector<8x32xf32>
    %316 = math.tanh %314 : vector<8x32xf32>
    %317 = arith.mulf %315, %316 : vector<8x32xf32>
    %318 = tpu.concatenate %317, %293 in 1 : vector<8x32xf32>, vector<8x32xf32> -> vector<8x64xf32>
    %cst_73 = arith.constant dense<0.000000e+00> : vector<8x128xf32>
    %319 = tpu.matmul %318, %123, %cst_73 {dimension_numbers = #tpu.dot_dimension_numbers<[1], [0], [0], [1], [0, 0, 1, 1], [], []>} : vector<8x64xf32>, vector<64x128xf32>, vector<8x128xf32> -> vector<8x128xf32>
    %320 = vector.broadcast %124 : vector<1x128xf32> to vector<8x128xf32>
    %321 = arith.addf %319, %320 : vector<8x128xf32>
    %322 = arith.negf %321 : vector<8x128xf32>
    %323 = math.exp %322 : vector<8x128xf32>
    %cst_74 = arith.constant 1.000000e+00 : f32
    %324 = vector.broadcast %cst_74 : f32 to vector<8x128xf32>
    %325 = arith.addf %324, %323 : vector<8x128xf32>
    %326 = arith.divf %324, %325 : vector<8x128xf32>
    %327 = math.tanh %321 : vector<8x128xf32>
    %328 = vector.extract_strided_slice %326 {offsets = [0, 32], sizes = [8, 32], strides = [1, 1]} : vector<8x128xf32> to vector<8x32xf32>
    %329 = arith.mulf %328, %290 : vector<8x32xf32>
    %330 = vector.extract_strided_slice %326 {offsets = [0, 0], sizes = [8, 32], strides = [1, 1]} : vector<8x128xf32> to vector<8x32xf32>
    %331 = vector.extract_strided_slice %327 {offsets = [0, 64], sizes = [8, 32], strides = [1, 1]} : vector<8x128xf32> to vector<8x32xf32>
    %332 = arith.mulf %330, %331 : vector<8x32xf32>
    %333 = arith.addf %329, %332 : vector<8x32xf32>
    %334 = vector.extract_strided_slice %326 {offsets = [0, 96], sizes = [8, 32], strides = [1, 1]} : vector<8x128xf32> to vector<8x32xf32>
    %335 = math.tanh %333 : vector<8x32xf32>
    %336 = arith.mulf %334, %335 : vector<8x32xf32>
    %337 = arith.index_cast %c4_i32 : i32 to index
    %c0_75 = arith.constant 0 : index
    %c0_76 = arith.constant 0 : index
    %338 = vector.load %arg21[%337, %c0_75, %c0_76] : memref<9x8x32xf32, #tpu.memory_space<vmem>>, vector<1x8x32xf32>
    %339 = vector.shape_cast %338 : vector<1x8x32xf32> to vector<8x32xf32>
    %340 = vector.shape_cast %336 : vector<8x32xf32> to vector<1x8x32xf32>
    tpu.vector_store %arg21[%337, %c0_75, %c0_76], %340 {strides = array<i32>} : memref<9x8x32xf32, #tpu.memory_space<vmem>>, vector<1x8x32xf32>,
    %c5_i32 = arith.constant 5 : i32
    %341 = arith.index_cast %c5_i32 : i32 to index
    %c0_77 = arith.constant 0 : index
    %c0_78 = arith.constant 0 : index
    %342 = vector.load %arg20[%341, %c0_77, %c0_78] : memref<9x8x128xf32, #tpu.memory_space<vmem>>, vector<1x8x128xf32>
    %343 = vector.shape_cast %342 : vector<1x8x128xf32> to vector<8x128xf32>
    %cst_79 = arith.constant dense<0.000000e+00> : vector<8x128xf32>
    %344 = tpu.matmul %317, %122, %cst_79 {dimension_numbers = #tpu.dot_dimension_numbers<[1], [0], [0], [1], [0, 0, 1, 1], [], []>} : vector<8x32xf32>, vector<32x128xf32>, vector<8x128xf32> -> vector<8x128xf32>
    %345 = arith.addf %343, %344 : vector<8x128xf32>
    %346 = arith.negf %345 : vector<8x128xf32>
    %347 = math.exp %346 : vector<8x128xf32>
    %cst_80 = arith.constant 1.000000e+00 : f32
    %348 = vector.broadcast %cst_80 : f32 to vector<8x128xf32>
    %349 = arith.addf %348, %347 : vector<8x128xf32>
    %350 = arith.divf %348, %349 : vector<8x128xf32>
    %351 = math.tanh %345 : vector<8x128xf32>
    %352 = vector.extract_strided_slice %350 {offsets = [0, 32], sizes = [8, 32], strides = [1, 1]} : vector<8x128xf32> to vector<8x32xf32>
    %353 = arith.mulf %352, %314 : vector<8x32xf32>
    %354 = vector.extract_strided_slice %350 {offsets = [0, 0], sizes = [8, 32], strides = [1, 1]} : vector<8x128xf32> to vector<8x32xf32>
    %355 = vector.extract_strided_slice %351 {offsets = [0, 64], sizes = [8, 32], strides = [1, 1]} : vector<8x128xf32> to vector<8x32xf32>
    %356 = arith.mulf %354, %355 : vector<8x32xf32>
    %357 = arith.addf %353, %356 : vector<8x32xf32>
    %358 = vector.extract_strided_slice %350 {offsets = [0, 96], sizes = [8, 32], strides = [1, 1]} : vector<8x128xf32> to vector<8x32xf32>
    %359 = math.tanh %357 : vector<8x32xf32>
    %360 = arith.mulf %358, %359 : vector<8x32xf32>
    %361 = tpu.concatenate %360, %336 in 1 : vector<8x32xf32>, vector<8x32xf32> -> vector<8x64xf32>
    %cst_81 = arith.constant dense<0.000000e+00> : vector<8x128xf32>
    %362 = tpu.matmul %361, %123, %cst_81 {dimension_numbers = #tpu.dot_dimension_numbers<[1], [0], [0], [1], [0, 0, 1, 1], [], []>} : vector<8x64xf32>, vector<64x128xf32>, vector<8x128xf32> -> vector<8x128xf32>
    %363 = vector.broadcast %124 : vector<1x128xf32> to vector<8x128xf32>
    %364 = arith.addf %362, %363 : vector<8x128xf32>
    %365 = arith.negf %364 : vector<8x128xf32>
    %366 = math.exp %365 : vector<8x128xf32>
    %cst_82 = arith.constant 1.000000e+00 : f32
    %367 = vector.broadcast %cst_82 : f32 to vector<8x128xf32>
    %368 = arith.addf %367, %366 : vector<8x128xf32>
    %369 = arith.divf %367, %368 : vector<8x128xf32>
    %370 = math.tanh %364 : vector<8x128xf32>
    %371 = vector.extract_strided_slice %369 {offsets = [0, 32], sizes = [8, 32], strides = [1, 1]} : vector<8x128xf32> to vector<8x32xf32>
    %372 = arith.mulf %371, %333 : vector<8x32xf32>
    %373 = vector.extract_strided_slice %369 {offsets = [0, 0], sizes = [8, 32], strides = [1, 1]} : vector<8x128xf32> to vector<8x32xf32>
    %374 = vector.extract_strided_slice %370 {offsets = [0, 64], sizes = [8, 32], strides = [1, 1]} : vector<8x128xf32> to vector<8x32xf32>
    %375 = arith.mulf %373, %374 : vector<8x32xf32>
    %376 = arith.addf %372, %375 : vector<8x32xf32>
    %377 = vector.extract_strided_slice %369 {offsets = [0, 96], sizes = [8, 32], strides = [1, 1]} : vector<8x128xf32> to vector<8x32xf32>
    %378 = math.tanh %376 : vector<8x32xf32>
    %379 = arith.mulf %377, %378 : vector<8x32xf32>
    %380 = arith.index_cast %c5_i32 : i32 to index
    %c0_83 = arith.constant 0 : index
    %c0_84 = arith.constant 0 : index
    %381 = vector.load %arg21[%380, %c0_83, %c0_84] : memref<9x8x32xf32, #tpu.memory_space<vmem>>, vector<1x8x32xf32>
    %382 = vector.shape_cast %381 : vector<1x8x32xf32> to vector<8x32xf32>
    %383 = vector.shape_cast %379 : vector<8x32xf32> to vector<1x8x32xf32>
    tpu.vector_store %arg21[%380, %c0_83, %c0_84], %383 {strides = array<i32>} : memref<9x8x32xf32, #tpu.memory_space<vmem>>, vector<1x8x32xf32>,
    %c6_i32 = arith.constant 6 : i32
    %384 = arith.index_cast %c6_i32 : i32 to index
    %c0_85 = arith.constant 0 : index
    %c0_86 = arith.constant 0 : index
    %385 = vector.load %arg20[%384, %c0_85, %c0_86] : memref<9x8x128xf32, #tpu.memory_space<vmem>>, vector<1x8x128xf32>
    %386 = vector.shape_cast %385 : vector<1x8x128xf32> to vector<8x128xf32>
    %cst_87 = arith.constant dense<0.000000e+00> : vector<8x128xf32>
    %387 = tpu.matmul %360, %122, %cst_87 {dimension_numbers = #tpu.dot_dimension_numbers<[1], [0], [0], [1], [0, 0, 1, 1], [], []>} : vector<8x32xf32>, vector<32x128xf32>, vector<8x128xf32> -> vector<8x128xf32>
    %388 = arith.addf %386, %387 : vector<8x128xf32>
    %389 = arith.negf %388 : vector<8x128xf32>
    %390 = math.exp %389 : vector<8x128xf32>
    %cst_88 = arith.constant 1.000000e+00 : f32
    %391 = vector.broadcast %cst_88 : f32 to vector<8x128xf32>
    %392 = arith.addf %391, %390 : vector<8x128xf32>
    %393 = arith.divf %391, %392 : vector<8x128xf32>
    %394 = math.tanh %388 : vector<8x128xf32>
    %395 = vector.extract_strided_slice %393 {offsets = [0, 32], sizes = [8, 32], strides = [1, 1]} : vector<8x128xf32> to vector<8x32xf32>
    %396 = arith.mulf %395, %357 : vector<8x32xf32>
    %397 = vector.extract_strided_slice %393 {offsets = [0, 0], sizes = [8, 32], strides = [1, 1]} : vector<8x128xf32> to vector<8x32xf32>
    %398 = vector.extract_strided_slice %394 {offsets = [0, 64], sizes = [8, 32], strides = [1, 1]} : vector<8x128xf32> to vector<8x32xf32>
    %399 = arith.mulf %397, %398 : vector<8x32xf32>
    %400 = arith.addf %396, %399 : vector<8x32xf32>
    %401 = vector.extract_strided_slice %393 {offsets = [0, 96], sizes = [8, 32], strides = [1, 1]} : vector<8x128xf32> to vector<8x32xf32>
    %402 = math.tanh %400 : vector<8x32xf32>
    %403 = arith.mulf %401, %402 : vector<8x32xf32>
    %404 = tpu.concatenate %403, %379 in 1 : vector<8x32xf32>, vector<8x32xf32> -> vector<8x64xf32>
    %cst_89 = arith.constant dense<0.000000e+00> : vector<8x128xf32>
    %405 = tpu.matmul %404, %123, %cst_89 {dimension_numbers = #tpu.dot_dimension_numbers<[1], [0], [0], [1], [0, 0, 1, 1], [], []>} : vector<8x64xf32>, vector<64x128xf32>, vector<8x128xf32> -> vector<8x128xf32>
    %406 = vector.broadcast %124 : vector<1x128xf32> to vector<8x128xf32>
    %407 = arith.addf %405, %406 : vector<8x128xf32>
    %408 = arith.negf %407 : vector<8x128xf32>
    %409 = math.exp %408 : vector<8x128xf32>
    %cst_90 = arith.constant 1.000000e+00 : f32
    %410 = vector.broadcast %cst_90 : f32 to vector<8x128xf32>
    %411 = arith.addf %410, %409 : vector<8x128xf32>
    %412 = arith.divf %410, %411 : vector<8x128xf32>
    %413 = math.tanh %407 : vector<8x128xf32>
    %414 = vector.extract_strided_slice %412 {offsets = [0, 32], sizes = [8, 32], strides = [1, 1]} : vector<8x128xf32> to vector<8x32xf32>
    %415 = arith.mulf %414, %376 : vector<8x32xf32>
    %416 = vector.extract_strided_slice %412 {offsets = [0, 0], sizes = [8, 32], strides = [1, 1]} : vector<8x128xf32> to vector<8x32xf32>
    %417 = vector.extract_strided_slice %413 {offsets = [0, 64], sizes = [8, 32], strides = [1, 1]} : vector<8x128xf32> to vector<8x32xf32>
    %418 = arith.mulf %416, %417 : vector<8x32xf32>
    %419 = arith.addf %415, %418 : vector<8x32xf32>
    %420 = vector.extract_strided_slice %412 {offsets = [0, 96], sizes = [8, 32], strides = [1, 1]} : vector<8x128xf32> to vector<8x32xf32>
    %421 = math.tanh %419 : vector<8x32xf32>
    %422 = arith.mulf %420, %421 : vector<8x32xf32>
    %423 = arith.index_cast %c6_i32 : i32 to index
    %c0_91 = arith.constant 0 : index
    %c0_92 = arith.constant 0 : index
    %424 = vector.load %arg21[%423, %c0_91, %c0_92] : memref<9x8x32xf32, #tpu.memory_space<vmem>>, vector<1x8x32xf32>
    %425 = vector.shape_cast %424 : vector<1x8x32xf32> to vector<8x32xf32>
    %426 = vector.shape_cast %422 : vector<8x32xf32> to vector<1x8x32xf32>
    tpu.vector_store %arg21[%423, %c0_91, %c0_92], %426 {strides = array<i32>} : memref<9x8x32xf32, #tpu.memory_space<vmem>>, vector<1x8x32xf32>,
    %c7_i32 = arith.constant 7 : i32
    %427 = arith.index_cast %c7_i32 : i32 to index
    %c0_93 = arith.constant 0 : index
    %c0_94 = arith.constant 0 : index
    %428 = vector.load %arg20[%427, %c0_93, %c0_94] : memref<9x8x128xf32, #tpu.memory_space<vmem>>, vector<1x8x128xf32>
    %429 = vector.shape_cast %428 : vector<1x8x128xf32> to vector<8x128xf32>
    %cst_95 = arith.constant dense<0.000000e+00> : vector<8x128xf32>
    %430 = tpu.matmul %403, %122, %cst_95 {dimension_numbers = #tpu.dot_dimension_numbers<[1], [0], [0], [1], [0, 0, 1, 1], [], []>} : vector<8x32xf32>, vector<32x128xf32>, vector<8x128xf32> -> vector<8x128xf32>
    %431 = arith.addf %429, %430 : vector<8x128xf32>
    %432 = arith.negf %431 : vector<8x128xf32>
    %433 = math.exp %432 : vector<8x128xf32>
    %cst_96 = arith.constant 1.000000e+00 : f32
    %434 = vector.broadcast %cst_96 : f32 to vector<8x128xf32>
    %435 = arith.addf %434, %433 : vector<8x128xf32>
    %436 = arith.divf %434, %435 : vector<8x128xf32>
    %437 = math.tanh %431 : vector<8x128xf32>
    %438 = vector.extract_strided_slice %436 {offsets = [0, 32], sizes = [8, 32], strides = [1, 1]} : vector<8x128xf32> to vector<8x32xf32>
    %439 = arith.mulf %438, %400 : vector<8x32xf32>
    %440 = vector.extract_strided_slice %436 {offsets = [0, 0], sizes = [8, 32], strides = [1, 1]} : vector<8x128xf32> to vector<8x32xf32>
    %441 = vector.extract_strided_slice %437 {offsets = [0, 64], sizes = [8, 32], strides = [1, 1]} : vector<8x128xf32> to vector<8x32xf32>
    %442 = arith.mulf %440, %441 : vector<8x32xf32>
    %443 = arith.addf %439, %442 : vector<8x32xf32>
    %444 = vector.extract_strided_slice %436 {offsets = [0, 96], sizes = [8, 32], strides = [1, 1]} : vector<8x128xf32> to vector<8x32xf32>
    %445 = math.tanh %443 : vector<8x32xf32>
    %446 = arith.mulf %444, %445 : vector<8x32xf32>
    %447 = tpu.concatenate %446, %422 in 1 : vector<8x32xf32>, vector<8x32xf32> -> vector<8x64xf32>
    %cst_97 = arith.constant dense<0.000000e+00> : vector<8x128xf32>
    %448 = tpu.matmul %447, %123, %cst_97 {dimension_numbers = #tpu.dot_dimension_numbers<[1], [0], [0], [1], [0, 0, 1, 1], [], []>} : vector<8x64xf32>, vector<64x128xf32>, vector<8x128xf32> -> vector<8x128xf32>
    %449 = vector.broadcast %124 : vector<1x128xf32> to vector<8x128xf32>
    %450 = arith.addf %448, %449 : vector<8x128xf32>
    %451 = arith.negf %450 : vector<8x128xf32>
    %452 = math.exp %451 : vector<8x128xf32>
    %cst_98 = arith.constant 1.000000e+00 : f32
    %453 = vector.broadcast %cst_98 : f32 to vector<8x128xf32>
    %454 = arith.addf %453, %452 : vector<8x128xf32>
    %455 = arith.divf %453, %454 : vector<8x128xf32>
    %456 = math.tanh %450 : vector<8x128xf32>
    %457 = vector.extract_strided_slice %455 {offsets = [0, 32], sizes = [8, 32], strides = [1, 1]} : vector<8x128xf32> to vector<8x32xf32>
    %458 = arith.mulf %457, %419 : vector<8x32xf32>
    %459 = vector.extract_strided_slice %455 {offsets = [0, 0], sizes = [8, 32], strides = [1, 1]} : vector<8x128xf32> to vector<8x32xf32>
    %460 = vector.extract_strided_slice %456 {offsets = [0, 64], sizes = [8, 32], strides = [1, 1]} : vector<8x128xf32> to vector<8x32xf32>
    %461 = arith.mulf %459, %460 : vector<8x32xf32>
    %462 = arith.addf %458, %461 : vector<8x32xf32>
    %463 = vector.extract_strided_slice %455 {offsets = [0, 96], sizes = [8, 32], strides = [1, 1]} : vector<8x128xf32> to vector<8x32xf32>
    %464 = math.tanh %462 : vector<8x32xf32>
    %465 = arith.mulf %463, %464 : vector<8x32xf32>
    %466 = arith.index_cast %c7_i32 : i32 to index
    %c0_99 = arith.constant 0 : index
    %c0_100 = arith.constant 0 : index
    %467 = vector.load %arg21[%466, %c0_99, %c0_100] : memref<9x8x32xf32, #tpu.memory_space<vmem>>, vector<1x8x32xf32>
    %468 = vector.shape_cast %467 : vector<1x8x32xf32> to vector<8x32xf32>
    %469 = vector.shape_cast %465 : vector<8x32xf32> to vector<1x8x32xf32>
    tpu.vector_store %arg21[%466, %c0_99, %c0_100], %469 {strides = array<i32>} : memref<9x8x32xf32, #tpu.memory_space<vmem>>, vector<1x8x32xf32>,
    %c8_i32 = arith.constant 8 : i32
    %470 = arith.index_cast %c8_i32 : i32 to index
    %c0_101 = arith.constant 0 : index
    %c0_102 = arith.constant 0 : index
    %471 = vector.load %arg20[%470, %c0_101, %c0_102] : memref<9x8x128xf32, #tpu.memory_space<vmem>>, vector<1x8x128xf32>
    %472 = vector.shape_cast %471 : vector<1x8x128xf32> to vector<8x128xf32>
    %cst_103 = arith.constant dense<0.000000e+00> : vector<8x128xf32>
    %473 = tpu.matmul %446, %122, %cst_103 {dimension_numbers = #tpu.dot_dimension_numbers<[1], [0], [0], [1], [0, 0, 1, 1], [], []>} : vector<8x32xf32>, vector<32x128xf32>, vector<8x128xf32> -> vector<8x128xf32>
    %474 = arith.addf %472, %473 : vector<8x128xf32>
    %475 = arith.negf %474 : vector<8x128xf32>
    %476 = math.exp %475 : vector<8x128xf32>
    %cst_104 = arith.constant 1.000000e+00 : f32
    %477 = vector.broadcast %cst_104 : f32 to vector<8x128xf32>
    %478 = arith.addf %477, %476 : vector<8x128xf32>
    %479 = arith.divf %477, %478 : vector<8x128xf32>
    %480 = math.tanh %474 : vector<8x128xf32>
    %481 = vector.extract_strided_slice %479 {offsets = [0, 32], sizes = [8, 32], strides = [1, 1]} : vector<8x128xf32> to vector<8x32xf32>
    %482 = arith.mulf %481, %443 : vector<8x32xf32>
    %483 = vector.extract_strided_slice %479 {offsets = [0, 0], sizes = [8, 32], strides = [1, 1]} : vector<8x128xf32> to vector<8x32xf32>
    %484 = vector.extract_strided_slice %480 {offsets = [0, 64], sizes = [8, 32], strides = [1, 1]} : vector<8x128xf32> to vector<8x32xf32>
    %485 = arith.mulf %483, %484 : vector<8x32xf32>
    %486 = arith.addf %482, %485 : vector<8x32xf32>
    %487 = vector.extract_strided_slice %479 {offsets = [0, 96], sizes = [8, 32], strides = [1, 1]} : vector<8x128xf32> to vector<8x32xf32>
    %488 = math.tanh %486 : vector<8x32xf32>
    %489 = arith.mulf %487, %488 : vector<8x32xf32>
    %490 = tpu.concatenate %489, %465 in 1 : vector<8x32xf32>, vector<8x32xf32> -> vector<8x64xf32>
    %cst_105 = arith.constant dense<0.000000e+00> : vector<8x128xf32>
    %491 = tpu.matmul %490, %123, %cst_105 {dimension_numbers = #tpu.dot_dimension_numbers<[1], [0], [0], [1], [0, 0, 1, 1], [], []>} : vector<8x64xf32>, vector<64x128xf32>, vector<8x128xf32> -> vector<8x128xf32>
    %492 = vector.broadcast %124 : vector<1x128xf32> to vector<8x128xf32>
    %493 = arith.addf %491, %492 : vector<8x128xf32>
    %494 = arith.negf %493 : vector<8x128xf32>
    %495 = math.exp %494 : vector<8x128xf32>
    %cst_106 = arith.constant 1.000000e+00 : f32
    %496 = vector.broadcast %cst_106 : f32 to vector<8x128xf32>
    %497 = arith.addf %496, %495 : vector<8x128xf32>
    %498 = arith.divf %496, %497 : vector<8x128xf32>
    %499 = math.tanh %493 : vector<8x128xf32>
    %500 = vector.extract_strided_slice %498 {offsets = [0, 32], sizes = [8, 32], strides = [1, 1]} : vector<8x128xf32> to vector<8x32xf32>
    %501 = arith.mulf %500, %462 : vector<8x32xf32>
    %502 = vector.extract_strided_slice %498 {offsets = [0, 0], sizes = [8, 32], strides = [1, 1]} : vector<8x128xf32> to vector<8x32xf32>
    %503 = vector.extract_strided_slice %499 {offsets = [0, 64], sizes = [8, 32], strides = [1, 1]} : vector<8x128xf32> to vector<8x32xf32>
    %504 = arith.mulf %502, %503 : vector<8x32xf32>
    %505 = arith.addf %501, %504 : vector<8x32xf32>
    %506 = vector.extract_strided_slice %498 {offsets = [0, 96], sizes = [8, 32], strides = [1, 1]} : vector<8x128xf32> to vector<8x32xf32>
    %507 = math.tanh %505 : vector<8x32xf32>
    %508 = arith.mulf %506, %507 : vector<8x32xf32>
    %509 = arith.index_cast %c8_i32 : i32 to index
    %c0_107 = arith.constant 0 : index
    %c0_108 = arith.constant 0 : index
    %510 = vector.load %arg21[%509, %c0_107, %c0_108] : memref<9x8x32xf32, #tpu.memory_space<vmem>>, vector<1x8x32xf32>
    %511 = vector.shape_cast %510 : vector<1x8x32xf32> to vector<8x32xf32>
    %512 = vector.shape_cast %508 : vector<8x32xf32> to vector<1x8x32xf32>
    tpu.vector_store %arg21[%509, %c0_107, %c0_108], %512 {strides = array<i32>} : memref<9x8x32xf32, #tpu.memory_space<vmem>>, vector<1x8x32xf32>,
    %c9_i32 = arith.constant 9 : i32
    %c0_109 = arith.constant 0 : index
    %c0_110 = arith.constant 0 : index
    %c0_111 = arith.constant 0 : index
    %513 = vector.load %arg21[%c0_109, %c0_110, %c0_111] : memref<9x8x32xf32, #tpu.memory_space<vmem>>, vector<1x8x32xf32>
    %514 = vector.shape_cast %513 : vector<1x8x32xf32> to vector<8x32xf32>
    %515 = vector.shape_cast %514 : vector<8x32xf32> to vector<8x1x32xf32>
    %c0_112 = arith.constant 0 : index
    %c0_113 = arith.constant 0 : index
    %c0_114 = arith.constant 0 : index
    %516 = vector.load %arg22[%c0_112, %c0_113, %c0_114] : memref<8x8x32xf32, #tpu.memory_space<vmem>>, vector<8x1x32xf32>
    tpu.vector_store %arg22[%c0_112, %c0_113, %c0_114], %515 {strides = array<i32>} : memref<8x8x32xf32, #tpu.memory_space<vmem>>, vector<8x1x32xf32>,
    %c1_115 = arith.constant 1 : index
    %c0_116 = arith.constant 0 : index
    %c0_117 = arith.constant 0 : index
    %517 = vector.load %arg21[%c1_115, %c0_116, %c0_117] : memref<9x8x32xf32, #tpu.memory_space<vmem>>, vector<1x8x32xf32>
    %518 = vector.shape_cast %517 : vector<1x8x32xf32> to vector<8x32xf32>
    %519 = vector.shape_cast %518 : vector<8x32xf32> to vector<8x1x32xf32>
    %c0_118 = arith.constant 0 : index
    %c1_119 = arith.constant 1 : index
    %c0_120 = arith.constant 0 : index
    %520 = vector.load %arg22[%c0_118, %c1_119, %c0_120] : memref<8x8x32xf32, #tpu.memory_space<vmem>>, vector<8x1x32xf32>
    tpu.vector_store %arg22[%c0_118, %c1_119, %c0_120], %519 {strides = array<i32>} : memref<8x8x32xf32, #tpu.memory_space<vmem>>, vector<8x1x32xf32>,
    %c2_121 = arith.constant 2 : index
    %c0_122 = arith.constant 0 : index
    %c0_123 = arith.constant 0 : index
    %521 = vector.load %arg21[%c2_121, %c0_122, %c0_123] : memref<9x8x32xf32, #tpu.memory_space<vmem>>, vector<1x8x32xf32>
    %522 = vector.shape_cast %521 : vector<1x8x32xf32> to vector<8x32xf32>
    %523 = vector.shape_cast %522 : vector<8x32xf32> to vector<8x1x32xf32>
    %c0_124 = arith.constant 0 : index
    %c2_125 = arith.constant 2 : index
    %c0_126 = arith.constant 0 : index
    %524 = vector.load %arg22[%c0_124, %c2_125, %c0_126] : memref<8x8x32xf32, #tpu.memory_space<vmem>>, vector<8x1x32xf32>
    tpu.vector_store %arg22[%c0_124, %c2_125, %c0_126], %523 {strides = array<i32>} : memref<8x8x32xf32, #tpu.memory_space<vmem>>, vector<8x1x32xf32>,
    %c3_127 = arith.constant 3 : index
    %c0_128 = arith.constant 0 : index
    %c0_129 = arith.constant 0 : index
    %525 = vector.load %arg21[%c3_127, %c0_128, %c0_129] : memref<9x8x32xf32, #tpu.memory_space<vmem>>, vector<1x8x32xf32>
    %526 = vector.shape_cast %525 : vector<1x8x32xf32> to vector<8x32xf32>
    %527 = vector.shape_cast %526 : vector<8x32xf32> to vector<8x1x32xf32>
    %c0_130 = arith.constant 0 : index
    %c3_131 = arith.constant 3 : index
    %c0_132 = arith.constant 0 : index
    %528 = vector.load %arg22[%c0_130, %c3_131, %c0_132] : memref<8x8x32xf32, #tpu.memory_space<vmem>>, vector<8x1x32xf32>
    tpu.vector_store %arg22[%c0_130, %c3_131, %c0_132], %527 {strides = array<i32>} : memref<8x8x32xf32, #tpu.memory_space<vmem>>, vector<8x1x32xf32>,
    %c4_133 = arith.constant 4 : index
    %c0_134 = arith.constant 0 : index
    %c0_135 = arith.constant 0 : index
    %529 = vector.load %arg21[%c4_133, %c0_134, %c0_135] : memref<9x8x32xf32, #tpu.memory_space<vmem>>, vector<1x8x32xf32>
    %530 = vector.shape_cast %529 : vector<1x8x32xf32> to vector<8x32xf32>
    %531 = vector.shape_cast %530 : vector<8x32xf32> to vector<8x1x32xf32>
    %c0_136 = arith.constant 0 : index
    %c4_137 = arith.constant 4 : index
    %c0_138 = arith.constant 0 : index
    %532 = vector.load %arg22[%c0_136, %c4_137, %c0_138] : memref<8x8x32xf32, #tpu.memory_space<vmem>>, vector<8x1x32xf32>
    tpu.vector_store %arg22[%c0_136, %c4_137, %c0_138], %531 {strides = array<i32>} : memref<8x8x32xf32, #tpu.memory_space<vmem>>, vector<8x1x32xf32>,
    %c5_139 = arith.constant 5 : index
    %c0_140 = arith.constant 0 : index
    %c0_141 = arith.constant 0 : index
    %533 = vector.load %arg21[%c5_139, %c0_140, %c0_141] : memref<9x8x32xf32, #tpu.memory_space<vmem>>, vector<1x8x32xf32>
    %534 = vector.shape_cast %533 : vector<1x8x32xf32> to vector<8x32xf32>
    %535 = vector.shape_cast %534 : vector<8x32xf32> to vector<8x1x32xf32>
    %c0_142 = arith.constant 0 : index
    %c5_143 = arith.constant 5 : index
    %c0_144 = arith.constant 0 : index
    %536 = vector.load %arg22[%c0_142, %c5_143, %c0_144] : memref<8x8x32xf32, #tpu.memory_space<vmem>>, vector<8x1x32xf32>
    tpu.vector_store %arg22[%c0_142, %c5_143, %c0_144], %535 {strides = array<i32>} : memref<8x8x32xf32, #tpu.memory_space<vmem>>, vector<8x1x32xf32>,
    %c6_145 = arith.constant 6 : index
    %c0_146 = arith.constant 0 : index
    %c0_147 = arith.constant 0 : index
    %537 = vector.load %arg21[%c6_145, %c0_146, %c0_147] : memref<9x8x32xf32, #tpu.memory_space<vmem>>, vector<1x8x32xf32>
    %538 = vector.shape_cast %537 : vector<1x8x32xf32> to vector<8x32xf32>
    %539 = vector.shape_cast %538 : vector<8x32xf32> to vector<8x1x32xf32>
    %c0_148 = arith.constant 0 : index
    %c6_149 = arith.constant 6 : index
    %c0_150 = arith.constant 0 : index
    %540 = vector.load %arg22[%c0_148, %c6_149, %c0_150] : memref<8x8x32xf32, #tpu.memory_space<vmem>>, vector<8x1x32xf32>
    tpu.vector_store %arg22[%c0_148, %c6_149, %c0_150], %539 {strides = array<i32>} : memref<8x8x32xf32, #tpu.memory_space<vmem>>, vector<8x1x32xf32>,
    %c7_151 = arith.constant 7 : index
    %c0_152 = arith.constant 0 : index
    %c0_153 = arith.constant 0 : index
    %541 = vector.load %arg21[%c7_151, %c0_152, %c0_153] : memref<9x8x32xf32, #tpu.memory_space<vmem>>, vector<1x8x32xf32>
    %542 = vector.shape_cast %541 : vector<1x8x32xf32> to vector<8x32xf32>
    %543 = vector.shape_cast %542 : vector<8x32xf32> to vector<8x1x32xf32>
    %c0_154 = arith.constant 0 : index
    %c7_155 = arith.constant 7 : index
    %c0_156 = arith.constant 0 : index
    %544 = vector.load %arg22[%c0_154, %c7_155, %c0_156] : memref<8x8x32xf32, #tpu.memory_space<vmem>>, vector<8x1x32xf32>
    tpu.vector_store %arg22[%c0_154, %c7_155, %c0_156], %543 {strides = array<i32>} : memref<8x8x32xf32, #tpu.memory_space<vmem>>, vector<8x1x32xf32>,
    %545 = tpu.concatenate %489, %508 in 1 : vector<8x32xf32>, vector<8x32xf32> -> vector<8x64xf32>
    %c0_157 = arith.constant 0 : index
    %c0_158 = arith.constant 0 : index
    %546 = vector.load %arg9[%c0_157, %c0_158] : memref<64x128xf32, #tpu.memory_space<vmem>>, vector<64x128xf32>
    %cst_159 = arith.constant dense<0.000000e+00> : vector<8x128xf32>
    %547 = tpu.matmul %545, %546, %cst_159 {dimension_numbers = #tpu.dot_dimension_numbers<[1], [0], [0], [1], [0, 0, 1, 1], [], []>} : vector<8x64xf32>, vector<64x128xf32>, vector<8x128xf32> -> vector<8x128xf32>
    %c0_160 = arith.constant 0 : index
    %c0_161 = arith.constant 0 : index
    %548 = vector.load %arg12[%c0_160, %c0_161] : memref<1x128xf32, #tpu.memory_space<vmem>>, vector<1x128xf32>
    %549 = vector.broadcast %548 : vector<1x128xf32> to vector<8x128xf32>
    %550 = arith.addf %547, %549 : vector<8x128xf32>
    %c0_162 = arith.constant 0 : index
    %c0_163 = arith.constant 0 : index
    %c0_164 = arith.constant 0 : index
    %551 = vector.load %arg22[%c0_162, %c0_163, %c0_164] : memref<8x8x32xf32, #tpu.memory_space<vmem>>, vector<8x8x32xf32>
    %552 = vector.shape_cast %551 : vector<8x8x32xf32> to vector<64x32xf32>
    %c0_165 = arith.constant 0 : index
    %c0_166 = arith.constant 0 : index
    %553 = vector.load %arg8[%c0_165, %c0_166] : memref<32x128xf32, #tpu.memory_space<vmem>>, vector<32x128xf32>
    %cst_167 = arith.constant dense<0.000000e+00> : vector<64x128xf32>
    %554 = tpu.matmul %552, %553, %cst_167 {dimension_numbers = #tpu.dot_dimension_numbers<[1], [0], [0], [1], [0, 0, 1, 1], [], []>} : vector<64x32xf32>, vector<32x128xf32>, vector<64x128xf32> -> vector<64x128xf32>
    %555 = vector.shape_cast %554 : vector<64x128xf32> to vector<8x8x128xf32>
    %556 = vector.shape_cast %550 : vector<8x128xf32> to vector<8x1x128xf32>
    %557 = vector.broadcast %556 : vector<8x1x128xf32> to vector<8x8x128xf32>
    %558 = arith.addf %555, %557 : vector<8x8x128xf32>
    %c0_168 = arith.constant 0 : index
    %c0_169 = arith.constant 0 : index
    %c0_170 = arith.constant 0 : index
    %559 = vector.load %arg23[%c0_168, %c0_169, %c0_170] : memref<8x8x128xf32, #tpu.memory_space<vmem>>, vector<8x8x128xf32>
    tpu.vector_store %arg23[%c0_168, %c0_169, %c0_170], %558 {strides = array<i32>} : memref<8x8x128xf32, #tpu.memory_space<vmem>>, vector<8x8x128xf32>,
    %c0_171 = arith.constant 0 : index
    %c0_172 = arith.constant 0 : index
    %560 = vector.load %arg10[%c0_171, %c0_172] : memref<1x128xf32, #tpu.memory_space<vmem>>, vector<1x128xf32>
    %561 = vector.shape_cast %560 : vector<1x128xf32> to vector<1x1x128xf32>
    %c0_173 = arith.constant 0 : index
    %c0_174 = arith.constant 0 : index
    %562 = vector.load %arg11[%c0_173, %c0_174] : memref<1x128xf32, #tpu.memory_space<vmem>>, vector<1x128xf32>
    %563 = vector.shape_cast %562 : vector<1x128xf32> to vector<1x1x128xf32>
    %c0_175 = arith.constant 0 : index
    %c0_176 = arith.constant 0 : index
    %564 = vector.load %arg13[%c0_175, %c0_176] : memref<1x128xf32, #tpu.memory_space<vmem>>, vector<1x128xf32>
    %565 = vector.shape_cast %564 : vector<1x128xf32> to vector<1x1x128xf32>
    %c0_177 = arith.constant 0 : index
    %c0_178 = arith.constant 0 : index
    %566 = vector.load %arg19[%c0_177, %c0_178] : memref<2x12xf32, #tpu.memory_space<vmem>>, vector<2x8xf32>
    %c0_179 = arith.constant 0 : index
    %c0_180 = arith.constant 0 : index
    %c0_181 = arith.constant 0 : index
    %567 = vector.load %arg23[%c0_179, %c0_180, %c0_181] : memref<8x8x128xf32, #tpu.memory_space<vmem>>, vector<2x8x128xf32>
    %568 = vector.shape_cast %566 : vector<2x8xf32> to vector<2x8x1xf32>
    %569 = vector.broadcast %568 : vector<2x8x1xf32> to vector<2x8x128xf32>
    %570 = vector.broadcast %561 : vector<1x1x128xf32> to vector<2x8x128xf32>
    %571 = arith.mulf %569, %570 : vector<2x8x128xf32>
    %572 = arith.addf %567, %571 : vector<2x8x128xf32>
    %573 = vector.broadcast %563 : vector<1x1x128xf32> to vector<2x8x128xf32>
    %574 = arith.addf %572, %573 : vector<2x8x128xf32>
    %575 = math.tanh %574 : vector<2x8x128xf32>
    %576 = vector.broadcast %565 : vector<1x1x128xf32> to vector<2x8x128xf32>
    %577 = arith.mulf %575, %576 : vector<2x8x128xf32>
    %cst_182 = arith.constant dense<0.000000e+00> : vector<2x8xf32>
    %578 = vector.multi_reduction <add>, %577, %cst_182 [2] : vector<2x8x128xf32> to vector<2x8xf32>
    %c0_183 = arith.constant 0 : index
    %c0_184 = arith.constant 0 : index
    %579 = vector.load %arg14[%c0_183, %c0_184] : memref<1x1xf32, #tpu.memory_space<vmem>>, vector<1x1xf32>
    %580 = vector.broadcast %579 : vector<1x1xf32> to vector<2x8xf32>
    %581 = arith.addf %578, %580 : vector<2x8xf32>
    %cst_185 = arith.constant dense<0xFF800000> : vector<2xf32>
    %582 = vector.multi_reduction <maximumf>, %581, %cst_185 [1] : vector<2x8xf32> to vector<2xf32>
    %583 = vector.shape_cast %582 : vector<2xf32> to vector<2x1xf32>
    %584 = vector.broadcast %583 : vector<2x1xf32> to vector<2x8xf32>
    %585 = arith.subf %581, %584 : vector<2x8xf32>
    %586 = math.exp %585 : vector<2x8xf32>
    %cst_186 = arith.constant dense<0.000000e+00> : vector<2xf32>
    %587 = vector.multi_reduction <add>, %586, %cst_186 [1] : vector<2x8xf32> to vector<2xf32>
    %588 = vector.shape_cast %587 : vector<2xf32> to vector<2x1xf32>
    %589 = tpu.reciprocal %588 {approx = true} : vector<2x1xf32> -> vector<2x1xf32>
    %590 = vector.broadcast %589 : vector<2x1xf32> to vector<2x8xf32>
    %591 = arith.mulf %586, %590 : vector<2x8xf32>
    %592 = vector.shape_cast %591 : vector<2x8xf32> to vector<2x8x1xf32>
    %c0_187 = arith.constant 0 : index
    %c0_188 = arith.constant 0 : index
    %c0_189 = arith.constant 0 : index
    %593 = vector.load %arg22[%c0_187, %c0_188, %c0_189] : memref<8x8x32xf32, #tpu.memory_space<vmem>>, vector<2x8x32xf32>
    %594 = vector.broadcast %592 : vector<2x8x1xf32> to vector<2x8x32xf32>
    %595 = arith.mulf %594, %593 : vector<2x8x32xf32>
    %cst_190 = arith.constant dense<0.000000e+00> : vector<2x32xf32>
    %596 = vector.multi_reduction <add>, %595, %cst_190 [1] : vector<2x8x32xf32> to vector<2x32xf32>
    %c0_191 = arith.constant 0 : index
    %c0_192 = arith.constant 0 : index
    %597 = vector.load %arg15[%c0_191, %c0_192] : memref<32x32xf32, #tpu.memory_space<vmem>>, vector<32x32xf32>
    %cst_193 = arith.constant dense<0.000000e+00> : vector<2x32xf32>
    %598 = tpu.matmul %596, %597, %cst_193 {dimension_numbers = #tpu.dot_dimension_numbers<[1], [0], [0], [1], [0, 0, 1, 1], [], []>} : vector<2x32xf32>, vector<32x32xf32>, vector<2x32xf32> -> vector<2x32xf32>
    %c0_194 = arith.constant 0 : index
    %c0_195 = arith.constant 0 : index
    %599 = vector.load %arg16[%c0_194, %c0_195] : memref<1x32xf32, #tpu.memory_space<vmem>>, vector<1x32xf32>
    %600 = vector.broadcast %599 : vector<1x32xf32> to vector<2x32xf32>
    %601 = arith.addf %598, %600 : vector<2x32xf32>
    %602 = math.tanh %601 : vector<2x32xf32>
    %c0_196 = arith.constant 0 : index
    %c0_197 = arith.constant 0 : index
    %603 = vector.load %arg17[%c0_196, %c0_197] : memref<1x32xf32, #tpu.memory_space<vmem>>, vector<1x32xf32>
    %604 = vector.broadcast %603 : vector<1x32xf32> to vector<2x32xf32>
    %605 = arith.mulf %602, %604 : vector<2x32xf32>
    %cst_198 = arith.constant dense<0.000000e+00> : vector<2xf32>
    %606 = vector.multi_reduction <add>, %605, %cst_198 [1] : vector<2x32xf32> to vector<2xf32>
    %607 = vector.shape_cast %606 : vector<2xf32> to vector<2x1xf32>
    %c0_199 = arith.constant 0 : index
    %c0_200 = arith.constant 0 : index
    %608 = vector.load %arg18[%c0_199, %c0_200] : memref<1x1xf32, #tpu.memory_space<vmem>>, vector<1x1xf32>
    %609 = vector.broadcast %608 : vector<1x1xf32> to vector<2x1xf32>
    %610 = arith.addf %607, %609 : vector<2x1xf32>
    %c0_201 = arith.constant 0 : index
    %c8_202 = arith.constant 8 : index
    %611 = vector.load %arg19[%c0_201, %c8_202] : memref<2x12xf32, #tpu.memory_space<vmem>>, vector<2x1xf32>
    tpu.vector_store %arg19[%c0_201, %c8_202], %610 {strides = array<i32>} : memref<2x12xf32, #tpu.memory_space<vmem>>, vector<2x1xf32>,
    %c0_203 = arith.constant 0 : index
    %c1_204 = arith.constant 1 : index
    %612 = vector.load %arg19[%c0_203, %c1_204] : memref<2x12xf32, #tpu.memory_space<vmem>>, vector<2x8xf32>
    %c2_205 = arith.constant 2 : index
    %c0_206 = arith.constant 0 : index
    %c0_207 = arith.constant 0 : index
    %613 = vector.load %arg23[%c2_205, %c0_206, %c0_207] : memref<8x8x128xf32, #tpu.memory_space<vmem>>, vector<2x8x128xf32>
    %614 = vector.shape_cast %612 : vector<2x8xf32> to vector<2x8x1xf32>
    %615 = vector.broadcast %614 : vector<2x8x1xf32> to vector<2x8x128xf32>
    %616 = vector.broadcast %561 : vector<1x1x128xf32> to vector<2x8x128xf32>
    %617 = arith.mulf %615, %616 : vector<2x8x128xf32>
    %618 = arith.addf %613, %617 : vector<2x8x128xf32>
    %619 = vector.broadcast %563 : vector<1x1x128xf32> to vector<2x8x128xf32>
    %620 = arith.addf %618, %619 : vector<2x8x128xf32>
    %621 = math.tanh %620 : vector<2x8x128xf32>
    %622 = vector.broadcast %565 : vector<1x1x128xf32> to vector<2x8x128xf32>
    %623 = arith.mulf %621, %622 : vector<2x8x128xf32>
    %cst_208 = arith.constant dense<0.000000e+00> : vector<2x8xf32>
    %624 = vector.multi_reduction <add>, %623, %cst_208 [2] : vector<2x8x128xf32> to vector<2x8xf32>
    %c0_209 = arith.constant 0 : index
    %c0_210 = arith.constant 0 : index
    %625 = vector.load %arg14[%c0_209, %c0_210] : memref<1x1xf32, #tpu.memory_space<vmem>>, vector<1x1xf32>
    %626 = vector.broadcast %625 : vector<1x1xf32> to vector<2x8xf32>
    %627 = arith.addf %624, %626 : vector<2x8xf32>
    %cst_211 = arith.constant dense<0xFF800000> : vector<2xf32>
    %628 = vector.multi_reduction <maximumf>, %627, %cst_211 [1] : vector<2x8xf32> to vector<2xf32>
    %629 = vector.shape_cast %628 : vector<2xf32> to vector<2x1xf32>
    %630 = vector.broadcast %629 : vector<2x1xf32> to vector<2x8xf32>
    %631 = arith.subf %627, %630 : vector<2x8xf32>
    %632 = math.exp %631 : vector<2x8xf32>
    %cst_212 = arith.constant dense<0.000000e+00> : vector<2xf32>
    %633 = vector.multi_reduction <add>, %632, %cst_212 [1] : vector<2x8xf32> to vector<2xf32>
    %634 = vector.shape_cast %633 : vector<2xf32> to vector<2x1xf32>
    %635 = tpu.reciprocal %634 {approx = true} : vector<2x1xf32> -> vector<2x1xf32>
    %636 = vector.broadcast %635 : vector<2x1xf32> to vector<2x8xf32>
    %637 = arith.mulf %632, %636 : vector<2x8xf32>
    %638 = vector.shape_cast %637 : vector<2x8xf32> to vector<2x8x1xf32>
    %c2_213 = arith.constant 2 : index
    %c0_214 = arith.constant 0 : index
    %c0_215 = arith.constant 0 : index
    %639 = vector.load %arg22[%c2_213, %c0_214, %c0_215] : memref<8x8x32xf32, #tpu.memory_space<vmem>>, vector<2x8x32xf32>
    %640 = vector.broadcast %638 : vector<2x8x1xf32> to vector<2x8x32xf32>
    %641 = arith.mulf %640, %639 : vector<2x8x32xf32>
    %cst_216 = arith.constant dense<0.000000e+00> : vector<2x32xf32>
    %642 = vector.multi_reduction <add>, %641, %cst_216 [1] : vector<2x8x32xf32> to vector<2x32xf32>
    %c0_217 = arith.constant 0 : index
    %c0_218 = arith.constant 0 : index
    %643 = vector.load %arg15[%c0_217, %c0_218] : memref<32x32xf32, #tpu.memory_space<vmem>>, vector<32x32xf32>
    %cst_219 = arith.constant dense<0.000000e+00> : vector<2x32xf32>
    %644 = tpu.matmul %642, %643, %cst_219 {dimension_numbers = #tpu.dot_dimension_numbers<[1], [0], [0], [1], [0, 0, 1, 1], [], []>} : vector<2x32xf32>, vector<32x32xf32>, vector<2x32xf32> -> vector<2x32xf32>
    %c0_220 = arith.constant 0 : index
    %c0_221 = arith.constant 0 : index
    %645 = vector.load %arg16[%c0_220, %c0_221] : memref<1x32xf32, #tpu.memory_space<vmem>>, vector<1x32xf32>
    %646 = vector.broadcast %645 : vector<1x32xf32> to vector<2x32xf32>
    %647 = arith.addf %644, %646 : vector<2x32xf32>
    %648 = math.tanh %647 : vector<2x32xf32>
    %c0_222 = arith.constant 0 : index
    %c0_223 = arith.constant 0 : index
    %649 = vector.load %arg17[%c0_222, %c0_223] : memref<1x32xf32, #tpu.memory_space<vmem>>, vector<1x32xf32>
    %650 = vector.broadcast %649 : vector<1x32xf32> to vector<2x32xf32>
    %651 = arith.mulf %648, %650 : vector<2x32xf32>
    %cst_224 = arith.constant dense<0.000000e+00> : vector<2xf32>
    %652 = vector.multi_reduction <add>, %651, %cst_224 [1] : vector<2x32xf32> to vector<2xf32>
    %653 = vector.shape_cast %652 : vector<2xf32> to vector<2x1xf32>
    %c0_225 = arith.constant 0 : index
    %c0_226 = arith.constant 0 : index
    %654 = vector.load %arg18[%c0_225, %c0_226] : memref<1x1xf32, #tpu.memory_space<vmem>>, vector<1x1xf32>
    %655 = vector.broadcast %654 : vector<1x1xf32> to vector<2x1xf32>
    %656 = arith.addf %653, %655 : vector<2x1xf32>
    %c0_227 = arith.constant 0 : index
    %c9 = arith.constant 9 : index
    %657 = vector.load %arg19[%c0_227, %c9] : memref<2x12xf32, #tpu.memory_space<vmem>>, vector<2x1xf32>
    tpu.vector_store %arg19[%c0_227, %c9], %656 {strides = array<i32>} : memref<2x12xf32, #tpu.memory_space<vmem>>, vector<2x1xf32>,
    %c0_228 = arith.constant 0 : index
    %c2_229 = arith.constant 2 : index
    %658 = vector.load %arg19[%c0_228, %c2_229] : memref<2x12xf32, #tpu.memory_space<vmem>>, vector<2x8xf32>
    %c4_230 = arith.constant 4 : index
    %c0_231 = arith.constant 0 : index
    %c0_232 = arith.constant 0 : index
    %659 = vector.load %arg23[%c4_230, %c0_231, %c0_232] : memref<8x8x128xf32, #tpu.memory_space<vmem>>, vector<2x8x128xf32>
    %660 = vector.shape_cast %658 : vector<2x8xf32> to vector<2x8x1xf32>
    %661 = vector.broadcast %660 : vector<2x8x1xf32> to vector<2x8x128xf32>
    %662 = vector.broadcast %561 : vector<1x1x128xf32> to vector<2x8x128xf32>
    %663 = arith.mulf %661, %662 : vector<2x8x128xf32>
    %664 = arith.addf %659, %663 : vector<2x8x128xf32>
    %665 = vector.broadcast %563 : vector<1x1x128xf32> to vector<2x8x128xf32>
    %666 = arith.addf %664, %665 : vector<2x8x128xf32>
    %667 = math.tanh %666 : vector<2x8x128xf32>
    %668 = vector.broadcast %565 : vector<1x1x128xf32> to vector<2x8x128xf32>
    %669 = arith.mulf %667, %668 : vector<2x8x128xf32>
    %cst_233 = arith.constant dense<0.000000e+00> : vector<2x8xf32>
    %670 = vector.multi_reduction <add>, %669, %cst_233 [2] : vector<2x8x128xf32> to vector<2x8xf32>
    %c0_234 = arith.constant 0 : index
    %c0_235 = arith.constant 0 : index
    %671 = vector.load %arg14[%c0_234, %c0_235] : memref<1x1xf32, #tpu.memory_space<vmem>>, vector<1x1xf32>
    %672 = vector.broadcast %671 : vector<1x1xf32> to vector<2x8xf32>
    %673 = arith.addf %670, %672 : vector<2x8xf32>
    %cst_236 = arith.constant dense<0xFF800000> : vector<2xf32>
    %674 = vector.multi_reduction <maximumf>, %673, %cst_236 [1] : vector<2x8xf32> to vector<2xf32>
    %675 = vector.shape_cast %674 : vector<2xf32> to vector<2x1xf32>
    %676 = vector.broadcast %675 : vector<2x1xf32> to vector<2x8xf32>
    %677 = arith.subf %673, %676 : vector<2x8xf32>
    %678 = math.exp %677 : vector<2x8xf32>
    %cst_237 = arith.constant dense<0.000000e+00> : vector<2xf32>
    %679 = vector.multi_reduction <add>, %678, %cst_237 [1] : vector<2x8xf32> to vector<2xf32>
    %680 = vector.shape_cast %679 : vector<2xf32> to vector<2x1xf32>
    %681 = tpu.reciprocal %680 {approx = true} : vector<2x1xf32> -> vector<2x1xf32>
    %682 = vector.broadcast %681 : vector<2x1xf32> to vector<2x8xf32>
    %683 = arith.mulf %678, %682 : vector<2x8xf32>
    %684 = vector.shape_cast %683 : vector<2x8xf32> to vector<2x8x1xf32>
    %c4_238 = arith.constant 4 : index
    %c0_239 = arith.constant 0 : index
    %c0_240 = arith.constant 0 : index
    %685 = vector.load %arg22[%c4_238, %c0_239, %c0_240] : memref<8x8x32xf32, #tpu.memory_space<vmem>>, vector<2x8x32xf32>
    %686 = vector.broadcast %684 : vector<2x8x1xf32> to vector<2x8x32xf32>
    %687 = arith.mulf %686, %685 : vector<2x8x32xf32>
    %cst_241 = arith.constant dense<0.000000e+00> : vector<2x32xf32>
    %688 = vector.multi_reduction <add>, %687, %cst_241 [1] : vector<2x8x32xf32> to vector<2x32xf32>
    %c0_242 = arith.constant 0 : index
    %c0_243 = arith.constant 0 : index
    %689 = vector.load %arg15[%c0_242, %c0_243] : memref<32x32xf32, #tpu.memory_space<vmem>>, vector<32x32xf32>
    %cst_244 = arith.constant dense<0.000000e+00> : vector<2x32xf32>
    %690 = tpu.matmul %688, %689, %cst_244 {dimension_numbers = #tpu.dot_dimension_numbers<[1], [0], [0], [1], [0, 0, 1, 1], [], []>} : vector<2x32xf32>, vector<32x32xf32>, vector<2x32xf32> -> vector<2x32xf32>
    %c0_245 = arith.constant 0 : index
    %c0_246 = arith.constant 0 : index
    %691 = vector.load %arg16[%c0_245, %c0_246] : memref<1x32xf32, #tpu.memory_space<vmem>>, vector<1x32xf32>
    %692 = vector.broadcast %691 : vector<1x32xf32> to vector<2x32xf32>
    %693 = arith.addf %690, %692 : vector<2x32xf32>
    %694 = math.tanh %693 : vector<2x32xf32>
    %c0_247 = arith.constant 0 : index
    %c0_248 = arith.constant 0 : index
    %695 = vector.load %arg17[%c0_247, %c0_248] : memref<1x32xf32, #tpu.memory_space<vmem>>, vector<1x32xf32>
    %696 = vector.broadcast %695 : vector<1x32xf32> to vector<2x32xf32>
    %697 = arith.mulf %694, %696 : vector<2x32xf32>
    %cst_249 = arith.constant dense<0.000000e+00> : vector<2xf32>
    %698 = vector.multi_reduction <add>, %697, %cst_249 [1] : vector<2x32xf32> to vector<2xf32>
    %699 = vector.shape_cast %698 : vector<2xf32> to vector<2x1xf32>
    %c0_250 = arith.constant 0 : index
    %c0_251 = arith.constant 0 : index
    %700 = vector.load %arg18[%c0_250, %c0_251] : memref<1x1xf32, #tpu.memory_space<vmem>>, vector<1x1xf32>
    %701 = vector.broadcast %700 : vector<1x1xf32> to vector<2x1xf32>
    %702 = arith.addf %699, %701 : vector<2x1xf32>
    %c0_252 = arith.constant 0 : index
    %c10 = arith.constant 10 : index
    %703 = vector.load %arg19[%c0_252, %c10] : memref<2x12xf32, #tpu.memory_space<vmem>>, vector<2x1xf32>
    tpu.vector_store %arg19[%c0_252, %c10], %702 {strides = array<i32>} : memref<2x12xf32, #tpu.memory_space<vmem>>, vector<2x1xf32>,
    %c0_253 = arith.constant 0 : index
    %c3_254 = arith.constant 3 : index
    %704 = vector.load %arg19[%c0_253, %c3_254] : memref<2x12xf32, #tpu.memory_space<vmem>>, vector<2x8xf32>
    %c6_255 = arith.constant 6 : index
    %c0_256 = arith.constant 0 : index
    %c0_257 = arith.constant 0 : index
    %705 = vector.load %arg23[%c6_255, %c0_256, %c0_257] : memref<8x8x128xf32, #tpu.memory_space<vmem>>, vector<2x8x128xf32>
    %706 = vector.shape_cast %704 : vector<2x8xf32> to vector<2x8x1xf32>
    %707 = vector.broadcast %706 : vector<2x8x1xf32> to vector<2x8x128xf32>
    %708 = vector.broadcast %561 : vector<1x1x128xf32> to vector<2x8x128xf32>
    %709 = arith.mulf %707, %708 : vector<2x8x128xf32>
    %710 = arith.addf %705, %709 : vector<2x8x128xf32>
    %711 = vector.broadcast %563 : vector<1x1x128xf32> to vector<2x8x128xf32>
    %712 = arith.addf %710, %711 : vector<2x8x128xf32>
    %713 = math.tanh %712 : vector<2x8x128xf32>
    %714 = vector.broadcast %565 : vector<1x1x128xf32> to vector<2x8x128xf32>
    %715 = arith.mulf %713, %714 : vector<2x8x128xf32>
    %cst_258 = arith.constant dense<0.000000e+00> : vector<2x8xf32>
    %716 = vector.multi_reduction <add>, %715, %cst_258 [2] : vector<2x8x128xf32> to vector<2x8xf32>
    %c0_259 = arith.constant 0 : index
    %c0_260 = arith.constant 0 : index
    %717 = vector.load %arg14[%c0_259, %c0_260] : memref<1x1xf32, #tpu.memory_space<vmem>>, vector<1x1xf32>
    %718 = vector.broadcast %717 : vector<1x1xf32> to vector<2x8xf32>
    %719 = arith.addf %716, %718 : vector<2x8xf32>
    %cst_261 = arith.constant dense<0xFF800000> : vector<2xf32>
    %720 = vector.multi_reduction <maximumf>, %719, %cst_261 [1] : vector<2x8xf32> to vector<2xf32>
    %721 = vector.shape_cast %720 : vector<2xf32> to vector<2x1xf32>
    %722 = vector.broadcast %721 : vector<2x1xf32> to vector<2x8xf32>
    %723 = arith.subf %719, %722 : vector<2x8xf32>
    %724 = math.exp %723 : vector<2x8xf32>
    %cst_262 = arith.constant dense<0.000000e+00> : vector<2xf32>
    %725 = vector.multi_reduction <add>, %724, %cst_262 [1] : vector<2x8xf32> to vector<2xf32>
    %726 = vector.shape_cast %725 : vector<2xf32> to vector<2x1xf32>
    %727 = tpu.reciprocal %726 {approx = true} : vector<2x1xf32> -> vector<2x1xf32>
    %728 = vector.broadcast %727 : vector<2x1xf32> to vector<2x8xf32>
    %729 = arith.mulf %724, %728 : vector<2x8xf32>
    %730 = vector.shape_cast %729 : vector<2x8xf32> to vector<2x8x1xf32>
    %c6_263 = arith.constant 6 : index
    %c0_264 = arith.constant 0 : index
    %c0_265 = arith.constant 0 : index
    %731 = vector.load %arg22[%c6_263, %c0_264, %c0_265] : memref<8x8x32xf32, #tpu.memory_space<vmem>>, vector<2x8x32xf32>
    %732 = vector.broadcast %730 : vector<2x8x1xf32> to vector<2x8x32xf32>
    %733 = arith.mulf %732, %731 : vector<2x8x32xf32>
    %cst_266 = arith.constant dense<0.000000e+00> : vector<2x32xf32>
    %734 = vector.multi_reduction <add>, %733, %cst_266 [1] : vector<2x8x32xf32> to vector<2x32xf32>
    %c0_267 = arith.constant 0 : index
    %c0_268 = arith.constant 0 : index
    %735 = vector.load %arg15[%c0_267, %c0_268] : memref<32x32xf32, #tpu.memory_space<vmem>>, vector<32x32xf32>
    %cst_269 = arith.constant dense<0.000000e+00> : vector<2x32xf32>
    %736 = tpu.matmul %734, %735, %cst_269 {dimension_numbers = #tpu.dot_dimension_numbers<[1], [0], [0], [1], [0, 0, 1, 1], [], []>} : vector<2x32xf32>, vector<32x32xf32>, vector<2x32xf32> -> vector<2x32xf32>
    %c0_270 = arith.constant 0 : index
    %c0_271 = arith.constant 0 : index
    %737 = vector.load %arg16[%c0_270, %c0_271] : memref<1x32xf32, #tpu.memory_space<vmem>>, vector<1x32xf32>
    %738 = vector.broadcast %737 : vector<1x32xf32> to vector<2x32xf32>
    %739 = arith.addf %736, %738 : vector<2x32xf32>
    %740 = math.tanh %739 : vector<2x32xf32>
    %c0_272 = arith.constant 0 : index
    %c0_273 = arith.constant 0 : index
    %741 = vector.load %arg17[%c0_272, %c0_273] : memref<1x32xf32, #tpu.memory_space<vmem>>, vector<1x32xf32>
    %742 = vector.broadcast %741 : vector<1x32xf32> to vector<2x32xf32>
    %743 = arith.mulf %740, %742 : vector<2x32xf32>
    %cst_274 = arith.constant dense<0.000000e+00> : vector<2xf32>
    %744 = vector.multi_reduction <add>, %743, %cst_274 [1] : vector<2x32xf32> to vector<2xf32>
    %745 = vector.shape_cast %744 : vector<2xf32> to vector<2x1xf32>
    %c0_275 = arith.constant 0 : index
    %c0_276 = arith.constant 0 : index
    %746 = vector.load %arg18[%c0_275, %c0_276] : memref<1x1xf32, #tpu.memory_space<vmem>>, vector<1x1xf32>
    %747 = vector.broadcast %746 : vector<1x1xf32> to vector<2x1xf32>
    %748 = arith.addf %745, %747 : vector<2x1xf32>
    %c0_277 = arith.constant 0 : index
    %c11 = arith.constant 11 : index
    %749 = vector.load %arg19[%c0_277, %c11] : memref<2x12xf32, #tpu.memory_space<vmem>>, vector<2x1xf32>
    tpu.vector_store %arg19[%c0_277, %c11], %748 {strides = array<i32>} : memref<2x12xf32, #tpu.memory_space<vmem>>, vector<2x1xf32>,
    return
  }
  func.func @transform_0(%arg0: i32) -> (i32, i32, i32) {
    %c0_i32 = arith.constant 0 : i32
    %c0_i32_0 = arith.constant 0 : i32
    %c0_i32_1 = arith.constant 0 : i32
    return %arg0, %c0_i32, %c0_i32_0 : i32, i32, i32
  }
  func.func @transform_1(%arg0: i32) -> (i32, i32) {
    %c0_i32 = arith.constant 0 : i32
    %c0_i32_0 = arith.constant 0 : i32
    return %arg0, %c0_i32 : i32, i32
  }
  func.func @transform_2(%arg0: i32) -> (i32, i32) {
    %c0_i32 = arith.constant 0 : i32
    %c0_i32_0 = arith.constant 0 : i32
    %c0_i32_1 = arith.constant 0 : i32
    return %c0_i32, %c0_i32_0 : i32, i32
  }
  func.func @transform_3(%arg0: i32) -> (i32, i32) {
    %c0_i32 = arith.constant 0 : i32
    %c0_i32_0 = arith.constant 0 : i32
    %c0_i32_1 = arith.constant 0 : i32
    return %c0_i32, %c0_i32_0 : i32, i32
  }
  func.func @transform_4(%arg0: i32) -> (i32, i32) {
    %c0_i32 = arith.constant 0 : i32
    %c0_i32_0 = arith.constant 0 : i32
    %c0_i32_1 = arith.constant 0 : i32
    return %c0_i32, %c0_i32_0 : i32, i32
  }
  func.func @transform_5(%arg0: i32) -> (i32, i32) {
    %c0_i32 = arith.constant 0 : i32
    %c0_i32_0 = arith.constant 0 : i32
    %c0_i32_1 = arith.constant 0 : i32
    return %c0_i32, %c0_i32_0 : i32, i32
  }
  func.func @transform_6(%arg0: i32) -> (i32, i32) {
    %c0_i32 = arith.constant 0 : i32
    %c0_i32_0 = arith.constant 0 : i32
    %c0_i32_1 = arith.constant 0 : i32
    return %c0_i32, %c0_i32_0 : i32, i32
  }
  func.func @transform_7(%arg0: i32) -> (i32, i32) {
    %c0_i32 = arith.constant 0 : i32
    %c0_i32_0 = arith.constant 0 : i32
    %c0_i32_1 = arith.constant 0 : i32
    return %c0_i32, %c0_i32_0 : i32, i32
  }
  func.func @transform_8(%arg0: i32) -> (i32, i32) {
    %c0_i32 = arith.constant 0 : i32
    %c0_i32_0 = arith.constant 0 : i32
    %c0_i32_1 = arith.constant 0 : i32
    return %c0_i32, %c0_i32_0 : i32, i32
  }
  func.func @transform_9(%arg0: i32) -> (i32, i32) {
    %c0_i32 = arith.constant 0 : i32
    %c0_i32_0 = arith.constant 0 : i32
    %c0_i32_1 = arith.constant 0 : i32
    return %c0_i32, %c0_i32_0 : i32, i32
  }
  func.func @transform_10(%arg0: i32) -> (i32, i32) {
    %c0_i32 = arith.constant 0 : i32
    %c0_i32_0 = arith.constant 0 : i32
    %c0_i32_1 = arith.constant 0 : i32
    return %c0_i32, %c0_i32_0 : i32, i32
  }
  func.func @transform_11(%arg0: i32) -> (i32, i32) {
    %c0_i32 = arith.constant 0 : i32
    %c0_i32_0 = arith.constant 0 : i32
    %c0_i32_1 = arith.constant 0 : i32
    return %c0_i32, %c0_i32_0 : i32, i32
  }
  func.func @transform_12(%arg0: i32) -> (i32, i32) {
    %c0_i32 = arith.constant 0 : i32
    %c0_i32_0 = arith.constant 0 : i32
    %c0_i32_1 = arith.constant 0 : i32
    return %c0_i32, %c0_i32_0 : i32, i32
  }
  func.func @transform_13(%arg0: i32) -> (i32, i32) {
    %c0_i32 = arith.constant 0 : i32
    %c0_i32_0 = arith.constant 0 : i32
    %c0_i32_1 = arith.constant 0 : i32
    return %c0_i32, %c0_i32_0 : i32, i32
  }
  func.func @transform_14(%arg0: i32) -> (i32, i32) {
    %c0_i32 = arith.constant 0 : i32
    %c0_i32_0 = arith.constant 0 : i32
    %c0_i32_1 = arith.constant 0 : i32
    return %c0_i32, %c0_i32_0 : i32, i32
  }
  func.func @transform_15(%arg0: i32) -> (i32, i32) {
    %c0_i32 = arith.constant 0 : i32
    %c0_i32_0 = arith.constant 0 : i32
    %c0_i32_1 = arith.constant 0 : i32
    return %c0_i32, %c0_i32_0 : i32, i32
  }
  func.func @transform_16(%arg0: i32) -> (i32, i32) {
    %c0_i32 = arith.constant 0 : i32
    %c0_i32_0 = arith.constant 0 : i32
    %c0_i32_1 = arith.constant 0 : i32
    return %c0_i32, %c0_i32_0 : i32, i32
  }
  func.func @transform_17(%arg0: i32) -> (i32, i32) {
    %c0_i32 = arith.constant 0 : i32
    %c0_i32_0 = arith.constant 0 : i32
    %c0_i32_1 = arith.constant 0 : i32
    return %c0_i32, %c0_i32_0 : i32, i32
  }
  func.func @transform_18(%arg0: i32) -> (i32, i32) {
    %c0_i32 = arith.constant 0 : i32
    %c0_i32_0 = arith.constant 0 : i32
    return %arg0, %c0_i32 : i32, i32
  }
}

</mosaic_0001>

<bundles_post_ra>
// kernel: tpu_custom_call.1
= control target key start
LH: loop header
LB: loop body
LE: loop exit
PB: predicated region body
PF: predicated region fallthrough
CT: control target
= control target key end

     0   :  { %s6760_s0 = inlined_call_operand.vmem [shape: f32[2,12,16], index: 0, kind: input, shape index: {}]   ;;  %s6761_s1 = inlined_call_operand.hbm [shape: f32[2,12], index: 1, kind: input, shape index: {}]   ;;  %s6762_s2 = inlined_call_operand.hbm [shape: f32[16,128], index: 2, kind: input, shape index: {}]   ;;  %s6763_s3 = inlined_call_operand.vmem [shape: f32[1,128], index: 3, kind: input, shape index: {}]   ;;  %s6764_s4 = inlined_call_operand.hbm [shape: f32[32,128], index: 4, kind: input, shape index: {}]   ;;  %s6765_s5 = inlined_call_operand.vmem [shape: f32[64,128], index: 5, kind: input, shape index: {}]   ;;  %s6766_s6 = inlined_call_operand.hbm [shape: f32[1,128], index: 6, kind: input, shape index: {}]   ;;  %s6767_s7 = inlined_call_operand.hbm [shape: f32[32,128], index: 7, kind: input, shape index: {}]   ;;  %s6768_s8 = inlined_call_operand.hbm [shape: f32[64,128], index: 8, kind: input, shape index: {}]   ;;  %s6769_s9 = inlined_call_operand.hbm [shape: f32[1,128], index: 9, kind: input, shape index: {}]   ;;  %s6770_s10 = inlined_call_operand.vmem [shape: f32[1,128], index: 10, kind: input, shape index: {}]   ;;  %s6771_s11 = inlined_call_operand.vmem [shape: f32[1,128], index: 11, kind: input, shape index: {}]   ;;  %s6772_s12 = inlined_call_operand.vmem [shape: f32[1,128], index: 12, kind: input, shape index: {}]   ;;  %s6773_s13 = inlined_call_operand.<no memory space> [shape: f32[1,1], index: 13, kind: input, shape index: {}]   ;;  %s6774_s14 = inlined_call_operand.vmem [shape: f32[32,32], index: 14, kind: input, shape index: {}]   ;;  %s6775_s15 = inlined_call_operand.vmem [shape: f32[1,32], index: 15, kind: input, shape index: {}]   ;;  %s6776_s16 = inlined_call_operand.vmem [shape: f32[1,32], index: 16, kind: input, shape index: {}]   ;;  %s6777_s18 = inlined_call_operand.hbm [shape: f32[2,12], index: 18, kind: output, shape index: {}]   ;;  %s6778_s17 = inlined_call_operand.<no memory space> [shape: f32[1,1], index: 17, kind: input, shape index: {}]  }
   0x1   :  { %6782 = sst [smem:[#allocation26_spill]] %s6760_s0  ;;  %v23_v0 = vstv %s6773_s13  ;;  %v25_v1 = vstv %s6778_s17 }
   0x2   :  { %6783 = sst [smem:[#allocation27_spill]] %s6761_s1  ;;  %24 = vst [vmem:[#allocation6] sm:$0x1] %v23_v0  ;;  %26 = vst [vmem:[#allocation7] sm:$0x1] %v25_v1 }
   0x3   :  { %6784 = sst [smem:[#allocation28_spill]] %s6762_s2 }
   0x4   :  { %27 = vsyncpa [#allocation9], 0 }
   0x5   :  { %28 = vsyncpa [#allocation12], 0 }
   0x6   :  { %29 = vsyncpa [#allocation15], 0 }
   0x7   :  { %30 = vsyncpa [#allocation18], 0 }
   0x8   :  { %31 = vsyncpa [#allocation10], 0  ;;  %s5556_s0 = smov [#allocation11]   ;;  %s6785_s21 = sld [smem:[#allocation28_spill]] }
   0x9   :  { %s49_s19 = sshll.u32 %s5556_s0, 4  ;;  %s50_s19 = int_to_ptr.vmem [resolvable:$true] %s49_s19 }
   0xe   :  { %s5370_s22 = scalar_lea.hbm %s6785_s21, 256 }
   0xf   :  { %p5371_p0 = scmp.ne.s32.totalorder %s6785_s21, %s5370_s22  ;;  %p5374_p1 = scmp.lt.u32.totalorder %s5370_s22, %s6785_s21 }
  0x11   :  { %p5376_p2 = pnand %p5374_p1, %p5371_p0 }
  0x13   :  { %5379 = shalt.err (!%p5376_p2)
}
  0x14   :  { %s5380_s24 = scalar_lea.vmem %s50_s19, 256  ;;  %p5385_p4 = scmp.lt.s32.totalorder %s50_s19, %s50_s19 }
  0x15   :  { %p5381_p3 = scmp.ne.s32.totalorder %s50_s19, %s5380_s24  ;;  %p5386_p5 = scmp.lt.s32.totalorder %s5380_s24, %s5380_s24 }
  0x17   :  { %p5387_p6 = por %p5386_p5, %p5385_p4 }
  0x19   :  { %p5388_p7 = pnand %p5387_p6, %p5381_p3 }
  0x1b   :  { %5391 = shalt.err (!%p5388_p7)
}
  0x1c   :  { %s5557_s25 = smov 128   ;;  %s5558_s26 = smov 8  }
  0x1d   :  { %55 = dma.hbm_to_vmem [thread:$0]  %s6785_s21, 256, %s50_s19, [#allocation12], %s5557_s25, %s5557_s25, %s5558_s26  }
  0x1e   :  { %s5559_s29 = smov [#allocation14]   ;;  %s5560_s0 = smov [#allocation17]  }
  0x1f   :  { %s78_s30 = sshll.u32 %s5559_s29, 4  ;;  %s99_s1 = sshll.u32 %s5560_s0, 4  ;;  %s79_s30 = int_to_ptr.vmem [resolvable:$true] %s78_s30  ;;  %s100_s1 = int_to_ptr.vmem [resolvable:$true] %s99_s1 }
  0x20   :  { %s5392_s2 = scalar_lea.hbm %s6766_s6, 16 }
  0x21   :  { %p5393_p8 = scmp.ne.s32.totalorder %s6766_s6, %s5392_s2  ;;  %p5396_p9 = scmp.lt.u32.totalorder %s5392_s2, %s6766_s6 }
  0x23   :  { %p5398_p10 = pnand %p5396_p9, %p5393_p8 }
  0x25   :  { %5401 = shalt.err (!%p5398_p10)
}
  0x26   :  { %s5402_s19 = scalar_lea.vmem %s79_s30, 16  ;;  %s5406_s21 = scalar_lea.vmem %s79_s30, 32 }
  0x27   :  { %p5403_p11 = scmp.ne.s32.totalorder %s79_s30, %s5402_s19  ;;  %p5407_p12 = scmp.lt.s32.totalorder %s79_s30, %s79_s30 }
  0x28   :  { %p5408_p13 = scmp.lt.s32.totalorder %s5406_s21, %s5402_s19 }
  0x2a   :  { %p5409_p0 = por %p5408_p13, %p5407_p12 }
  0x2c   :  { %p5410_p1 = pnand %p5409_p0, %p5403_p11 }
  0x2e   :  { %5413 = shalt.err (!%p5410_p1)
}
  0x2f   :  { %81 = dma.hbm_to_vmem [thread:$0]  %s6766_s6, 16, %s79_s30, [#allocation15]  }
  0x30   :  { %s5414_s20 = scalar_lea.hbm %s6768_s8, 1024 }
  0x31   :  { %p5415_p2 = scmp.ne.s32.totalorder %s6768_s8, %s5414_s20  ;;  %p5418_p3 = scmp.lt.u32.totalorder %s5414_s20, %s6768_s8 }
  0x33   :  { %p5420_p4 = pnand %p5418_p3, %p5415_p2 }
  0x35   :  { %5423 = shalt.err (!%p5420_p4)
}
  0x36   :  { %s5424_s17 = scalar_lea.vmem %s100_s1, 1024  ;;  %p5429_p6 = scmp.lt.s32.totalorder %s100_s1, %s100_s1 }
  0x37   :  { %p5425_p5 = scmp.ne.s32.totalorder %s100_s1, %s5424_s17  ;;  %p5430_p7 = scmp.lt.s32.totalorder %s5424_s17, %s5424_s17 }
  0x39   :  { %p5431_p8 = por %p5430_p7, %p5429_p6 }
  0x3b   :  { %p5432_p9 = pnand %p5431_p8, %p5425_p5 }
  0x3d   :  { %5435 = shalt.err (!%p5432_p9)
}
  0x3e   :  { %105 = dma.hbm_to_vmem [thread:$0]  %s6768_s8, 1024, %s100_s1, [#allocation18], %s5557_s25, %s5557_s25, %s5558_s26  }
  0x3f   :  { %s5561_s24 = smov [#allocation8]   ;;  %s5562_s21 = smov [#allocation13]  }
  0x40   :  { %s40_s19 = sshll.u32 %s5561_s24, 4  ;;  %s63_s27 = sshll.u32 %s5562_s21, 4  ;;  %s41_s19 = int_to_ptr.vmem [resolvable:$true] %s40_s19  ;;  %s64_s27 = int_to_ptr.vmem [resolvable:$true] %s63_s27 }
  0x41   :  { %s6786_s0 = sld [smem:[#allocation27_spill]] }
  0x47   :  { %s5436_s20 = scalar_lea.hbm %s6786_s0, 32 }
  0x48   :  { %p5437_p10 = scmp.ne.s32.totalorder %s6786_s0, %s5436_s20  ;;  %p5440_p11 = scmp.lt.u32.totalorder %s5436_s20, %s6786_s0 }
  0x4a   :  { %p5442_p12 = pnand %p5440_p11, %p5437_p10 }
  0x4c   :  { %5445 = shalt.err (!%p5442_p12)
}
  0x4d   :  { %s5446_s8 = scalar_lea.vmem %s41_s19, 32  ;;  %p5451_p0 = scmp.lt.s32.totalorder %s41_s19, %s41_s19 }
  0x4e   :  { %p5447_p13 = scmp.ne.s32.totalorder %s41_s19, %s5446_s8  ;;  %p5452_p1 = scmp.lt.s32.totalorder %s5446_s8, %s5446_s8 }
  0x50   :  { %p5453_p2 = por %p5452_p1, %p5451_p0 }
  0x52   :  { %p5454_p3 = pnand %p5453_p2, %p5447_p13 }
  0x54   :  { %5457 = shalt.err (!%p5454_p3)
}
  0x55   :  { %43 = dma.hbm_to_vmem [thread:$0]  %s6786_s0, 32, %s41_s19, [#allocation9]  }
  0x56   :  { %s5458_s24 = scalar_lea.hbm %s6764_s4, 512 }
  0x57   :  { %p5459_p4 = scmp.ne.s32.totalorder %s6764_s4, %s5458_s24  ;;  %p5462_p5 = scmp.lt.u32.totalorder %s5458_s24, %s6764_s4 }
  0x59   :  { %p5464_p6 = pnand %p5462_p5, %p5459_p4 }
  0x5b   :  { %5467 = shalt.err (!%p5464_p6)
}
  0x5c   :  { %s5468_s22 = scalar_lea.vmem %s64_s27, 512  ;;  %p5473_p8 = scmp.lt.s32.totalorder %s64_s27, %s64_s27 }
  0x5d   :  { %p5469_p7 = scmp.ne.s32.totalorder %s64_s27, %s5468_s22  ;;  %p5474_p9 = scmp.lt.s32.totalorder %s5468_s22, %s5468_s22 }
  0x5f   :  { %p5475_p10 = por %p5474_p9, %p5473_p8 }
  0x61   :  { %p5476_p11 = pnand %p5475_p10, %p5469_p7 }
  0x63   :  { %5479 = shalt.err (!%p5476_p11)
}
  0x64   :  { %69 = dma.hbm_to_vmem [thread:$0]  %s6764_s4, 512, %s64_s27, [#allocation12], %s5557_s25, %s5557_s25, %s5558_s26  }
  0x65   :  { %s5563_s2 = smov [#allocation16]   ;;  %s5564_s23 = smov [#allocation19]  }
  0x66   :  { %s87_s13 = sshll.u32 %s5563_s2, 4  ;;  %s112_s8 = sshll.u32 %s5564_s23, 4  ;;  %s88_s13 = int_to_ptr.vmem [resolvable:$true] %s87_s13  ;;  %s113_s8 = int_to_ptr.vmem [resolvable:$true] %s112_s8 }
  0x67   :  { %s5480_s6 = scalar_lea.hbm %s6767_s7, 512 }
  0x68   :  { %p5481_p12 = scmp.ne.s32.totalorder %s6767_s7, %s5480_s6  ;;  %p5484_p13 = scmp.lt.u32.totalorder %s5480_s6, %s6767_s7 }
  0x6a   :  { %p5486_p0 = pnand %p5484_p13, %p5481_p12 }
  0x6c   :  { %5489 = shalt.err (!%p5486_p0)
}
  0x6d   :  { %s5490_s4 = scalar_lea.vmem %s88_s13, 512  ;;  %p5495_p2 = scmp.lt.s32.totalorder %s88_s13, %s88_s13 }
  0x6e   :  { %p5491_p1 = scmp.ne.s32.totalorder %s88_s13, %s5490_s4  ;;  %p5496_p3 = scmp.lt.s32.totalorder %s5490_s4, %s5490_s4 }
  0x70   :  { %p5497_p4 = por %p5496_p3, %p5495_p2 }
  0x72   :  { %p5498_p5 = pnand %p5497_p4, %p5491_p1 }
  0x74   :  { %5501 = shalt.err (!%p5498_p5)
}
  0x75   :  { %93 = dma.hbm_to_vmem [thread:$0]  %s6767_s7, 512, %s88_s13, [#allocation15], %s5557_s25, %s5557_s25, %s5558_s26  }
  0x76   :  { %s5502_s19 = scalar_lea.hbm %s6769_s9, 16 }
  0x77   :  { %p5503_p6 = scmp.ne.s32.totalorder %s6769_s9, %s5502_s19  ;;  %p5506_p7 = scmp.lt.u32.totalorder %s5502_s19, %s6769_s9 }
  0x79   :  { %p5508_p8 = pnand %p5506_p7, %p5503_p6 }
  0x7b   :  { %5511 = shalt.err (!%p5508_p8)
}
  0x7c   :  { %s5512_s17 = scalar_lea.vmem %s113_s8, 16  ;;  %s5516_s6 = scalar_lea.vmem %s113_s8, 32 }
  0x7d   :  { %p5513_p9 = scmp.ne.s32.totalorder %s113_s8, %s5512_s17  ;;  %p5517_p10 = scmp.lt.s32.totalorder %s113_s8, %s113_s8 }
  0x7e   :  { %p5518_p11 = scmp.lt.s32.totalorder %s5516_s6, %s5512_s17 }
  0x80   :  { %p5519_p12 = por %p5518_p11, %p5517_p10 }
  0x82   :  { %p5520_p13 = pnand %p5519_p12, %p5513_p9 }
  0x84   :  { %5523 = shalt.err (!%p5520_p13)
}
  0x85   :  { %115 = dma.hbm_to_vmem [thread:$0]  %s6769_s9, 16, %s113_s8, [#allocation18]  }
  0x86   :  { %5546 = dma.done.wait [#allocation9], 32  }
  0x87   :  { %5547 = vsyncadd [#allocation9], 4294967264 }
  0x88   :  { %5548 = dma.done.wait [#allocation12], 768  }
  0x89   :  { %5549 = vsyncadd [#allocation12], 4294966528 }
  0x8a   :  { %5550 = dma.done.wait [#allocation15], 528  }
  0x8b   :  { %5551 = vsyncadd [#allocation15], 4294966768 }
  0x8c   :  { %5552 = dma.done.wait [#allocation18], 1040  }
  0x8d   :  { %5553 = vsyncadd [#allocation18], 4294966256  ;;  %v5565_v2 = vmov 0.0|0.0   ;;  %vm5566_vm0 = vmmov 0   ;;  %v5567_v3 = vmov 0.0   ;;  %v169_v4 = vld [vmem:[#allocation11] sm:$0xff]  ;;  %v274_v22 = vlaneseq }
  0x8e   :  { %4933 = vmatprep.subr.bf16.mxu0 %v5565_v2  ;;  %4571 = vmatprep.mubr.msk.f32.mxu0 %vm5566_vm0, %v5567_v3  ;;  %v170_v5 = vld [vmem:[#allocation11 + $0x8] sm:$0xff]  ;;  %s6787_s8 = sld [smem:[#allocation26_spill]]  ;;  %v493_v9 = vld [vmem:[#allocation13] sm:$0xff]  ;;  %v494_v10 = vld [vmem:[#allocation13 + $0x8] sm:$0xff]  ;;  %vm181_vm1 = vcmask 130048   ;;  %vm282_vm2 = vcmask 1041409  }
  0x8f   :  { %4936 = vmatprep.subr.bf16.mxu1 %v5565_v2  ;;  %4588 = vmatprep.mubr.msk.f32.mxu1 %vm5566_vm0, %v5567_v3  ;;  %v4934_v7 = vpack.c.bf16 %v170_v5, %v169_v4  ;;  %v495_v11 = vld [vmem:[#allocation13 + $0x10] sm:$0xff]  ;;  %v5788_v15 = vpack.c.bf16 %v494_v10, %v493_v9  ;;  %v496_v16 = vld [vmem:[#allocation13 + $0x18] sm:$0xff]  ;;  %v5816_v23 = vshrl.u32 %v274_v22, 7  ;;  %v3335_v24 = vand.u32 127, %v274_v22  ;;  %v4322_v26 = vld [vmem:[%s6763_s3] ss:$0 sm:$0xff] }
  0x90   :  { %v5792_v17 = vpack.c.bf16 %v496_v16, %v495_v11  ;;  %vm293_vm3 = vcmask 1043459   ;;  %vm304_vm4 = vcmask 1045509   ;;  %vm315_vm5 = vcmask 1047559   ;;  %s5568_s3 = smov 64   ;;  %s5569_s22 = smov 32  }
  0x91   :  { %4935 = vmatpush3.bf16.msra.mxu0 %v4934_v7  ;;  %4938 = vmatpush3.bf16.msra.mxu1 %v5788_v15  ;;  %v5819_v25 = vsub.s32 %v3335_v24, %v5816_v23  ;;  %v5825_v31 = vsub.s32 2, %v5816_v23  ;;  %v5828_v33 = vsub.s32 0, %v5816_v23  ;;  %v5831_v34 = vsub.s32 1, %v5816_v23  ;;  %s5575_s25 = smov [#allocation20]  }
  0x92   :  { %4942 = vmatprep.subr.bf16.mxu0 %v5565_v2  ;;  %4939 = vmatprep.subr.bf16.mxu1 %v5565_v2  ;;  %v5834_v35 = vsub.s32 3, %v5816_v23  ;;  %vm318_vm6 = vcmask 1041408   ;;  %vm320_vm7 = vcmask 1043456   ;;  %vm322_vm8 = vcmask 1045504   ;;  %s4310_s9 = sshll.u32 %s5575_s25, 4  ;;  %s4311_s9 = int_to_ptr.vmem [resolvable:$true] %s4310_s9 }
  0x93   :  { %vm507_vm9 = vcmask 261120   ;;  %vm617_vm10 = vcmask 523264   ;;  %vm2451_vm11 = vcmask 253952   ;;  %vm161_vm12 = vcmask 58368   ;;  %s5524_s13 = scalar_lea.vmem %s4311_s9, 32  ;;  %p5529_p1 = scmp.lt.s32.totalorder %s4311_s9, %s4311_s9 }
  0x94   :  { %v153_v6 = vld [vmem:[%s6787_s8] sm:$0xff]  ;;  %v154_v13 = vld [vmem:[%s6787_s8 + $0x8] sm:$0xf]  ;;  %v155_v14 = vld [vmem:[%s6787_s8 + $0x10] sm:$0xff]  ;;  %vm3524_vm13 = vcmask 254976   ;;  %vm3540_vm14 = vcmask 66624   ;;  %p5525_p0 = scmp.ne.s32.totalorder %s4311_s9, %s5524_s13  ;;  %p5530_p2 = scmp.lt.s32.totalorder %s5524_s13, %s5524_s13 }
  0x95   :  { %v167_v8 = vcombine.high %v153_v6, %v153_v6  ;;  %v179_v18 = vcombine.low %v154_v13, %v155_v14  ;;  %v168_v19 = vcombine.high %v155_v14, %v155_v14  ;;  %v156_v20 = vld [vmem:[%s6787_s8 + $0x18] sm:$0xf]  ;;  %4941 = vmatpush3.bf16.msra.mxu1 %v5792_v17  ;;  %vm3794_vm15 = vcmask 74824  }
  0x96   :  { %4954 = vmatprep.subr.bf16.mxu1 %v5565_v2  ;;  %p5531_p3 = por %p5530_p2, %p5529_p1 }
  0x97   :  { %v178_v12 = vcombine.low %v153_v6, %v167_v8  ;;  %v180_v21 = vcombine.low %v168_v19, %v156_v20 }
  0x98   :  { %4589 = vmatmul.mubr.f32.vlgmr.msra.gmra.mrb[0].mxu1 %v5567_v3  ;;  %p5532_p4 = pnand %p5531_p3, %p5525_p0 }
  0x99   :  { %4572 = vmatmul.mubr.msk.f32.vlgmr.msra.gmra.mrb[0].mxu0 %vm181_vm1, %v178_v12  ;;  %4956 = vmatpush3.bf16.msra.mxu1 %v5788_v15 }
  0x9a   :  { %4574 = vmatprep.mubr.msk.f32.mxu0 %vm5566_vm0, %v5567_v3  ;;  %4618 = vmatprep.mubr.msk.f32.mxu1 %vm5566_vm0, %v5567_v3 }
  0x9b   :  { %4957 = vmatprep.subr.bf16.mxu1 %v5565_v2 }
  0x9d   :  { %4575 = vmatmul.mubr.msk.f32.gmra.mrb[2].mxu0 %vm181_vm1, %v179_v18  ;;  %4959 = vmatpush3.bf16.msra.mxu1 %v5792_v17 }
  0x9e   :  { %4577 = vmatprep.mubr.msk.f32.mxu0 %vm5566_vm0, %v5567_v3  ;;  %4960 = vmatprep.subr.bf16.mxu1 %v5565_v2 }
  0xa1   :  { %4578 = vmatmul.mubr.msk.f32.gmra.mrb[4].mxu0 %vm181_vm1, %v180_v21  ;;  %vm4302_vm1 = vcmask 91224  }
  0xa2   :  { %4607 = vmatprep.mubr.msk.f32.mxu0 %vm5566_vm0, %v5567_v3 }
 0x16b   :  { %v577_v39 = vpop.f32.mrb[0].mxu1 }
 0x16c   :  { %v254_v27 = vpop.f32.mrb[0].mxu0  ;;  %v4590_v42 = vpop.f32.mrb[1].mxu1 }
 0x16d   :  { %v255_v28 = vadd.f32 %v4322_v26, %v254_v27  ;;  %v4573_v29 = vpop.f32.mrb[1].mxu0 }
 0x16f   :  { %v271_v30 = vcombine.high %v255_v28, %v255_v28  ;;  %v277_v45 = vrot.slane %v255_v28, %v5828_v33  ;;  %v288_v46 = vrot.slane %v255_v28, %v5831_v34  ;;  %v299_v47 = vrot.slane %v255_v28, %v5825_v31 }
 0x170   :  { %v259_v32 = vpop.f32.mrb[2].mxu0  ;;  %v310_v54 = vrot.slane %v255_v28, %v5834_v35 }
 0x171   :  { %v5836_v36 = vadd.f32 %v4322_v26, %v259_v32  ;;  %v4576_v37 = vpop.f32.mrb[3].mxu0  ;;  %v5839_v38 = vrot.slane %v271_v30, %v5825_v31  ;;  %v5842_v40 = vrot.slane %v271_v30, %v5834_v35  ;;  %v334_v56 = vrot.slane %v271_v30, %v5828_v33 }
 0x172   :  { %v355_v57 = vrot.slane %v271_v30, %v5831_v34 }
 0x173   :  { %v272_v41 = vcombine.high %v5836_v36, %v5836_v36  ;;  %v5848_v43 = vrot.slane %v5836_v36, %v5825_v31  ;;  %v481_v48 = vrot.slane %v5836_v36, %v5834_v35  ;;  %v5867_v61 = vrot.slane %v5836_v36, %v5828_v33 }
 0x174   :  { %v264_v44 = vpop.f32.mrb[4].mxu0 }
 0x175   :  { %v265_v49 = vadd.f32 %v4322_v26, %v264_v44  ;;  %v281_v50 = vrot.slane %v272_v41, %v5828_v33  ;;  %v292_v51 = vrot.slane %v272_v41, %v5831_v34  ;;  %v303_v52 = vrot.slane %v272_v41, %v5825_v31  ;;  %v4579_v53 = vpop.f32.mrb[5].mxu0 }
 0x176   :  { %v314_v55 = vrot.slane %v272_v41, %v5834_v35  ;;  %v439_v41 = vrot.slane %v5836_v36, %v5831_v34  ;;  %v497_v36 = vld [vmem:[%s6765_s5] sm:$0xff] }
 0x177   :  { %v283_v58 = vsel %vm282_vm2, %v281_v50, %v277_v45  ;;  %v294_v59 = vsel %vm293_vm3, %v292_v51, %v288_v46  ;;  %v305_v60 = vsel %vm304_vm4, %v303_v52, %v299_v47  ;;  %v325_v0 = vsel %vm282_vm2, %v292_v51, %v288_v46 }
 0x178   :  { %v316_v62 = vsel %vm315_vm5, %v314_v55, %v310_v54  ;;  %v319_v63 = vsel %vm318_vm6, %v283_v58, %v294_v59  ;;  %v327_v1 = vsel %vm293_vm3, %v303_v52, %v299_v47  ;;  %v329_v5 = vsel %vm304_vm4, %v314_v55, %v310_v54 }
 0x179   :  { %v321_v4 = vsel %vm320_vm7, %v319_v63, %v305_v60  ;;  %v338_v6 = vrot.slane %v265_v49, %v5828_v33  ;;  %v341_v7 = vsel %vm318_vm6, %v325_v0, %v327_v1  ;;  %v346_v10 = vsel %vm282_vm2, %v303_v52, %v299_v47 }
 0x17a   :  { %v323_v8 = vsel %vm322_vm8, %v321_v4, %v316_v62  ;;  %v342_v9 = vsel %vm320_vm7, %v341_v7, %v329_v5  ;;  %v348_v11 = vsel %vm293_vm3, %v314_v55, %v310_v54  ;;  %v359_v16 = vrot.slane %v265_v49, %v5831_v34 }
 0x17b   :  { %v5881_v12 = vadd.f32 %v577_v39, %v323_v8  ;;  %v339_v13 = vsel %vm315_vm5, %v338_v6, %v334_v56  ;;  %v350_v14 = vsel %vm304_vm4, %v338_v6, %v334_v56  ;;  %v362_v19 = vsel %vm318_vm6, %v346_v10, %v348_v11 }
 0x17c   :  { %v5887_v18 = vsel %vm322_vm8, %v342_v9, %v339_v13  ;;  %v367_v20 = vsel %vm282_vm2, %v314_v55, %v310_v54  ;;  %v369_v21 = vsel %vm293_vm3, %v338_v6, %v334_v56  ;;  %v273_v22 = vcombine.high %v265_v49, %v265_v49 }
 0x17d   :  { %5175 = vtanh.f32 %v5881_v12  ;;  %v360_v24 = vsel %vm315_vm5, %v359_v16, %v355_v57  ;;  %v363_v26 = vsel %vm320_vm7, %v362_v19, %v350_v14  ;;  %v371_v28 = vsel %vm304_vm4, %v359_v16, %v355_v57 }
 0x17e   :  { %v5896_v27 = vsel %vm322_vm8, %v363_v26, %v360_v24  ;;  %v380_v29 = vrot.slane %v265_v49, %v5825_v31  ;;  %v383_v30 = vsel %vm318_vm6, %v367_v20, %v369_v21  ;;  %v388_v37 = vsel %vm282_vm2, %v338_v6, %v334_v56 }
 0x17f   :  { %v384_v32 = vsel %vm320_vm7, %v383_v30, %v371_v28  ;;  %v390_v39 = vsel %vm293_vm3, %v359_v16, %v355_v57  ;;  %v401_v45 = vrot.slane %v265_v49, %v5834_v35  ;;  %v409_v51 = vsel %vm282_vm2, %v359_v16, %v355_v57 }
 0x180   :  { %v381_v42 = vsel %vm315_vm5, %v380_v29, %v5839_v38  ;;  %v392_v44 = vsel %vm304_vm4, %v380_v29, %v5839_v38  ;;  %v404_v46 = vsel %vm318_vm6, %v388_v37, %v390_v39  ;;  %v411_v52 = vsel %vm293_vm3, %v380_v29, %v5839_v38 }
 0x181   :  { %v5913_v47 = vsel %vm322_vm8, %v384_v32, %v381_v42  ;;  %v405_v50 = vsel %vm320_vm7, %v404_v46, %v392_v44  ;;  %v402_v53 = vsel %vm315_vm5, %v401_v45, %v5842_v40  ;;  %v413_v54 = vsel %vm304_vm4, %v401_v45, %v5842_v40  ;;  %v500_v42 = vld [vmem:[%s6765_s5 + $0x18] sm:$0xff]  ;;  %v502_v46 = vld [vmem:[%s6765_s5 + $0x28] sm:$0xff] }
 0x182   :  { %v422_v49 = vrot.slane %v273_v22, %v5828_v33  ;;  %v425_v55 = vsel %vm318_vm6, %v409_v51, %v411_v52  ;;  %v5926_v56 = vsel %vm322_vm8, %v405_v50, %v402_v53  ;;  %v430_v57 = vsel %vm282_vm2, %v380_v29, %v5839_v38  ;;  %v503_v51 = vld [vmem:[%s6765_s5 + $0x30] sm:$0xff]  ;;  %v504_v52 = vld [vmem:[%s6765_s5 + $0x38] sm:$0xff] }
 0x183   :  { %v426_v58 = vsel %vm320_vm7, %v425_v55, %v413_v54  ;;  %v432_v59 = vsel %vm293_vm3, %v401_v45, %v5842_v40  ;;  %v443_v63 = vrot.slane %v273_v22, %v5831_v34  ;;  %v451_v38 = vsel %vm282_vm2, %v401_v45, %v5842_v40  ;;  %v501_v45 = vld [vmem:[%s6765_s5 + $0x20] sm:$0xff] }
 0x184   :  { %v423_v60 = vsel %vm315_vm5, %v422_v49, %v5867_v61  ;;  %v434_v62 = vsel %vm304_vm4, %v422_v49, %v5867_v61  ;;  %v446_v0 = vsel %vm318_vm6, %v430_v57, %v432_v59  ;;  %v453_v5 = vsel %vm293_vm3, %v422_v49, %v5867_v61  ;;  %v6042_v59 = vld [vmem:[#allocation14] ss:$0 sm:$0xff] }
 0x185   :  { %v5940_v1 = vsel %vm322_vm8, %v426_v58, %v423_v60  ;;  %v447_v4 = vsel %vm320_vm7, %v446_v0, %v434_v62  ;;  %v444_v6 = vsel %vm315_vm5, %v443_v63, %v439_v41  ;;  %v455_v7 = vsel %vm304_vm4, %v443_v63, %v439_v41 }
 0x186   :  { %v464_v8 = vrot.slane %v273_v22, %v5825_v31  ;;  %v467_v9 = vsel %vm318_vm6, %v451_v38, %v453_v5  ;;  %v5952_v11 = vsel %vm322_vm8, %v447_v4, %v444_v6  ;;  %v472_v40 = vsel %vm282_vm2, %v422_v49, %v5867_v61 }
 0x187   :  { %v5176_v10 = vpop.eup %5175  ;;  %v468_v13 = vsel %vm320_vm7, %v467_v9, %v455_v7  ;;  %v474_v14 = vsel %vm293_vm3, %v443_v63, %v439_v41  ;;  %v485_v19 = vrot.slane %v273_v22, %v5834_v35  ;;  %v4326_v28 = vmul.f32 -1.442695, %v5881_v12  ;;  %v499_v12 = vld [vmem:[%s6765_s5 + $0x10] sm:$0xff] }
 0x188   :  { %591 = vrot.lane.b32.xlu0 %v5176_v10, %s5568_s3  ;;  %v465_v16 = vsel %vm315_vm5, %v464_v8, %v5848_v43  ;;  %v476_v31 = vsel %vm304_vm4, %v464_v8, %v5848_v43  ;;  %v488_v20 = vsel %vm318_vm6, %v472_v40, %v474_v14  ;;  %v5996_v44 = vpack.c.bf16 %v500_v42, %v499_v12 }
 0x189   :  { %v5966_v21 = vsel %vm322_vm8, %v468_v13, %v465_v16  ;;  %v489_v61 = vsel %vm320_vm7, %v488_v20, %v476_v31  ;;  %v486_v24 = vsel %vm315_vm5, %v485_v19, %v481_v48  ;;  %5177 = vpow2.f32 %v4326_v28  ;;  %v498_v48 = vld [vmem:[%s6765_s5 + $0x8] sm:$0xff] }
 0x18a   :  { %v5974_v26 = vsel %vm322_vm8, %v489_v61, %v486_v24  ;;  %v5990_v41 = vpack.c.bf16 %v498_v48, %v497_v36  ;;  %v6006_v50 = vpack.c.bf16 %v502_v46, %v501_v45  ;;  %v6017_v54 = vpack.c.bf16 %v504_v52, %v503_v51 }
 0x18c   :  { %4944 = vmatpush3.bf16.msra.mxu0 %v5990_v41 }
 0x18d   :  { %4945 = vmatprep.subr.bf16.mxu0 %v5565_v2 }
 0x190   :  { %4947 = vmatpush3.bf16.msra.mxu0 %v5996_v44 }
 0x191   :  { %4948 = vmatprep.subr.bf16.mxu0 %v5565_v2 }
 0x193   :  { %v5178_v43 = vpop.eup %5177 }
 0x194   :  { %v585_v22 = vadd.f32 1.0, %v5178_v43  ;;  %4950 = vmatpush3.bf16.msra.mxu0 %v6006_v50 }
 0x195   :  { %4951 = vmatprep.subr.bf16.mxu0 %v5565_v2 }
 0x196   :  { %5179 = vrcp.f32 %v585_v22 }
 0x198   :  { %4953 = vmatpush3.bf16.msra.mxu0 %v6017_v54 }
 0x199   :  { %4972 = vmatprep.subr.bf16.mxu0 %v5565_v2 }
 0x1a0   :  { %v5180_v29 = vpop.eup %5179 }
 0x1a1   :  { %v589_v37 = vmul.f32 0.0, %v5180_v29 }
 0x1fa   :  { %v592_v30 = vpop.permute.xlu0 %591 }
 0x1fb   :  { %v594_v32 = vmul.f32 %v5180_v29, %v592_v30 }
 0x1fd   :  { %596 = vrot.lane.b32.xlu0 %v594_v32, %s5569_s22 }
 0x26f   :  { %v597_v39 = vpop.permute.xlu0 %596 }
 0x270   :  { %v5978_v35 = vadd.f32 %v597_v39, %v589_v37 }
 0x272   :  { %5181 = vtanh.f32 %v5978_v35 }
 0x27c   :  { %v5182_v53 = vpop.eup %5181 }
 0x27d   :  { %602 = vrot.lane.b32.xlu1 %v5182_v53, %s5568_s3 }
 0x2ef   :  { %v603_v49 = vpop.permute.xlu1 %602 }
 0x2f0   :  { %v605_v55 = vmul.f32 %v5180_v29, %v603_v49 }
 0x2f2   :  { %607 = vrot.lane.b32.xlu1 %v605_v55, %s5569_s22 }
 0x364   :  { %v608_v58 = vpop.permute.xlu1 %607 }
 0x365   :  { %v610_v57 = vsel %vm507_vm9, %v608_v58, 0.0  ;;  %4619 = vmatmul.mubr.msk.f32.vlgmr.msra.gmra.mrb[2].mxu1 %vm507_vm9, %v608_v58 }
 0x366   :  { %4608 = vmatmul.mubr.msk.f32.vlgmr.msra.gmra.mrb[6].mxu0 %vm617_vm10, %v610_v57  ;;  %4962 = vmatpush3.bf16.msra.mxu1 %v5990_v41 }
 0x367   :  { %4963 = vmatprep.subr.bf16.mxu1 %v5565_v2  ;;  %4974 = vmatpush3.bf16.msra.mxu0 %v5788_v15 }
 0x368   :  { %4975 = vmatprep.subr.bf16.mxu0 %v5565_v2  ;;  %4648 = vmatprep.mubr.msk.f32.mxu0 %vm5566_vm0, %v5567_v3 }
 0x369   :  { %4637 = vmatprep.mubr.msk.f32.mxu1 %vm5566_vm0, %v5567_v3 }
 0x36a   :  { %4965 = vmatpush3.bf16.msra.mxu1 %v5996_v44 }
 0x36b   :  { %4966 = vmatprep.subr.bf16.mxu1 %v5565_v2  ;;  %4977 = vmatpush3.bf16.msra.mxu0 %v5792_v17 }
 0x36c   :  { %4978 = vmatprep.subr.bf16.mxu0 %v5565_v2 }
 0x36e   :  { %4968 = vmatpush3.bf16.msra.mxu1 %v6006_v50 }
 0x36f   :  { %4969 = vmatprep.subr.bf16.mxu1 %v5565_v2 }
 0x372   :  { %4971 = vmatpush3.bf16.msra.mxu1 %v6017_v54 }
 0x373   :  { %4990 = vmatprep.subr.bf16.mxu1 %v5565_v2 }
 0x438   :  { %v789_v60 = vpop.f32.mrb[2].mxu1 }
 0x439   :  { %v793_v62 = vadd.f32 %v789_v60, %v5887_v18  ;;  %v687_v63 = vpop.f32.mrb[6].mxu0  ;;  %v4620_v0 = vpop.f32.mrb[3].mxu1 }
 0x43a   :  { %v688_v4 = vadd.f32 %v6042_v59, %v687_v63  ;;  %v4609_v38 = vpop.f32.mrb[7].mxu0 }
 0x43b   :  { %5183 = vtanh.f32 %v793_v62  ;;  %v4331_v7 = vmul.f32 -1.442695, %v793_v62 }
 0x43c   :  { %5185 = vtanh.f32 %v688_v4  ;;  %v4329_v8 = vmul.f32 -1.442695, %v688_v4 }
 0x43d   :  { %5187 = vpow2.f32 %v4331_v7 }
 0x43e   :  { %5189 = vpow2.f32 %v4329_v8 }
 0x445   :  { %v5184_v5 = vpop.eup %5183 }
 0x446   :  { %v5186_v6 = vpop.eup %5185  ;;  %803 = vrot.lane.b32.xlu1 %v5184_v5, %s5568_s3 }
 0x447   :  { %700 = vrot.lane.b32.xlu0 %v5186_v6, %s5568_s3  ;;  %v5188_v9 = vpop.eup %5187 }
 0x448   :  { %v5190_v10 = vpop.eup %5189  ;;  %v797_v18 = vadd.f32 1.0, %v5188_v9 }
 0x449   :  { %v694_v13 = vadd.f32 1.0, %v5190_v10 }
 0x44a   :  { %5191 = vrcp.f32 %v797_v18 }
 0x44b   :  { %5193 = vrcp.f32 %v694_v13 }
 0x454   :  { %v5192_v40 = vpop.eup %5191 }
 0x455   :  { %v5194_v16 = vpop.eup %5193  ;;  %v801_v61 = vmul.f32 %v5192_v40, %v5978_v35 }
 0x456   :  { %v698_v28 = vmul.f32 0.0, %v5194_v16 }
 0x4b8   :  { %v804_v14 = vpop.permute.xlu1 %803 }
 0x4b9   :  { %v806_v31 = vmul.f32 %v5192_v40, %v804_v14  ;;  %v701_v19 = vpop.permute.xlu0 %700 }
 0x4ba   :  { %v703_v20 = vmul.f32 %v5194_v16, %v701_v19 }
 0x4bb   :  { %808 = vrot.lane.b32.xlu1 %v806_v31, %s5569_s22 }
 0x4bc   :  { %705 = vrot.lane.b32.xlu0 %v703_v20, %s5569_s22 }
 0x52d   :  { %v809_v24 = vpop.permute.xlu1 %808 }
 0x52e   :  { %v6051_v43 = vadd.f32 %v809_v24, %v801_v61  ;;  %v706_v22 = vpop.permute.xlu0 %705 }
 0x52f   :  { %v6053_v29 = vadd.f32 %v706_v22, %v698_v28 }
 0x530   :  { %5195 = vtanh.f32 %v6051_v43 }
 0x531   :  { %5197 = vtanh.f32 %v6053_v29 }
 0x53a   :  { %v5196_v30 = vpop.eup %5195 }
 0x53b   :  { %v5198_v32 = vpop.eup %5197  ;;  %814 = vrot.lane.b32.xlu1 %v5196_v30, %s5568_s3 }
 0x53c   :  { %711 = vrot.lane.b32.xlu0 %v5198_v32, %s5568_s3 }
 0x5ad   :  { %v815_v37 = vpop.permute.xlu1 %814 }
 0x5ae   :  { %v817_v39 = vmul.f32 %v5192_v40, %v815_v37  ;;  %v712_v35 = vpop.permute.xlu0 %711 }
 0x5af   :  { %v6059_v36 = vmul.f32 %v5194_v16, %v712_v35 }
 0x5b0   :  { %819 = vrot.lane.b32.xlu0 %v817_v39, %s5569_s22 }
 0x5b1   :  { %822 = vrot.lane.b32.xlu1 %v6059_v36, %s5568_s3 }
 0x622   :  { %v820_v48 = vpop.permute.xlu0 %819 }
 0x623   :  { %v823_v12 = vpop.permute.xlu1 %822  ;;  %4649 = vmatmul.mubr.msk.f32.vlgmr.msra.gmra.mrb[8].mxu0 %vm507_vm9, %v820_v48 }
 0x624   :  { %v825_v42 = vsel %vm507_vm9, %v820_v48, %v823_v12  ;;  %4980 = vmatpush3.bf16.msra.mxu0 %v5990_v41  ;;  %4667 = vmatprep.mubr.msk.f32.mxu0 %vm5566_vm0, %v5567_v3 }
 0x625   :  { %4638 = vmatmul.mubr.msk.f32.vlgmr.msra.gmra.mrb[4].mxu1 %vm617_vm10, %v825_v42  ;;  %4981 = vmatprep.subr.bf16.mxu0 %v5565_v2 }
 0x626   :  { %4992 = vmatpush3.bf16.msra.mxu1 %v5788_v15  ;;  %4678 = vmatprep.mubr.msk.f32.mxu1 %vm5566_vm0, %v5567_v3 }
 0x627   :  { %4993 = vmatprep.subr.bf16.mxu1 %v5565_v2 }
 0x628   :  { %4983 = vmatpush3.bf16.msra.mxu0 %v5996_v44 }
 0x629   :  { %4984 = vmatprep.subr.bf16.mxu0 %v5565_v2 }
 0x62a   :  { %4995 = vmatpush3.bf16.msra.mxu1 %v5792_v17 }
 0x62b   :  { %4996 = vmatprep.subr.bf16.mxu1 %v5565_v2 }
 0x62c   :  { %4986 = vmatpush3.bf16.msra.mxu0 %v6006_v50 }
 0x62d   :  { %4987 = vmatprep.subr.bf16.mxu0 %v5565_v2 }
 0x630   :  { %4989 = vmatpush3.bf16.msra.mxu0 %v6017_v54 }
 0x631   :  { %5008 = vmatprep.subr.bf16.mxu0 %v5565_v2 }
 0x6f6   :  { %v998_v45 = vpop.f32.mrb[8].mxu0 }
 0x6f7   :  { %v1002_v46 = vadd.f32 %v998_v45, %v5896_v27  ;;  %v4650_v51 = vpop.f32.mrb[9].mxu0 }
 0x6f8   :  { %v895_v52 = vpop.f32.mrb[4].mxu1 }
 0x6f9   :  { %5199 = vtanh.f32 %v1002_v46  ;;  %v896_v53 = vadd.f32 %v6042_v59, %v895_v52  ;;  %v4639_v49 = vpop.f32.mrb[5].mxu1  ;;  %v4335_v57 = vmul.f32 -1.442695, %v1002_v46 }
 0x6fb   :  { %5201 = vtanh.f32 %v896_v53  ;;  %v4333_v60 = vmul.f32 -1.442695, %v896_v53 }
 0x6fc   :  { %5203 = vpow2.f32 %v4335_v57 }
 0x6fd   :  { %5205 = vpow2.f32 %v4333_v60 }
 0x703   :  { %v5200_v55 = vpop.eup %5199 }
 0x704   :  { %1012 = vrot.lane.b32.xlu1 %v5200_v55, %s5568_s3 }
 0x705   :  { %v5202_v58 = vpop.eup %5201 }
 0x706   :  { %908 = vrot.lane.b32.xlu0 %v5202_v58, %s5568_s3  ;;  %v5204_v62 = vpop.eup %5203 }
 0x707   :  { %v5206_v63 = vpop.eup %5205  ;;  %v1006_v27 = vadd.f32 1.0, %v5204_v62 }
 0x708   :  { %v902_v0 = vadd.f32 1.0, %v5206_v63 }
 0x709   :  { %5207 = vrcp.f32 %v1006_v27 }
 0x70a   :  { %5209 = vrcp.f32 %v902_v0 }
 0x713   :  { %v5208_v4 = vpop.eup %5207 }
 0x714   :  { %v5210_v6 = vpop.eup %5209  ;;  %v1010_v9 = vmul.f32 %v5208_v4, %v6051_v43 }
 0x715   :  { %v906_v13 = vmul.f32 %v5210_v6, %v6053_v29 }
 0x776   :  { %v1013_v38 = vpop.permute.xlu1 %1012 }
 0x777   :  { %v1015_v5 = vmul.f32 %v5208_v4, %v1013_v38 }
 0x778   :  { %v909_v7 = vpop.permute.xlu0 %908 }
 0x779   :  { %1017 = vrot.lane.b32.xlu1 %v1015_v5, %s5569_s22  ;;  %v911_v8 = vmul.f32 %v5210_v6, %v909_v7 }
 0x77b   :  { %913 = vrot.lane.b32.xlu0 %v911_v8, %s5569_s22 }
 0x7eb   :  { %v1018_v10 = vpop.permute.xlu1 %1017 }
 0x7ec   :  { %v6090_v18 = vadd.f32 %v1018_v10, %v1010_v9 }
 0x7ed   :  { %v914_v40 = vpop.permute.xlu0 %913 }
 0x7ee   :  { %5211 = vtanh.f32 %v6090_v18  ;;  %v6094_v14 = vadd.f32 %v914_v40, %v906_v13 }
 0x7f0   :  { %5213 = vtanh.f32 %v6094_v14 }
 0x7f8   :  { %v5212_v16 = vpop.eup %5211 }
 0x7f9   :  { %1023 = vrot.lane.b32.xlu1 %v5212_v16, %s5568_s3 }
 0x7fa   :  { %v5214_v31 = vpop.eup %5213 }
 0x7fb   :  { %919 = vrot.lane.b32.xlu0 %v5214_v31, %s5568_s3 }
 0x86b   :  { %v1024_v19 = vpop.permute.xlu1 %1023 }
 0x86c   :  { %v1026_v20 = vmul.f32 %v5208_v4, %v1024_v19 }
 0x86d   :  { %v920_v61 = vpop.permute.xlu0 %919 }
 0x86e   :  { %1028 = vrot.lane.b32.xlu0 %v1026_v20, %s5569_s22  ;;  %v6100_v24 = vmul.f32 %v5210_v6, %v920_v61 }
 0x870   :  { %1031 = vrot.lane.b32.xlu1 %v6100_v24, %s5568_s3 }
 0x8e0   :  { %v1029_v28 = vpop.permute.xlu0 %1028 }
 0x8e1   :  { %4679 = vmatmul.mubr.msk.f32.vlgmr.msra.gmra.mrb[6].mxu1 %vm507_vm9, %v1029_v28 }
 0x8e2   :  { %4998 = vmatpush3.bf16.msra.mxu1 %v5990_v41  ;;  %4697 = vmatprep.mubr.msk.f32.mxu1 %vm5566_vm0, %v5567_v3  ;;  %v1032_v43 = vpop.permute.xlu1 %1031 }
 0x8e3   :  { %4999 = vmatprep.subr.bf16.mxu1 %v5565_v2  ;;  %v1034_v22 = vsel %vm507_vm9, %v1029_v28, %v1032_v43 }
 0x8e4   :  { %4668 = vmatmul.mubr.msk.f32.vlgmr.msra.gmra.mrb[10].mxu0 %vm617_vm10, %v1034_v22 }
 0x8e5   :  { %5010 = vmatpush3.bf16.msra.mxu0 %v5788_v15  ;;  %4708 = vmatprep.mubr.msk.f32.mxu0 %vm5566_vm0, %v5567_v3 }
 0x8e6   :  { %5001 = vmatpush3.bf16.msra.mxu1 %v5996_v44  ;;  %5011 = vmatprep.subr.bf16.mxu0 %v5565_v2 }
 0x8e7   :  { %5002 = vmatprep.subr.bf16.mxu1 %v5565_v2 }
 0x8e9   :  { %5013 = vmatpush3.bf16.msra.mxu0 %v5792_v17 }
 0x8ea   :  { %5004 = vmatpush3.bf16.msra.mxu1 %v6006_v50  ;;  %5014 = vmatprep.subr.bf16.mxu0 %v5565_v2 }
 0x8eb   :  { %5005 = vmatprep.subr.bf16.mxu1 %v5565_v2 }
 0x8ee   :  { %5007 = vmatpush3.bf16.msra.mxu1 %v6017_v54 }
 0x8ef   :  { %5026 = vmatprep.subr.bf16.mxu1 %v5565_v2 }
 0x9b4   :  { %v1207_v29 = vpop.f32.mrb[6].mxu1 }
 0x9b5   :  { %v1211_v30 = vadd.f32 %v1207_v29, %v5913_v47  ;;  %v4680_v32 = vpop.f32.mrb[7].mxu1 }
 0x9b7   :  { %5215 = vtanh.f32 %v1211_v30  ;;  %v1104_v37 = vpop.f32.mrb[10].mxu0  ;;  %v4339_v42 = vmul.f32 -1.442695, %v1211_v30 }
 0x9b8   :  { %v1105_v39 = vadd.f32 %v6042_v59, %v1104_v37  ;;  %v4669_v35 = vpop.f32.mrb[11].mxu0 }
 0x9ba   :  { %5217 = vtanh.f32 %v1105_v39  ;;  %v4337_v45 = vmul.f32 -1.442695, %v1105_v39 }
 0x9bb   :  { %5219 = vpow2.f32 %v4339_v42 }
 0x9bc   :  { %5221 = vpow2.f32 %v4337_v45 }
 0x9c1   :  { %v5216_v48 = vpop.eup %5215 }
 0x9c2   :  { %1221 = vrot.lane.b32.xlu1 %v5216_v48, %s5568_s3 }
 0x9c4   :  { %v5218_v12 = vpop.eup %5217 }
 0x9c5   :  { %1117 = vrot.lane.b32.xlu0 %v5218_v12, %s5568_s3  ;;  %v5220_v46 = vpop.eup %5219 }
 0x9c6   :  { %v1215_v51 = vadd.f32 1.0, %v5220_v46  ;;  %v5222_v47 = vpop.eup %5221 }
 0x9c7   :  { %v1111_v52 = vadd.f32 1.0, %v5222_v47 }
 0x9c8   :  { %5223 = vrcp.f32 %v1215_v51 }
 0x9c9   :  { %5225 = vrcp.f32 %v1111_v52 }
 0x9d2   :  { %v5224_v53 = vpop.eup %5223 }
 0x9d3   :  { %v5226_v58 = vpop.eup %5225  ;;  %v1219_v62 = vmul.f32 %v5224_v53, %v6090_v18 }
 0x9d4   :  { %v1115_v0 = vmul.f32 %v5226_v58, %v6094_v14 }
 0xa34   :  { %v1222_v49 = vpop.permute.xlu1 %1221 }
 0xa35   :  { %v1224_v55 = vmul.f32 %v5224_v53, %v1222_v49 }
 0xa37   :  { %1226 = vrot.lane.b32.xlu1 %v1224_v55, %s5569_s22  ;;  %v1118_v57 = vpop.permute.xlu0 %1117 }
 0xa38   :  { %v1120_v60 = vmul.f32 %v5226_v58, %v1118_v57 }
 0xa3a   :  { %1122 = vrot.lane.b32.xlu0 %v1120_v60, %s5569_s22 }
 0xaa9   :  { %v1227_v63 = vpop.permute.xlu1 %1226 }
 0xaaa   :  { %v6130_v27 = vadd.f32 %v1227_v63, %v1219_v62 }
 0xaac   :  { %5227 = vtanh.f32 %v6130_v27  ;;  %v1123_v4 = vpop.permute.xlu0 %1122 }
 0xaad   :  { %v6134_v38 = vadd.f32 %v1123_v4, %v1115_v0 }
 0xaaf   :  { %5229 = vtanh.f32 %v6134_v38 }
 0xab6   :  { %v5228_v5 = vpop.eup %5227 }
 0xab7   :  { %1232 = vrot.lane.b32.xlu1 %v5228_v5, %s5568_s3 }
 0xab9   :  { %v5230_v6 = vpop.eup %5229 }
 0xaba   :  { %1128 = vrot.lane.b32.xlu0 %v5230_v6, %s5568_s3 }
 0xb29   :  { %v1233_v7 = vpop.permute.xlu1 %1232 }
 0xb2a   :  { %v1235_v8 = vmul.f32 %v5224_v53, %v1233_v7 }
 0xb2c   :  { %1237 = vrot.lane.b32.xlu0 %v1235_v8, %s5569_s22  ;;  %v1129_v9 = vpop.permute.xlu0 %1128 }
 0xb2d   :  { %v6140_v10 = vmul.f32 %v5226_v58, %v1129_v9 }
 0xb2f   :  { %1240 = vrot.lane.b32.xlu1 %v6140_v10, %s5568_s3 }
 0xb9e   :  { %v1238_v18 = vpop.permute.xlu0 %1237 }
 0xb9f   :  { %4709 = vmatmul.mubr.msk.f32.vlgmr.msra.gmra.mrb[12].mxu0 %vm507_vm9, %v1238_v18 }
 0xba0   :  { %5016 = vmatpush3.bf16.msra.mxu0 %v5990_v41  ;;  %4727 = vmatprep.mubr.msk.f32.mxu0 %vm5566_vm0, %v5567_v3 }
 0xba1   :  { %5017 = vmatprep.subr.bf16.mxu0 %v5565_v2  ;;  %v1241_v13 = vpop.permute.xlu1 %1240 }
 0xba2   :  { %v1243_v40 = vsel %vm507_vm9, %v1238_v18, %v1241_v13 }
 0xba3   :  { %4698 = vmatmul.mubr.msk.f32.vlgmr.msra.gmra.mrb[8].mxu1 %vm617_vm10, %v1243_v40 }
 0xba4   :  { %5019 = vmatpush3.bf16.msra.mxu0 %v5996_v44  ;;  %5028 = vmatpush3.bf16.msra.mxu1 %v5788_v15 }
 0xba5   :  { %5020 = vmatprep.subr.bf16.mxu0 %v5565_v2  ;;  %5029 = vmatprep.subr.bf16.mxu1 %v5565_v2 }
 0xba6   :  { %4738 = vmatprep.mubr.msk.f32.mxu1 %vm5566_vm0, %v5567_v3 }
 0xba8   :  { %5022 = vmatpush3.bf16.msra.mxu0 %v6006_v50  ;;  %5031 = vmatpush3.bf16.msra.mxu1 %v5792_v17 }
 0xba9   :  { %5023 = vmatprep.subr.bf16.mxu0 %v5565_v2  ;;  %5032 = vmatprep.subr.bf16.mxu1 %v5565_v2 }
 0xbac   :  { %5025 = vmatpush3.bf16.msra.mxu0 %v6017_v54 }
 0xbad   :  { %5044 = vmatprep.subr.bf16.mxu0 %v5565_v2 }
 0xc72   :  { %v1416_v14 = vpop.f32.mrb[12].mxu0 }
 0xc73   :  { %v1420_v16 = vadd.f32 %v1416_v14, %v5926_v56  ;;  %v4710_v31 = vpop.f32.mrb[13].mxu0 }
 0xc75   :  { %5231 = vtanh.f32 %v1420_v16  ;;  %v4343_v22 = vmul.f32 -1.442695, %v1420_v16 }
 0xc76   :  { %v1313_v19 = vpop.f32.mrb[8].mxu1 }
 0xc77   :  { %v1314_v20 = vadd.f32 %v6042_v59, %v1313_v19  ;;  %v4699_v61 = vpop.f32.mrb[9].mxu1 }
 0xc79   :  { %5233 = vtanh.f32 %v1314_v20  ;;  %v4341_v29 = vmul.f32 -1.442695, %v1314_v20 }
 0xc7a   :  { %5235 = vpow2.f32 %v4343_v22 }
 0xc7b   :  { %5237 = vpow2.f32 %v4341_v29 }
 0xc7f   :  { %v5232_v28 = vpop.eup %5231 }
 0xc80   :  { %1430 = vrot.lane.b32.xlu1 %v5232_v28, %s5568_s3 }
 0xc83   :  { %v5234_v43 = vpop.eup %5233 }
 0xc84   :  { %1326 = vrot.lane.b32.xlu0 %v5234_v43, %s5568_s3  ;;  %v5236_v30 = vpop.eup %5235 }
 0xc85   :  { %v1424_v32 = vadd.f32 1.0, %v5236_v30  ;;  %v5238_v56 = vpop.eup %5237 }
 0xc86   :  { %v1320_v37 = vadd.f32 1.0, %v5238_v56 }
 0xc87   :  { %5239 = vrcp.f32 %v1424_v32 }
 0xc88   :  { %5241 = vrcp.f32 %v1320_v37 }
 0xc91   :  { %v5240_v39 = vpop.eup %5239 }
 0xc92   :  { %v5242_v12 = vpop.eup %5241  ;;  %v1428_v46 = vmul.f32 %v5240_v39, %v6130_v27 }
 0xc93   :  { %v1324_v52 = vmul.f32 %v5242_v12, %v6134_v38 }
 0xcf2   :  { %v1431_v35 = vpop.permute.xlu1 %1430 }
 0xcf3   :  { %v1433_v48 = vmul.f32 %v5240_v39, %v1431_v35 }
 0xcf5   :  { %1435 = vrot.lane.b32.xlu1 %v1433_v48, %s5569_s22 }
 0xcf6   :  { %v1327_v42 = vpop.permute.xlu0 %1326 }
 0xcf7   :  { %v1329_v45 = vmul.f32 %v5242_v12, %v1327_v42 }
 0xcf9   :  { %1331 = vrot.lane.b32.xlu0 %v1329_v45, %s5569_s22 }
 0xd67   :  { %v1436_v51 = vpop.permute.xlu1 %1435 }
 0xd68   :  { %v6170_v47 = vadd.f32 %v1436_v51, %v1428_v46 }
 0xd6a   :  { %5243 = vtanh.f32 %v6170_v47 }
 0xd6b   :  { %v1332_v53 = vpop.permute.xlu0 %1331 }
 0xd6c   :  { %v6174_v49 = vadd.f32 %v1332_v53, %v1324_v52 }
 0xd6e   :  { %5245 = vtanh.f32 %v6174_v49 }
 0xd74   :  { %v5244_v55 = vpop.eup %5243 }
 0xd75   :  { %1441 = vrot.lane.b32.xlu1 %v5244_v55, %s5568_s3 }
 0xd78   :  { %v5246_v58 = vpop.eup %5245 }
 0xd79   :  { %1337 = vrot.lane.b32.xlu0 %v5246_v58, %s5568_s3 }
 0xde7   :  { %v1442_v57 = vpop.permute.xlu1 %1441 }
 0xde8   :  { %v1444_v60 = vmul.f32 %v5240_v39, %v1442_v57 }
 0xdea   :  { %1446 = vrot.lane.b32.xlu0 %v1444_v60, %s5569_s22 }
 0xdeb   :  { %v1338_v62 = vpop.permute.xlu0 %1337 }
 0xdec   :  { %v6180_v63 = vmul.f32 %v5242_v12, %v1338_v62 }
 0xdee   :  { %1449 = vrot.lane.b32.xlu1 %v6180_v63, %s5568_s3 }
 0xe5c   :  { %v1447_v27 = vpop.permute.xlu0 %1446 }
 0xe5d   :  { %4739 = vmatmul.mubr.msk.f32.vlgmr.msra.gmra.mrb[10].mxu1 %vm507_vm9, %v1447_v27 }
 0xe5e   :  { %5034 = vmatpush3.bf16.msra.mxu1 %v5990_v41  ;;  %4757 = vmatprep.mubr.msk.f32.mxu1 %vm5566_vm0, %v5567_v3 }
 0xe5f   :  { %5035 = vmatprep.subr.bf16.mxu1 %v5565_v2 }
 0xe60   :  { %v1450_v0 = vpop.permute.xlu1 %1449 }
 0xe61   :  { %v1452_v4 = vsel %vm507_vm9, %v1447_v27, %v1450_v0 }
 0xe62   :  { %5037 = vmatpush3.bf16.msra.mxu1 %v5996_v44  ;;  %4728 = vmatmul.mubr.msk.f32.vlgmr.msra.gmra.mrb[14].mxu0 %vm617_vm10, %v1452_v4 }
 0xe63   :  { %5038 = vmatprep.subr.bf16.mxu1 %v5565_v2  ;;  %5046 = vmatpush3.bf16.msra.mxu0 %v5788_v15 }
 0xe64   :  { %4768 = vmatprep.mubr.msk.f32.mxu0 %vm5566_vm0, %v5567_v3  ;;  %5047 = vmatprep.subr.bf16.mxu0 %v5565_v2 }
 0xe66   :  { %5040 = vmatpush3.bf16.msra.mxu1 %v6006_v50 }
 0xe67   :  { %5041 = vmatprep.subr.bf16.mxu1 %v5565_v2  ;;  %5049 = vmatpush3.bf16.msra.mxu0 %v5792_v17 }
 0xe68   :  { %5050 = vmatprep.subr.bf16.mxu0 %v5565_v2 }
 0xe6a   :  { %5043 = vmatpush3.bf16.msra.mxu1 %v6017_v54 }
 0xe6b   :  { %5062 = vmatprep.subr.bf16.mxu1 %v5565_v2 }
 0xf30   :  { %v1625_v38 = vpop.f32.mrb[10].mxu1 }
 0xf31   :  { %v1629_v5 = vadd.f32 %v1625_v38, %v5940_v1  ;;  %v4740_v6 = vpop.f32.mrb[11].mxu1 }
 0xf33   :  { %5247 = vtanh.f32 %v1629_v5  ;;  %v4347_v40 = vmul.f32 -1.442695, %v1629_v5 }
 0xf35   :  { %v1522_v7 = vpop.f32.mrb[14].mxu0 }
 0xf36   :  { %v1523_v8 = vadd.f32 %v6042_v59, %v1522_v7  ;;  %v4729_v9 = vpop.f32.mrb[15].mxu0 }
 0xf38   :  { %5249 = vtanh.f32 %v1523_v8  ;;  %v4345_v14 = vmul.f32 -1.442695, %v1523_v8 }
 0xf39   :  { %5251 = vpow2.f32 %v4347_v40 }
 0xf3a   :  { %5253 = vpow2.f32 %v4345_v14 }
 0xf3d   :  { %v5248_v18 = vpop.eup %5247 }
 0xf3e   :  { %1639 = vrot.lane.b32.xlu1 %v5248_v18, %s5568_s3 }
 0xf42   :  { %v5250_v13 = vpop.eup %5249 }
 0xf43   :  { %1535 = vrot.lane.b32.xlu0 %v5250_v13, %s5568_s3  ;;  %v5252_v16 = vpop.eup %5251 }
 0xf44   :  { %v1633_v31 = vadd.f32 1.0, %v5252_v16  ;;  %v5254_v1 = vpop.eup %5253 }
 0xf45   :  { %v1529_v19 = vadd.f32 1.0, %v5254_v1 }
 0xf46   :  { %5255 = vrcp.f32 %v1633_v31 }
 0xf47   :  { %5257 = vrcp.f32 %v1529_v19 }
 0xf50   :  { %v5256_v20 = vpop.eup %5255 }
 0xf51   :  { %v5258_v43 = vpop.eup %5257  ;;  %v1637_v30 = vmul.f32 %v5256_v20, %v6170_v47 }
 0xf52   :  { %v1533_v37 = vmul.f32 %v5258_v43, %v6174_v49 }
 0xfb0   :  { %v1640_v61 = vpop.permute.xlu1 %1639 }
 0xfb1   :  { %v1642_v28 = vmul.f32 %v5256_v20, %v1640_v61 }
 0xfb3   :  { %1644 = vrot.lane.b32.xlu1 %v1642_v28, %s5569_s22 }
 0xfb5   :  { %v1536_v22 = vpop.permute.xlu0 %1535 }
 0xfb6   :  { %v1538_v29 = vmul.f32 %v5258_v43, %v1536_v22 }
 0xfb8   :  { %1540 = vrot.lane.b32.xlu0 %v1538_v29, %s5569_s22 }
0x1025   :  { %v1645_v32 = vpop.permute.xlu1 %1644 }
0x1026   :  { %v6210_v56 = vadd.f32 %v1645_v32, %v1637_v30 }
0x1028   :  { %5259 = vtanh.f32 %v6210_v56 }
0x102a   :  { %v1541_v39 = vpop.permute.xlu0 %1540 }
0x102b   :  { %v6214_v35 = vadd.f32 %v1541_v39, %v1533_v37 }
0x102d   :  { %5261 = vtanh.f32 %v6214_v35 }
0x1032   :  { %v5260_v48 = vpop.eup %5259 }
0x1033   :  { %1650 = vrot.lane.b32.xlu1 %v5260_v48, %s5568_s3 }
0x1037   :  { %v5262_v12 = vpop.eup %5261 }
0x1038   :  { %1546 = vrot.lane.b32.xlu0 %v5262_v12, %s5568_s3 }
0x10a5   :  { %v1651_v42 = vpop.permute.xlu1 %1650 }
0x10a6   :  { %v1653_v45 = vmul.f32 %v5256_v20, %v1651_v42 }
0x10a8   :  { %1655 = vrot.lane.b32.xlu0 %v1653_v45, %s5569_s22 }
0x10aa   :  { %v1547_v46 = vpop.permute.xlu0 %1546 }
0x10ab   :  { %v6220_v51 = vmul.f32 %v5258_v43, %v1547_v46 }
0x10ad   :  { %1658 = vrot.lane.b32.xlu1 %v6220_v51, %s5568_s3 }
0x111a   :  { %v1656_v47 = vpop.permute.xlu0 %1655 }
0x111b   :  { %4769 = vmatmul.mubr.msk.f32.vlgmr.msra.gmra.mrb[16].mxu0 %vm507_vm9, %v1656_v47 }
0x111c   :  { %5052 = vmatpush3.bf16.msra.mxu0 %v5990_v41  ;;  %4787 = vmatprep.mubr.msk.f32.mxu0 %vm5566_vm0, %v5567_v3 }
0x111d   :  { %5053 = vmatprep.subr.bf16.mxu0 %v5565_v2 }
0x111f   :  { %v1659_v52 = vpop.permute.xlu1 %1658 }
0x1120   :  { %5055 = vmatpush3.bf16.msra.mxu0 %v5996_v44  ;;  %v1661_v53 = vsel %vm507_vm9, %v1656_v47, %v1659_v52 }
0x1121   :  { %5056 = vmatprep.subr.bf16.mxu0 %v5565_v2  ;;  %4758 = vmatmul.mubr.msk.f32.vlgmr.msra.gmra.mrb[12].mxu1 %vm617_vm10, %v1661_v53 }
0x1122   :  { %5064 = vmatpush3.bf16.msra.mxu1 %v5788_v15  ;;  %4798 = vmatprep.mubr.msk.f32.mxu1 %vm5566_vm0, %v5567_v3 }
0x1123   :  { %5065 = vmatprep.subr.bf16.mxu1 %v5565_v2 }
0x1124   :  { %5058 = vmatpush3.bf16.msra.mxu0 %v6006_v50 }
0x1125   :  { %5059 = vmatprep.subr.bf16.mxu0 %v5565_v2 }
0x1126   :  { %5067 = vmatpush3.bf16.msra.mxu1 %v5792_v17 }
0x1127   :  { %5068 = vmatprep.subr.bf16.mxu1 %v5565_v2 }
0x1128   :  { %5061 = vmatpush3.bf16.msra.mxu0 %v6017_v54 }
0x1129   :  { %5080 = vmatprep.subr.bf16.mxu0 %v5565_v2 }
0x11ee   :  { %v1834_v49 = vpop.f32.mrb[16].mxu0 }
0x11ef   :  { %v1838_v55 = vadd.f32 %v1834_v49, %v5952_v11  ;;  %v4770_v58 = vpop.f32.mrb[17].mxu0 }
0x11f1   :  { %5263 = vtanh.f32 %v1838_v55  ;;  %v4351_v4 = vmul.f32 -1.442695, %v1838_v55 }
0x11f4   :  { %v1731_v57 = vpop.f32.mrb[12].mxu1 }
0x11f5   :  { %v1732_v60 = vadd.f32 %v6042_v59, %v1731_v57  ;;  %v4759_v62 = vpop.f32.mrb[13].mxu1 }
0x11f7   :  { %5265 = vtanh.f32 %v1732_v60  ;;  %v4349_v38 = vmul.f32 -1.442695, %v1732_v60 }
0x11f8   :  { %5267 = vpow2.f32 %v4351_v4 }
0x11f9   :  { %5269 = vpow2.f32 %v4349_v38 }
0x11fb   :  { %v5264_v27 = vpop.eup %5263 }
0x11fc   :  { %1848 = vrot.lane.b32.xlu1 %v5264_v27, %s5568_s3 }
0x1201   :  { %v5266_v0 = vpop.eup %5265 }
0x1202   :  { %1744 = vrot.lane.b32.xlu0 %v5266_v0, %s5568_s3  ;;  %v5268_v5 = vpop.eup %5267 }
0x1203   :  { %v1842_v6 = vadd.f32 1.0, %v5268_v5  ;;  %v5270_v11 = vpop.eup %5269 }
0x1204   :  { %v1738_v7 = vadd.f32 1.0, %v5270_v11 }
0x1205   :  { %5271 = vrcp.f32 %v1842_v6 }
0x1206   :  { %5273 = vrcp.f32 %v1738_v7 }
0x120f   :  { %v5272_v8 = vpop.eup %5271 }
0x1210   :  { %v5274_v13 = vpop.eup %5273  ;;  %v1846_v16 = vmul.f32 %v5272_v8, %v6210_v56 }
0x1211   :  { %v1742_v19 = vmul.f32 %v5274_v13, %v6214_v35 }
0x126e   :  { %v1849_v9 = vpop.permute.xlu1 %1848 }
0x126f   :  { %v1851_v18 = vmul.f32 %v5272_v8, %v1849_v9 }
0x1271   :  { %1853 = vrot.lane.b32.xlu1 %v1851_v18, %s5569_s22 }
0x1274   :  { %v1745_v40 = vpop.permute.xlu0 %1744 }
0x1275   :  { %v1747_v14 = vmul.f32 %v5274_v13, %v1745_v40 }
0x1277   :  { %1749 = vrot.lane.b32.xlu0 %v1747_v14, %s5569_s22 }
0x12e3   :  { %v1854_v31 = vpop.permute.xlu1 %1853 }
0x12e4   :  { %v6250_v1 = vadd.f32 %v1854_v31, %v1846_v16 }
0x12e6   :  { %5275 = vtanh.f32 %v6250_v1 }
0x12e9   :  { %v1750_v20 = vpop.permute.xlu0 %1749 }
0x12ea   :  { %v6254_v61 = vadd.f32 %v1750_v20, %v1742_v19 }
0x12ec   :  { %5277 = vtanh.f32 %v6254_v61 }
0x12f0   :  { %v5276_v28 = vpop.eup %5275 }
0x12f1   :  { %1859 = vrot.lane.b32.xlu1 %v5276_v28, %s5568_s3 }
0x12f6   :  { %v5278_v43 = vpop.eup %5277 }
0x12f7   :  { %1755 = vrot.lane.b32.xlu0 %v5278_v43, %s5568_s3 }
0x1363   :  { %v1860_v22 = vpop.permute.xlu1 %1859 }
0x1364   :  { %v1862_v29 = vmul.f32 %v5272_v8, %v1860_v22 }
0x1366   :  { %1864 = vrot.lane.b32.xlu0 %v1862_v29, %s5569_s22 }
0x1369   :  { %v1756_v30 = vpop.permute.xlu0 %1755 }
0x136a   :  { %v6260_v32 = vmul.f32 %v5274_v13, %v1756_v30 }
0x136c   :  { %1867 = vrot.lane.b32.xlu1 %v6260_v32, %s5568_s3 }
0x13d8   :  { %v1865_v56 = vpop.permute.xlu0 %1864 }
0x13d9   :  { %4799 = vmatmul.mubr.msk.f32.vlgmr.msra.gmra.mrb[14].mxu1 %vm507_vm9, %v1865_v56 }
0x13da   :  { %5070 = vmatpush3.bf16.msra.mxu1 %v5990_v41  ;;  %4817 = vmatprep.mubr.msk.f32.mxu1 %vm5566_vm0, %v5567_v3 }
0x13db   :  { %5071 = vmatprep.subr.bf16.mxu1 %v5565_v2 }
0x13de   :  { %5073 = vmatpush3.bf16.msra.mxu1 %v5996_v44  ;;  %v1868_v37 = vpop.permute.xlu1 %1867 }
0x13df   :  { %5074 = vmatprep.subr.bf16.mxu1 %v5565_v2  ;;  %v1870_v39 = vsel %vm507_vm9, %v1865_v56, %v1868_v37 }
0x13e0   :  { %4788 = vmatmul.mubr.msk.f32.vlgmr.msra.gmra.mrb[18].mxu0 %vm617_vm10, %v1870_v39 }
0x13e1   :  { %5082 = vmatpush3.bf16.msra.mxu0 %v5788_v15  ;;  %4828 = vmatprep.mubr.msk.f32.mxu0 %vm5566_vm0, %v5567_v3 }
0x13e2   :  { %5083 = vmatprep.subr.bf16.mxu0 %v5565_v2  ;;  %5076 = vmatpush3.bf16.msra.mxu1 %v6006_v50 }
0x13e3   :  { %5077 = vmatprep.subr.bf16.mxu1 %v5565_v2 }
0x13e5   :  { %5085 = vmatpush3.bf16.msra.mxu0 %v5792_v17 }
0x13e6   :  { %5079 = vmatpush3.bf16.msra.mxu1 %v6017_v54  ;;  %5086 = vmatprep.subr.bf16.mxu0 %v5565_v2 }
0x13e7   :  { %5098 = vmatprep.subr.bf16.mxu1 %v5565_v2 }
0x14ac   :  { %v2043_v35 = vpop.f32.mrb[14].mxu1 }
0x14ad   :  { %v2047_v15 = vadd.f32 %v2043_v35, %v5966_v21  ;;  %v4800_v48 = vpop.f32.mrb[15].mxu1 }
0x14af   :  { %5279 = vtanh.f32 %v2047_v15  ;;  %v4355_v47 = vmul.f32 -1.442695, %v2047_v15 }
0x14b3   :  { %v1940_v12 = vpop.f32.mrb[18].mxu0 }
0x14b4   :  { %v1941_v42 = vadd.f32 %v6042_v59, %v1940_v12  ;;  %v4789_v45 = vpop.f32.mrb[19].mxu0 }
0x14b6   :  { %5281 = vtanh.f32 %v1941_v42  ;;  %v4353_v52 = vmul.f32 -1.442695, %v1941_v42 }
0x14b7   :  { %5283 = vpow2.f32 %v4355_v47 }
0x14b8   :  { %5285 = vpow2.f32 %v4353_v52 }
0x14b9   :  { %v5280_v46 = vpop.eup %5279 }
0x14ba   :  { %2057 = vrot.lane.b32.xlu1 %v5280_v46, %s5568_s3 }
0x14c0   :  { %v5282_v17 = vpop.eup %5281 }
0x14c1   :  { %1953 = vrot.lane.b32.xlu0 %v5282_v17, %s5568_s3  ;;  %v5284_v53 = vpop.eup %5283 }
0x14c2   :  { %v2051_v49 = vadd.f32 1.0, %v5284_v53  ;;  %v5286_v21 = vpop.eup %5285 }
0x14c3   :  { %v1947_v55 = vadd.f32 1.0, %v5286_v21 }
0x14c4   :  { %5287 = vrcp.f32 %v2051_v49 }
0x14c5   :  { %5289 = vrcp.f32 %v1947_v55 }
0x14ce   :  { %v5288_v58 = vpop.eup %5287 }
0x14cf   :  { %v5290_v62 = vpop.eup %5289  ;;  %v2055_v4 = vmul.f32 %v5288_v58, %v6250_v1 }
0x14d0   :  { %v1951_v6 = vmul.f32 %v5290_v62, %v6254_v61 }
0x152c   :  { %v2058_v57 = vpop.permute.xlu1 %2057 }
0x152d   :  { %v2060_v60 = vmul.f32 %v5288_v58, %v2058_v57 }
0x152f   :  { %2062 = vrot.lane.b32.xlu1 %v2060_v60, %s5569_s22 }
0x1533   :  { %v1954_v27 = vpop.permute.xlu0 %1953 }
0x1534   :  { %v1956_v0 = vmul.f32 %v5290_v62, %v1954_v27 }
0x1536   :  { %1958 = vrot.lane.b32.xlu0 %v1956_v0, %s5569_s22  ;;  %v5369_v0 = vld [vmem:[#allocation14] ss:$0 sm:$0xff] }
0x15a1   :  { %v2063_v38 = vpop.permute.xlu1 %2062 }
0x15a2   :  { %v2065_v5 = vadd.f32 %v2063_v38, %v2055_v4 }
0x15a4   :  { %5291 = vtanh.f32 %v2065_v5 }
0x15a8   :  { %v1959_v11 = vpop.permute.xlu0 %1958 }
0x15a9   :  { %v1961_v7 = vadd.f32 %v1959_v11, %v1951_v6 }
0x15ab   :  { %5293 = vtanh.f32 %v1961_v7 }
0x15ae   :  { %v5292_v8 = vpop.eup %5291 }
0x15af   :  { %2068 = vrot.lane.b32.xlu1 %v5292_v8, %s5568_s3 }
0x15b5   :  { %v5294_v9 = vpop.eup %5293 }
0x15b6   :  { %1964 = vrot.lane.b32.xlu0 %v5294_v9, %s5568_s3 }
0x1621   :  { %v2069_v18 = vpop.permute.xlu1 %2068 }
0x1622   :  { %v2071_v13 = vmul.f32 %v5288_v58, %v2069_v18 }
0x1624   :  { %2073 = vrot.lane.b32.xlu0 %v2071_v13, %s5569_s22 }
0x1628   :  { %v1965_v40 = vpop.permute.xlu0 %1964 }
0x1629   :  { %v6294_v14 = vmul.f32 %v5290_v62, %v1965_v40 }
0x162b   :  { %2076 = vrot.lane.b32.xlu1 %v6294_v14, %s5568_s3 }
0x1696   :  { %v2074_v16 = vpop.permute.xlu0 %2073 }
0x1697   :  { %4829 = vmatmul.mubr.msk.f32.vlgmr.msra.gmra.mrb[20].mxu0 %vm507_vm9, %v2074_v16 }
0x1698   :  { %5088 = vmatpush3.bf16.msra.mxu0 %v5990_v41  ;;  %4847 = vmatprep.mubr.msk.f32.mxu0 %vm5566_vm0, %v5567_v3 }
0x1699   :  { %5089 = vmatprep.subr.bf16.mxu0 %v5565_v2 }
0x169c   :  { %5091 = vmatpush3.bf16.msra.mxu0 %v5996_v44 }
0x169d   :  { %5092 = vmatprep.subr.bf16.mxu0 %v5565_v2  ;;  %v2077_v31 = vpop.permute.xlu1 %2076 }
0x169e   :  { %v2079_v1 = vsel %vm507_vm9, %v2074_v16, %v2077_v31  ;;  %v5570_v16 = vmov 1966171168  }
0x169f   :  { %4818 = vmatmul.mubr.msk.f32.vlgmr.msra.gmra.mrb[16].mxu1 %vm617_vm10, %v2079_v1  ;;  %v2396_v31 = vunpack.c.l.s4 %v5570_v16 }
0x16a0   :  { %5094 = vmatpush3.bf16.msra.mxu0 %v6006_v50  ;;  %4866 = vmatprep.mubr.msk.f32.mxu1 %vm5566_vm0, %v5567_v3 }
0x16a1   :  { %5095 = vmatprep.subr.bf16.mxu0 %v5565_v2 }
0x16a4   :  { %5097 = vmatpush3.bf16.msra.mxu0 %v6017_v54 }
0x176a   :  { %v2252_v41 = vpop.f32.mrb[20].mxu0 }
0x176b   :  { %v2256_v19 = vadd.f32 %v2252_v41, %v5974_v26  ;;  %v4830_v44 = vpop.f32.mrb[21].mxu0 }
0x176d   :  { %5295 = vtanh.f32 %v2256_v19  ;;  %v4359_v22 = vmul.f32 -1.442695, %v2256_v19  ;;  %v2397_v19 = vunpack.c.0.s8 %v2396_v31 }
0x1772   :  { %v2149_v20 = vpop.f32.mrb[16].mxu1 }
0x1773   :  { %v2150_v61 = vadd.f32 %v6042_v59, %v2149_v20  ;;  %v4819_v28 = vpop.f32.mrb[17].mxu1 }
0x1775   :  { %5297 = vtanh.f32 %v2150_v61  ;;  %v4357_v29 = vmul.f32 -1.442695, %v2150_v61 }
0x1776   :  { %5299 = vpow2.f32 %v4359_v22 }
0x1777   :  { %v5296_v43 = vpop.eup %5295  ;;  %5301 = vpow2.f32 %v4357_v29 }
0x1778   :  { %2266 = vrot.lane.b32.xlu1 %v5296_v43, %s5568_s3 }
0x177f   :  { %v5298_v50 = vpop.eup %5297 }
0x1780   :  { %2162 = vrot.lane.b32.xlu0 %v5298_v50, %s5568_s3  ;;  %v5300_v54 = vpop.eup %5299 }
0x1781   :  { %v2260_v30 = vadd.f32 1.0, %v5300_v54  ;;  %v5302_v26 = vpop.eup %5301 }
0x1782   :  { %v2156_v56 = vadd.f32 1.0, %v5302_v26 }
0x1783   :  { %5303 = vrcp.f32 %v2260_v30 }
0x1784   :  { %5305 = vrcp.f32 %v2156_v56 }
0x178d   :  { %v5304_v37 = vpop.eup %5303 }
0x178e   :  { %v5306_v35 = vpop.eup %5305  ;;  %v2264_v12 = vmul.f32 %v5304_v37, %v2065_v5 }
0x178f   :  { %v2160_v46 = vmul.f32 %v5306_v35, %v1961_v7 }
0x17ea   :  { %v2267_v59 = vpop.permute.xlu1 %2266 }
0x17eb   :  { %v2269_v39 = vmul.f32 %v5304_v37, %v2267_v59 }
0x17ed   :  { %2271 = vrot.lane.b32.xlu1 %v2269_v39, %s5569_s22 }
0x17f2   :  { %v2163_v15 = vpop.permute.xlu0 %2162 }
0x17f3   :  { %v2165_v48 = vmul.f32 %v5306_v35, %v2163_v15 }
0x17f5   :  { %2167 = vrot.lane.b32.xlu0 %v2165_v48, %s5569_s22 }
0x185f   :  { %v2272_v42 = vpop.permute.xlu1 %2271 }
0x1860   :  { %v2274_v45 = vadd.f32 %v2272_v42, %v2264_v12 }
0x1862   :  { %5307 = vtanh.f32 %v2274_v45 }
0x1867   :  { %v2168_v17 = vpop.permute.xlu0 %2167 }
0x1868   :  { %v2170_v47 = vadd.f32 %v2168_v17, %v2160_v46 }
0x186a   :  { %5309 = vtanh.f32 %v2170_v47 }
0x186c   :  { %v5308_v52 = vpop.eup %5307 }
0x186d   :  { %2277 = vrot.lane.b32.xlu1 %v5308_v52, %s5568_s3 }
0x1874   :  { %v5310_v53 = vpop.eup %5309 }
0x1875   :  { %2173 = vrot.lane.b32.xlu0 %v5310_v53, %s5568_s3 }
0x18df   :  { %v2278_v49 = vpop.permute.xlu1 %2277 }
0x18e0   :  { %v2280_v21 = vmul.f32 %v5304_v37, %v2278_v49 }
0x18e2   :  { %2282 = vrot.lane.b32.xlu0 %v2280_v21, %s5569_s22 }
0x18e7   :  { %v2174_v55 = vpop.permute.xlu0 %2173 }
0x18e8   :  { %v6321_v58 = vmul.f32 %v5306_v35, %v2174_v55 }
0x18ea   :  { %2285 = vrot.lane.b32.xlu1 %v6321_v58, %s5568_s3 }
0x1954   :  { %v6325_v57 = vpop.permute.xlu0 %2282 }
0x195c   :  { %v2286_v60 = vpop.permute.xlu1 %2285 }
0x195d   :  { %v2288_v62 = vsel %vm507_vm9, %v6325_v57, %v2286_v60 }
0x195e   :  { %4848 = vmatmul.mubr.msk.f32.vlgmr.msra.gmra.mrb[22].mxu0 %vm617_vm10, %v2288_v62 }
0x1a31   :  { %v2358_v27 = vpop.f32.mrb[22].mxu0 }
0x1a32   :  { %v2359_v4 = vadd.f32 %v5369_v0, %v2358_v27  ;;  %v4849_v38 = vpop.f32.mrb[23].mxu0 }
0x1a34   :  { %5311 = vtanh.f32 %v2359_v4  ;;  %v4361_v6 = vmul.f32 -1.442695, %v2359_v4 }
0x1a36   :  { %5313 = vpow2.f32 %v4361_v6 }
0x1a3e   :  { %v5312_v5 = vpop.eup %5311 }
0x1a3f   :  { %2371 = vrot.lane.b32.xlu0 %v5312_v5, %s5568_s3 }
0x1a40   :  { %v5314_v11 = vpop.eup %5313 }
0x1a41   :  { %v2365_v7 = vadd.f32 1.0, %v5314_v11 }
0x1a43   :  { %5315 = vrcp.f32 %v2365_v7 }
0x1a4d   :  { %v6331_v8 = vpop.eup %5315 }
0x1a4e   :  { %v2369_v13 = vmul.f32 %v6331_v8, %v2170_v47 }
0x1ab1   :  { %v2372_v9 = vpop.permute.xlu0 %2371 }
0x1ab2   :  { %v2374_v18 = vmul.f32 %v6331_v8, %v2372_v9 }
0x1ab4   :  { %2376 = vrot.lane.b32.xlu1 %v2374_v18, %s5569_s22 }
0x1ab8   :  { %716 = vrot.lane.b32.xlu1 %v6059_v36, %s5569_s22 }
0x1abc   :  { %1133 = vrot.lane.b32.xlu1 %v6140_v10, %s5569_s22  ;;  %v6346_v10 = vsub.s32 %v2397_v19, %v5816_v23 }
0x1ac0   :  { %1551 = vrot.lane.b32.xlu1 %v6220_v51, %s5569_s22 }
0x1ac4   :  { %1969 = vrot.lane.b32.xlu1 %v6294_v14, %s5569_s22 }
0x1b26   :  { %v2377_v40 = vpop.permute.xlu1 %2376 }
0x1b27   :  { %v2379_v1 = vadd.f32 %v2377_v40, %v2369_v13 }
0x1b29   :  { %5317 = vtanh.f32 %v2379_v1 }
0x1b2a   :  { %v717_v41 = vpop.permute.xlu1 %716 }
0x1b2b   :  { %719 = vst.msk [vmem:[#allocation3] sm:$0xff] %vm507_vm9, %v717_v41 }
0x1b2e   :  { %v1134_v36 = vpop.permute.xlu1 %1133 }
0x1b2f   :  { %1137 = vst.msk [vmem:[#allocation3 + $0x10] sm:$0xff] %vm507_vm9, %v1134_v36 }
0x1b32   :  { %v2392_v51 = vld [vmem:[#allocation3] sm:$0xff]  ;;  %v1552_v44 = vpop.permute.xlu1 %1551 }
0x1b33   :  { %v5318_v14 = vpop.eup %5317  ;;  %v2394_v20 = vcombine.high %v2392_v51, %v2392_v51  ;;  %v2401_v61 = vrot.slane %v2392_v51, %v6346_v10  ;;  %1555 = vst.msk [vmem:[#allocation3 + $0x20] sm:$0xff] %vm507_vm9, %v1552_v44  ;;  %v3029_v51 = vld [vmem:[#allocation16] sm:$0xff]  ;;  %v3030_v44 = vld [vmem:[#allocation16 + $0x8] sm:$0xff] }
0x1b34   :  { %2382 = vrot.lane.b32.xlu0 %v5318_v14, %s5568_s3  ;;  %v3031_v14 = vld [vmem:[#allocation16 + $0x10] sm:$0xff] }
0x1b35   :  { %v2408_v28 = vrot.slane %v2394_v20, %v6346_v10  ;;  %v2409_v43 = vcombine.high %v2401_v61, %v2401_v61  ;;  %v2417_v50 = vrot.slane %v2401_v61, %v6346_v10  ;;  %v5110_v20 = vpack.c.bf16 %v3030_v44, %v3029_v51  ;;  %v3032_v61 = vld [vmem:[#allocation16 + $0x18] sm:$0xff] }
0x1b36   :  { %v2527_v23 = vld [vmem:[#allocation3 + $0x10] sm:$0xff]  ;;  %v1970_v22 = vpop.permute.xlu1 %1969 }
0x1b37   :  { %v2410_v29 = vcombine.high %v2408_v28, %v2408_v28  ;;  %v2424_v54 = vrot.slane %v2408_v28, %v6346_v10  ;;  %v2431_v30 = vrot.slane %v2409_v43, %v6346_v10  ;;  %v2439_v26 = vcombine.high %v2417_v50, %v2417_v50  ;;  %1973 = vst.msk [vmem:[#allocation3 + $0x30] sm:$0xff] %vm507_vm9, %v1970_v22  ;;  %v2933_v22 = vld [vmem:[#allocation17] sm:$0xff] }
0x1b38   :  { %2452 = vst.msk [vmem:[#allocation4] sm:$0x1] %vm2451_vm11, %v2417_v50  ;;  %v2529_v56 = vcombine.high %v2527_v23, %v2527_v23  ;;  %v2536_v37 = vrot.slane %v2527_v23, %v6346_v10  ;;  %924 = vrot.lane.b32.xlu0 %v6100_v24, %s5569_s22  ;;  %v5114_v28 = vpack.c.bf16 %v3032_v61, %v3031_v14 }
0x1b39   :  { %2453 = vst.msk [vmem:[#allocation4 + $0x8] sm:$0x1] %vm2451_vm11, %v2431_v30  ;;  %2454 = vst.msk [vmem:[#allocation4 + $0x10] sm:$0x1] %vm2451_vm11, %v2439_v26  ;;  %v2441_v59 = vcombine.high %v2431_v30, %v2431_v30  ;;  %v2438_v39 = vrot.slane %v2410_v29, %v6346_v10  ;;  %v2440_v35 = vcombine.high %v2424_v54, %v2424_v54  ;;  %5111 = vmatprep.subr.bf16.mxu0 %v5110_v20  ;;  %v2934_v29 = vld [vmem:[#allocation17 + $0x8] sm:$0xff]  ;;  %v2936_v26 = vld [vmem:[#allocation17 + $0x18] sm:$0xff] }
0x1b3a   :  { %2456 = vst.msk [vmem:[#allocation4 + $0x20] sm:$0x1] %vm2451_vm11, %v2424_v54  ;;  %v2543_v15 = vrot.slane %v2529_v56, %v6346_v10  ;;  %v2544_v48 = vcombine.high %v2536_v37, %v2536_v37  ;;  %v2552_v12 = vrot.slane %v2536_v37, %v6346_v10  ;;  %v2661_v42 = vld [vmem:[#allocation3 + $0x20] sm:$0xff]  ;;  %5113 = vmatpush3.bf16.msra.mxu0 %v5110_v20  ;;  %v2935_v54 = vld [vmem:[#allocation17 + $0x10] sm:$0xff] }
0x1b3b   :  { %v2663_v45 = vcombine.high %v2661_v42, %v2661_v42  ;;  %v2670_v46 = vrot.slane %v2661_v42, %v6346_v10  ;;  %2455 = vst.msk [vmem:[#allocation4 + $0x18] sm:$0x1] %vm2451_vm11, %v2441_v59  ;;  %2457 = vst.msk [vmem:[#allocation4 + $0x28] sm:$0x1] %vm2451_vm11, %v2438_v39  ;;  %v2442_v24 = vcombine.high %v2438_v39, %v2438_v39  ;;  %5115 = vmatprep.subr.bf16.mxu0 %v5114_v28  ;;  %v2937_v37 = vld [vmem:[#allocation17 + $0x20] sm:$0xff]  ;;  %v2938_v59 = vld [vmem:[#allocation17 + $0x28] sm:$0xff] }
0x1b3c   :  { %2458 = vst.msk [vmem:[#allocation4 + $0x30] sm:$0x1] %vm2451_vm11, %v2440_v35  ;;  %v2545_v17 = vcombine.high %v2543_v15, %v2543_v15  ;;  %v2559_v47 = vrot.slane %v2543_v15, %v6346_v10  ;;  %v2566_v52 = vrot.slane %v2544_v48, %v6346_v10  ;;  %v2574_v53 = vcombine.high %v2552_v12, %v2552_v12  ;;  %v2939_v35 = vld [vmem:[#allocation17 + $0x30] sm:$0xff]  ;;  %v2940_v15 = vld [vmem:[#allocation17 + $0x38] sm:$0xff] }
0x1b3d   :  { %1342 = vrot.lane.b32.xlu0 %v6180_v63, %s5569_s22  ;;  %2586 = vst.msk [vmem:[#allocation4 + $0x2] sm:$0x1] %vm2451_vm11, %v2552_v12  ;;  %v2677_v49 = vrot.slane %v2663_v45, %v6346_v10  ;;  %v2678_v21 = vcombine.high %v2670_v46, %v2670_v46  ;;  %v2686_v55 = vrot.slane %v2670_v46, %v6346_v10  ;;  %2459 = vst.msk [vmem:[#allocation4 + $0x38] sm:$0x1] %vm2451_vm11, %v2442_v24  ;;  %v157_v12 = vld [vmem:[#allocation8] sm:$0x3] }
0x1b3e   :  { %v2795_v60 = vld [vmem:[#allocation3 + $0x30] sm:$0xff]  ;;  %2587 = vst.msk [vmem:[#allocation4 + $0xa] sm:$0x1] %vm2451_vm11, %v2566_v52  ;;  %2588 = vst.msk [vmem:[#allocation4 + $0x12] sm:$0x1] %vm2451_vm11, %v2574_v53  ;;  %v2576_v62 = vcombine.high %v2566_v52, %v2566_v52  ;;  %v2573_v27 = vrot.slane %v2545_v17, %v6346_v10  ;;  %v2575_v63 = vcombine.high %v2559_v47, %v2559_v47  ;;  %5117 = vmatpush3.bf16.msra.mxu0 %v5114_v28 }
0x1b3f   :  { %2590 = vst.msk [vmem:[#allocation4 + $0x22] sm:$0x1] %vm2451_vm11, %v2559_v47  ;;  %v2679_v0 = vcombine.high %v2677_v49, %v2677_v49  ;;  %v2693_v4 = vrot.slane %v2677_v49, %v6346_v10  ;;  %v2700_v38 = vrot.slane %v2678_v21, %v6346_v10  ;;  %v2708_v5 = vcombine.high %v2686_v55, %v2686_v55 }
0x1b40   :  { %2720 = vst.msk [vmem:[#allocation4 + $0x4] sm:$0x1] %vm2451_vm11, %v2686_v55  ;;  %v2797_v6 = vcombine.high %v2795_v60, %v2795_v60  ;;  %v2804_v11 = vrot.slane %v2795_v60, %v6346_v10  ;;  %2589 = vst.msk [vmem:[#allocation4 + $0x1a] sm:$0x1] %vm2451_vm11, %v2576_v62  ;;  %v2577_v7 = vcombine.high %v2573_v27, %v2573_v27  ;;  %5130 = vmatprep.subr.bf16.mxu0 %v5565_v2 }
0x1b41   :  { %1760 = vrot.lane.b32.xlu0 %v6260_v32, %s5569_s22  ;;  %2591 = vst.msk [vmem:[#allocation4 + $0x2a] sm:$0x1] %vm2451_vm11, %v2573_v27  ;;  %2592 = vst.msk [vmem:[#allocation4 + $0x32] sm:$0x1] %vm2451_vm11, %v2575_v63  ;;  %v2710_v9 = vcombine.high %v2700_v38, %v2700_v38  ;;  %v2707_v18 = vrot.slane %v2679_v0, %v6346_v10  ;;  %v2709_v13 = vcombine.high %v2693_v4, %v2693_v4 }
0x1b42   :  { %2721 = vst.msk [vmem:[#allocation4 + $0xc] sm:$0x1] %vm2451_vm11, %v2700_v38  ;;  %2722 = vst.msk [vmem:[#allocation4 + $0x14] sm:$0x1] %vm2451_vm11, %v2708_v5  ;;  %v2811_v40 = vrot.slane %v2797_v6, %v6346_v10  ;;  %v2812_v32 = vcombine.high %v2804_v11, %v2804_v11  ;;  %v2820_v16 = vrot.slane %v2804_v11, %v6346_v10  ;;  %v158_v42 = vadd.f32 1e-05, %v157_v12 }
0x1b43   :  { %2724 = vst.msk [vmem:[#allocation4 + $0x24] sm:$0x1] %vm2451_vm11, %v2693_v4  ;;  %2593 = vst.msk [vmem:[#allocation4 + $0x3a] sm:$0x1] %vm2451_vm11, %v2577_v7  ;;  %v2711_v31 = vcombine.high %v2707_v18, %v2707_v18  ;;  %v5099_v30 = vpack.c.bf16 %v2934_v29, %v2933_v22  ;;  %v5102_v56 = vpack.c.bf16 %v2936_v26, %v2935_v54 }
0x1b44   :  { %2723 = vst.msk [vmem:[#allocation4 + $0x1c] sm:$0x1] %vm2451_vm11, %v2710_v9  ;;  %2725 = vst.msk [vmem:[#allocation4 + $0x2c] sm:$0x1] %vm2451_vm11, %v2707_v18  ;;  %v2813_v1 = vcombine.high %v2811_v40, %v2811_v40  ;;  %v2827_v41 = vrot.slane %v2811_v40, %v6346_v10  ;;  %v2834_v19 = vrot.slane %v2812_v32, %v6346_v10  ;;  %5319 = vlog2.f32 %v158_v42 }
0x1b45   :  { %2726 = vst.msk [vmem:[#allocation4 + $0x34] sm:$0x1] %vm2451_vm11, %v2709_v13  ;;  %v2842_v36 = vcombine.high %v2820_v16, %v2820_v16  ;;  %2178 = vrot.lane.b32.xlu0 %v6321_v58, %s5569_s22  ;;  %2854 = vst.msk [vmem:[#allocation4 + $0x6] sm:$0x1] %vm2451_vm11, %v2820_v16  ;;  %5100 = vmatpush3.bf16.msra.mxu1 %v5099_v30  ;;  %v5105_v39 = vpack.c.bf16 %v2938_v59, %v2937_v37 }
0x1b46   :  { %2727 = vst.msk [vmem:[#allocation4 + $0x3c] sm:$0x1] %vm2451_vm11, %v2711_v31  ;;  %2855 = vst.msk [vmem:[#allocation4 + $0xe] sm:$0x1] %vm2451_vm11, %v2834_v19  ;;  %v2844_v43 = vcombine.high %v2834_v19, %v2834_v19  ;;  %v2841_v50 = vrot.slane %v2813_v1, %v6346_v10  ;;  %v2843_v58 = vcombine.high %v2827_v41, %v2827_v41  ;;  %5101 = vmatprep.subr.bf16.mxu1 %v5565_v2 }
0x1b47   :  { %2856 = vst.msk [vmem:[#allocation4 + $0x16] sm:$0x1] %vm2451_vm11, %v2842_v36  ;;  %2858 = vst.msk [vmem:[#allocation4 + $0x26] sm:$0x1] %vm2451_vm11, %v2827_v41  ;;  %v5108_v48 = vpack.c.bf16 %v2940_v15, %v2939_v35 }
0x1b48   :  { %2857 = vst.msk [vmem:[#allocation4 + $0x1e] sm:$0x1] %vm2451_vm11, %v2844_v43  ;;  %2859 = vst.msk [vmem:[#allocation4 + $0x2e] sm:$0x1] %vm2451_vm11, %v2841_v50  ;;  %v2845_v23 = vcombine.high %v2841_v50, %v2841_v50 }
0x1b49   :  { %2860 = vst.msk [vmem:[#allocation4 + $0x36] sm:$0x1] %vm2451_vm11, %v2843_v58  ;;  %5103 = vmatpush3.bf16.msra.mxu1 %v5102_v56 }
0x1b4a   :  { %2861 = vst.msk [vmem:[#allocation4 + $0x3e] sm:$0x1] %vm2451_vm11, %v2845_v23  ;;  %5104 = vmatprep.subr.bf16.mxu1 %v5565_v2 }
0x1b4d   :  { %5106 = vmatpush3.bf16.msra.mxu1 %v5105_v39 }
0x1b4e   :  { %5107 = vmatprep.subr.bf16.mxu1 %v5565_v2  ;;  %v5320_v24 = vpop.eup %5319 }
0x1b4f   :  { %v160_v47 = vmul.f32 0.6931472, %v5320_v24 }
0x1b51   :  { %5109 = vmatpush3.bf16.msra.mxu1 %v5108_v48  ;;  %162 = vst.msk [vmem:[#allocation20] sm:$0x3] %vm161_vm12, %v160_v47 }
0x1b52   :  { %5118 = vmatprep.subr.bf16.mxu1 %v5565_v2 }
0x1b58   :  { %v3271_v55 = vld [vmem:[#allocation20] sm:$0x3] }
0x1b59   :  { %v3277_v63 = vrot.slane %v3271_v55, %v5828_v33  ;;  %v3284_v38 = vrot.slane %v3271_v55, %v5831_v34 }
0x1b5b   :  { %3279 = vbcast.lane.b32.xlu0 %v3277_v63, 256 }
0x1ba6   :  { %v2383_v45 = vpop.permute.xlu0 %2382 }
0x1ba7   :  { %v6422_v46 = vmul.f32 %v6331_v8, %v2383_v45 }
0x1ba9   :  { %2929 = vrot.lane.b32.xlu1 %v6422_v46, %s5568_s3 }
0x1baa   :  { %v925_v17 = vpop.permute.xlu0 %924 }
0x1bab   :  { %928 = vst.msk [vmem:[#allocation3 + $0x8] sm:$0xff] %vm507_vm9, %v925_v17 }
0x1bad   :  { %3286 = vbcast.lane.b32.xlu1 %v3284_v38, 256 }
0x1baf   :  { %v1343_v52 = vpop.permute.xlu0 %1342 }
0x1bb0   :  { %1346 = vst.msk [vmem:[#allocation3 + $0x18] sm:$0xff] %vm507_vm9, %v1343_v52 }
0x1bb2   :  { %v2460_v53 = vld [vmem:[#allocation3 + $0x8] sm:$0xff] }
0x1bb3   :  { %v1761_v49 = vpop.permute.xlu0 %1760  ;;  %v2462_v21 = vcombine.high %v2460_v53, %v2460_v53  ;;  %v2469_v8 = vrot.slane %v2460_v53, %v6346_v10 }
0x1bb4   :  { %1764 = vst.msk [vmem:[#allocation3 + $0x28] sm:$0xff] %vm507_vm9, %v1761_v49 }
0x1bb5   :  { %v2476_v60 = vrot.slane %v2462_v21, %v6346_v10  ;;  %v2477_v62 = vcombine.high %v2469_v8, %v2469_v8  ;;  %v2485_v27 = vrot.slane %v2469_v8, %v6346_v10 }
0x1bb7   :  { %v2594_v0 = vld [vmem:[#allocation3 + $0x18] sm:$0xff]  ;;  %v2179_v4 = vpop.permute.xlu0 %2178  ;;  %v2478_v5 = vcombine.high %v2476_v60, %v2476_v60  ;;  %v2492_v6 = vrot.slane %v2476_v60, %v6346_v10  ;;  %v2499_v11 = vrot.slane %v2477_v62, %v6346_v10  ;;  %v2507_v7 = vcombine.high %v2485_v27, %v2485_v27  ;;  %2519 = vst.msk [vmem:[#allocation4 + $0x1] sm:$0x1] %vm2451_vm11, %v2485_v27 }
0x1bb8   :  { %2182 = vst.msk [vmem:[#allocation3 + $0x38] sm:$0xff] %vm507_vm9, %v2179_v4  ;;  %v2596_v9 = vcombine.high %v2594_v0, %v2594_v0  ;;  %v2603_v18 = vrot.slane %v2594_v0, %v6346_v10 }
0x1bb9   :  { %2520 = vst.msk [vmem:[#allocation4 + $0x9] sm:$0x1] %vm2451_vm11, %v2499_v11  ;;  %2521 = vst.msk [vmem:[#allocation4 + $0x11] sm:$0x1] %vm2451_vm11, %v2507_v7  ;;  %v2509_v13 = vcombine.high %v2499_v11, %v2499_v11  ;;  %v2506_v40 = vrot.slane %v2478_v5, %v6346_v10  ;;  %v2508_v32 = vcombine.high %v2492_v6, %v2492_v6  ;;  %v5571_v7 = vmov 0  }
0x1bba   :  { %2523 = vst.msk [vmem:[#allocation4 + $0x21] sm:$0x1] %vm2451_vm11, %v2492_v6  ;;  %v2610_v16 = vrot.slane %v2596_v9, %v6346_v10  ;;  %v2611_v31 = vcombine.high %v2603_v18, %v2603_v18  ;;  %v2619_v1 = vrot.slane %v2603_v18, %v6346_v10  ;;  %5162 = vset.pattern.permute.xlu0 %v5571_v7 }
0x1bbb   :  { %v2728_v41 = vld [vmem:[#allocation3 + $0x28] sm:$0xff]  ;;  %2522 = vst.msk [vmem:[#allocation4 + $0x19] sm:$0x1] %vm2451_vm11, %v2509_v13  ;;  %2524 = vst.msk [vmem:[#allocation4 + $0x29] sm:$0x1] %vm2451_vm11, %v2506_v40  ;;  %v2510_v51 = vcombine.high %v2506_v40, %v2506_v40  ;;  %5163 = vset.pattern.permute.xlu1 %v5571_v7 }
0x1bbc   :  { %v2730_v19 = vcombine.high %v2728_v41, %v2728_v41  ;;  %v2737_v36 = vrot.slane %v2728_v41, %v6346_v10  ;;  %2525 = vst.msk [vmem:[#allocation4 + $0x31] sm:$0x1] %vm2451_vm11, %v2508_v32  ;;  %v2612_v44 = vcombine.high %v2610_v16, %v2610_v16  ;;  %v2626_v14 = vrot.slane %v2610_v16, %v6346_v10 }
0x1bbd   :  { %v2633_v20 = vrot.slane %v2611_v31, %v6346_v10  ;;  %v2641_v61 = vcombine.high %v2619_v1, %v2619_v1  ;;  %2653 = vst.msk [vmem:[#allocation4 + $0x3] sm:$0x1] %vm2451_vm11, %v2619_v1  ;;  %2526 = vst.msk [vmem:[#allocation4 + $0x39] sm:$0x1] %vm2451_vm11, %v2510_v51 }
0x1bbe   :  { %v2744_v28 = vrot.slane %v2730_v19, %v6346_v10  ;;  %v2745_v43 = vcombine.high %v2737_v36, %v2737_v36  ;;  %v2753_v50 = vrot.slane %v2737_v36, %v6346_v10  ;;  %2657 = vst.msk [vmem:[#allocation4 + $0x23] sm:$0x1] %vm2451_vm11, %v2626_v14  ;;  %v2640_v22 = vrot.slane %v2612_v44, %v6346_v10 }
0x1bbf   :  { %v2862_v58 = vld [vmem:[#allocation3 + $0x38] sm:$0xff]  ;;  %2654 = vst.msk [vmem:[#allocation4 + $0xb] sm:$0x1] %vm2451_vm11, %v2633_v20  ;;  %2655 = vst.msk [vmem:[#allocation4 + $0x13] sm:$0x1] %vm2451_vm11, %v2641_v61  ;;  %v2643_v23 = vcombine.high %v2633_v20, %v2633_v20  ;;  %v2642_v29 = vcombine.high %v2626_v14, %v2626_v14 }
0x1bc0   :  { %v2746_v54 = vcombine.high %v2744_v28, %v2744_v28  ;;  %v2760_v30 = vrot.slane %v2744_v28, %v6346_v10  ;;  %v2767_v26 = vrot.slane %v2745_v43, %v6346_v10  ;;  %v2775_v56 = vcombine.high %v2753_v50, %v2753_v50  ;;  %2787 = vst.msk [vmem:[#allocation4 + $0x5] sm:$0x1] %vm2451_vm11, %v2753_v50  ;;  %v6534_v28 = vld [vmem:[#allocation19] ss:$0 sm:$0xff] }
0x1bc1   :  { %v2864_v37 = vcombine.high %v2862_v58, %v2862_v58  ;;  %v2871_v59 = vrot.slane %v2862_v58, %v6346_v10  ;;  %2656 = vst.msk [vmem:[#allocation4 + $0x1b] sm:$0x1] %vm2451_vm11, %v2643_v23  ;;  %2658 = vst.msk [vmem:[#allocation4 + $0x2b] sm:$0x1] %vm2451_vm11, %v2640_v22  ;;  %v2644_v39 = vcombine.high %v2640_v22, %v2640_v22 }
0x1bc2   :  { %2659 = vst.msk [vmem:[#allocation4 + $0x33] sm:$0x1] %vm2451_vm11, %v2642_v29  ;;  %2788 = vst.msk [vmem:[#allocation4 + $0xd] sm:$0x1] %vm2451_vm11, %v2767_v26  ;;  %v2777_v35 = vcombine.high %v2767_v26, %v2767_v26  ;;  %v2774_v15 = vrot.slane %v2746_v54, %v6346_v10  ;;  %v2776_v48 = vcombine.high %v2760_v30, %v2760_v30 }
0x1bc3   :  { %2789 = vst.msk [vmem:[#allocation4 + $0x15] sm:$0x1] %vm2451_vm11, %v2775_v56  ;;  %2791 = vst.msk [vmem:[#allocation4 + $0x25] sm:$0x1] %vm2451_vm11, %v2760_v30  ;;  %v2878_v12 = vrot.slane %v2864_v37, %v6346_v10  ;;  %v2879_v42 = vcombine.high %v2871_v59, %v2871_v59  ;;  %v2887_v45 = vrot.slane %v2871_v59, %v6346_v10 }
0x1bc4   :  { %2660 = vst.msk [vmem:[#allocation4 + $0x3b] sm:$0x1] %vm2451_vm11, %v2644_v39  ;;  %2790 = vst.msk [vmem:[#allocation4 + $0x1d] sm:$0x1] %vm2451_vm11, %v2777_v35  ;;  %v2778_v24 = vcombine.high %v2774_v15, %v2774_v15 }
0x1bc5   :  { %2792 = vst.msk [vmem:[#allocation4 + $0x2d] sm:$0x1] %vm2451_vm11, %v2774_v15  ;;  %2793 = vst.msk [vmem:[#allocation4 + $0x35] sm:$0x1] %vm2451_vm11, %v2776_v48  ;;  %v2880_v17 = vcombine.high %v2878_v12, %v2878_v12  ;;  %v2894_v47 = vrot.slane %v2878_v12, %v6346_v10  ;;  %v2901_v52 = vrot.slane %v2879_v42, %v6346_v10  ;;  %v6548_v12 = vld [vmem:[%s6770_s10] ss:$0 sm:$0xff] }
0x1bc6   :  { %v2909_v53 = vcombine.high %v2887_v45, %v2887_v45  ;;  %2921 = vst.msk [vmem:[#allocation4 + $0x7] sm:$0x1] %vm2451_vm11, %v2887_v45  ;;  %2794 = vst.msk [vmem:[#allocation4 + $0x3d] sm:$0x1] %vm2451_vm11, %v2778_v24 }
0x1bc7   :  { %2922 = vst.msk [vmem:[#allocation4 + $0xf] sm:$0x1] %vm2451_vm11, %v2901_v52  ;;  %2925 = vst.msk [vmem:[#allocation4 + $0x27] sm:$0x1] %vm2451_vm11, %v2894_v47  ;;  %v2911_v49 = vcombine.high %v2901_v52, %v2901_v52  ;;  %v2908_v21 = vrot.slane %v2880_v17, %v6346_v10  ;;  %v2910_v8 = vcombine.high %v2894_v47, %v2894_v47 }
0x1bc8   :  { %2923 = vst.msk [vmem:[#allocation4 + $0x17] sm:$0x1] %vm2451_vm11, %v2909_v53 }
0x1bc9   :  { %2924 = vst.msk [vmem:[#allocation4 + $0x1f] sm:$0x1] %vm2451_vm11, %v2911_v49  ;;  %2926 = vst.msk [vmem:[#allocation4 + $0x2f] sm:$0x1] %vm2451_vm11, %v2908_v21  ;;  %v2912_v55 = vcombine.high %v2908_v21, %v2908_v21 }
0x1bca   :  { %2927 = vst.msk [vmem:[#allocation4 + $0x37] sm:$0x1] %vm2451_vm11, %v2910_v8 }
0x1bcb   :  { %2928 = vst.msk [vmem:[#allocation4 + $0x3f] sm:$0x1] %vm2451_vm11, %v2912_v55 }
0x1bcd   :  { %v6489_v60 = vld [vmem:[#allocation4] sm:$0xff]  ;;  %v3280_v43 = vpop.permute.xlu0 %3279 }
0x1bce   :  { %4877 = vmatprep.mubr.msk.f32.mxu0 %vm507_vm9, %v6489_v60  ;;  %v6493_v62 = vld [vmem:[#allocation4 + $0x8] sm:$0xff]  ;;  %v6505_v0 = vld [vmem:[#allocation4 + $0x20] sm:$0xff]  ;;  %v3294_v30 = vmul.f32 %v6534_v28, %v3280_v43 }
0x1bcf   :  { %v6495_v27 = vld [vmem:[#allocation4 + $0x10] sm:$0xff]  ;;  %4878 = vmatmul.mubr.msk.f32.vlgmr.msra.gmra.mrb[24].mxu0 %vm507_vm9, %v6493_v62 }
0x1bd0   :  { %4880 = vmatprep.mubr.msk.f32.mxu0 %vm507_vm9, %v6495_v27  ;;  %v6501_v63 = vld [vmem:[#allocation4 + $0x18] sm:$0xff]  ;;  %v6509_v4 = vld [vmem:[#allocation4 + $0x28] sm:$0xff] }
0x1bd1   :  { %v6513_v38 = vld [vmem:[#allocation4 + $0x30] sm:$0xff] }
0x1bd2   :  { %v6517_v5 = vld [vmem:[#allocation4 + $0x38] sm:$0xff] }
0x1bd3   :  { %4881 = vmatmul.mubr.msk.f32.gmra.mrb[26].mxu0 %vm507_vm9, %v6501_v63 }
0x1bd4   :  { %4883 = vmatprep.mubr.msk.f32.mxu0 %vm507_vm9, %v6505_v0 }
0x1bd7   :  { %4884 = vmatmul.mubr.msk.f32.gmra.mrb[28].mxu0 %vm507_vm9, %v6509_v4 }
0x1bd8   :  { %4886 = vmatprep.mubr.msk.f32.mxu0 %vm507_vm9, %v6513_v38 }
0x1bdb   :  { %4887 = vmatmul.mubr.msk.f32.gmra.mrb[30].mxu0 %vm507_vm9, %v6517_v5 }
0x1bdc   :  { %4919 = vmatprep.mubr.msk.f32.mxu0 %vm5566_vm0, %v5567_v3 }
0x1c1b   :  { %v2930_v6 = vpop.permute.xlu1 %2929 }
0x1c1c   :  { %v2932_v11 = vsel %vm507_vm9, %v6325_v57, %v2930_v6  ;;  %v4362_v57 = vld [vmem:[%s6771_s11] ss:$0 sm:$0xff] }
0x1c1d   :  { %4867 = vmatmul.mubr.msk.f32.vlgmr.msra.gmra.mrb[18].mxu1 %vm617_vm10, %v2932_v11 }
0x1c1e   :  { %4897 = vmatprep.mubr.msk.f32.mxu1 %vm5566_vm0, %v5567_v3 }
0x1c1f   :  { %v3287_v50 = vpop.permute.xlu1 %3286 }
0x1c20   :  { %v3295_v26 = vmul.f32 %v6534_v28, %v3287_v50 }
0x1ca2   :  { %v4879_v9 = vpop.f32.mrb[24].mxu0 }
0x1ca3   :  { %v3123_v18 = vpop.f32.mrb[25].mxu0 }
0x1ca6   :  { %v4882_v13 = vpop.f32.mrb[26].mxu0 }
0x1ca7   :  { %v3133_v40 = vpop.f32.mrb[27].mxu0 }
0x1caa   :  { %v4885_v32 = vpop.f32.mrb[28].mxu0 }
0x1cab   :  { %v3143_v16 = vpop.f32.mrb[29].mxu0 }
0x1cae   :  { %v4888_v31 = vpop.f32.mrb[30].mxu0 }
0x1caf   :  { %v3153_v1 = vpop.f32.mrb[31].mxu0 }
0x1cf0   :  { %v3017_v41 = vpop.f32.mrb[18].mxu1 }
0x1cf1   :  { %v3018_v19 = vadd.f32 %v4362_v57, %v3017_v41  ;;  %v4868_v36 = vpop.f32.mrb[19].mxu1 }
0x1cf3   :  { %v3163_v51 = vcombine.high %v3018_v19, %v3018_v19  ;;  %v3170_v44 = vrot.slane %v3018_v19, %v6346_v10 }
0x1cf5   :  { %v3177_v14 = vrot.slane %v3163_v51, %v6346_v10  ;;  %v3178_v20 = vcombine.high %v3170_v44, %v3170_v44  ;;  %v3186_v61 = vrot.slane %v3170_v44, %v6346_v10 }
0x1cf7   :  { %v3179_v58 = vcombine.high %v3177_v14, %v3177_v14  ;;  %v3193_v23 = vrot.slane %v3177_v14, %v6346_v10  ;;  %v3200_v22 = vrot.slane %v3178_v20, %v6346_v10  ;;  %v3208_v29 = vcombine.high %v3186_v61, %v3186_v61 }
0x1cf8   :  { %v3215_v54 = vrot.slane %v3186_v61, %v5828_v33 }
0x1cf9   :  { %v3219_v56 = vrot.slane %v3200_v22, %v5828_v33  ;;  %v3210_v37 = vcombine.high %v3200_v22, %v3200_v22  ;;  %v3223_v59 = vrot.slane %v3208_v29, %v5828_v33  ;;  %v3207_v39 = vrot.slane %v3179_v58, %v6346_v10 }
0x1cfa   :  { %v3252_v35 = vadd.f32 %v3215_v54, %v3123_v18  ;;  %v3231_v15 = vrot.slane %v3193_v23, %v5828_v33  ;;  %v3209_v48 = vcombine.high %v3193_v23, %v3193_v23  ;;  %v6571_v18 = vld [vmem:[%s6772_s12] ss:$0 sm:$0xff] }
0x1cfb   :  { %v3253_v42 = vadd.f32 %v4879_v9, %v3219_v56  ;;  %v3227_v45 = vrot.slane %v3210_v37, %v5828_v33  ;;  %v6551_v24 = vadd.f32 %v3223_v59, %v3133_v40  ;;  %v3235_v17 = vrot.slane %v3207_v39, %v5828_v33 }
0x1cfc   :  { %v3296_v47 = vadd.f32 %v3294_v30, %v3252_v35  ;;  %v6554_v52 = vadd.f32 %v3231_v15, %v3143_v16  ;;  %v3239_v10 = vrot.slane %v3209_v48, %v5828_v33  ;;  %v3211_v53 = vcombine.high %v3207_v39, %v3207_v39 }
0x1cfd   :  { %v3297_v49 = vadd.f32 %v3295_v26, %v3253_v42  ;;  %v6557_v21 = vadd.f32 %v4882_v13, %v3227_v45  ;;  %v6559_v8 = vadd.f32 %v4885_v32, %v3235_v17 }
0x1cfe   :  { %v3304_v55 = vadd.f32 %v6548_v12, %v3296_v47  ;;  %v6562_v6 = vadd.f32 %v3239_v10, %v3153_v1  ;;  %v3243_v11 = vrot.slane %v3211_v53, %v5828_v33  ;;  %v6575_v1 = vld [vmem:[#allocation6] ss:$0 sm:$0xff]  ;;  %v3429_v10 = vld [vmem:[%s6774_s14] sm:$0xff] }
0x1cff   :  { %v3305_v7 = vadd.f32 %v6548_v12, %v3297_v49  ;;  %v3430_v53 = vld [vmem:[%s6774_s14 + $0x8] sm:$0xff]  ;;  %v3431_v49 = vld [vmem:[%s6774_s14 + $0x10] sm:$0xff] }
0x1d00   :  { %5321 = vtanh.f32 %v3304_v55  ;;  %v6566_v9 = vadd.f32 %v4888_v31, %v3243_v11  ;;  %v6599_v55 = vpack.c.bf16 %v3430_v53, %v3429_v10  ;;  %v3432_v11 = vld [vmem:[%s6774_s14 + $0x18] sm:$0xff] }
0x1d01   :  { %5323 = vtanh.f32 %v3305_v7  ;;  %v6605_v7 = vpack.c.bf16 %v3432_v11, %v3431_v49 }
0x1d02   :  { %5120 = vmatpush3.bf16.msra.mxu1 %v6599_v55  ;;  %5132 = vmatpush3.bf16.msra.mxu0 %v6599_v55 }
0x1d03   :  { %5121 = vmatprep.subr.bf16.mxu1 %v5565_v2  ;;  %5133 = vmatprep.subr.bf16.mxu0 %v5565_v2 }
0x1d06   :  { %5123 = vmatpush3.bf16.msra.mxu1 %v6605_v7  ;;  %5135 = vmatpush3.bf16.msra.mxu0 %v6605_v7 }
0x1d07   :  { %5124 = vmatprep.subr.bf16.mxu1 %v5565_v2 }
0x1d0a   :  { %v5322_v13 = vpop.eup %5321 }
0x1d0b   :  { %v5324_v40 = vpop.eup %5323  ;;  %v3314_v32 = vmul.f32 %v5322_v13, %v6571_v18 }
0x1d0c   :  { %v3315_v16 = vmul.f32 %v5324_v40, %v6571_v18 }
0x1d0d   :  { %3316 = vadd.xlane.f32.xlu0 %v3314_v32 }
0x1d0e   :  { %3318 = vadd.xlane.f32.xlu1 %v3315_v16 }
0x1d23   :  { %3327 = vperm.xlu0 %5162, %v6575_v1  }
0x1d9a   :  { %v3317_v31 = vpop.xlane.xlu0 %3316 }
0x1d9b   :  { %v3319_v57 = vpop.xlane.xlu1 %3318 }
0x1da2   :  { %v3328_v41 = vpop.permute.xlu0 %3327 }
0x1da3   :  { %v3330_v19 = vadd.f32 %v3328_v41, %v3317_v31  ;;  %v3331_v36 = vadd.f32 %v3328_v41, %v3319_v57 }
0x1da5   :  { %v3339_v51 = vrot.slane %v3330_v19, %v5819_v25  ;;  %v3343_v44 = vrot.slane %v3331_v36, %v5819_v25 }
0x1da7   :  { %v3344_v14 = vsel %vm282_vm2, %v3343_v44, %v3339_v51 }
0x1da8   :  { %v3346_v20 = vsel %vm161_vm12, %v3344_v14, -inf }
0x1da9   :  { %3347 = vmax.xlane.f32.xlu1 %v3346_v20 }
0x1e36   :  { %v3348_v61 = vpop.xlane.xlu1 %3347 }
0x1e37   :  { %v3353_v43 = vrot.slane %v3348_v61, %v5828_v33  ;;  %v3357_v50 = vrot.slane %v3348_v61, %v5831_v34 }
0x1e39   :  { %v3360_v58 = vsub.f32 %v3330_v19, %v3353_v43  ;;  %v3361_v23 = vsub.f32 %v3331_v36, %v3357_v50 }
0x1e3b   :  { %v3362_v22 = vmul.f32 1.442695, %v3360_v58  ;;  %v3364_v29 = vmul.f32 1.442695, %v3361_v23 }
0x1e3d   :  { %5325 = vpow2.f32 %v3362_v22 }
0x1e3e   :  { %5327 = vpow2.f32 %v3364_v29 }
0x1e47   :  { %v5326_v54 = vpop.eup %5325 }
0x1e48   :  { %3369 = vperm.xlu1 %5163, %v5326_v54   ;;  %v5328_v30 = vpop.eup %5327 }
0x1e4c   :  { %3372 = vperm.xlu1 %5163, %v5328_v30  }
0x1ec7   :  { %v3370_v26 = vpop.permute.xlu1 %3369 }
0x1ec8   :  { %v3377_v37 = vrot.slane %v3370_v26, %v5819_v25 }
0x1ecb   :  { %v3373_v56 = vpop.permute.xlu1 %3372 }
0x1ecc   :  { %v3381_v59 = vrot.slane %v3373_v56, %v5819_v25 }
0x1ece   :  { %v3382_v39 = vsel %vm282_vm2, %v3381_v59, %v3377_v37  ;;  %v6638_v59 = vld [vmem:[#allocation7] ss:$0 sm:$0xff] }
0x1ecf   :  { %v3384_v35 = vsel %vm161_vm12, %v3382_v39, 0.0 }
0x1ed0   :  { %3385 = vadd.xlane.f32.xlu1 %v3384_v35 }
0x1f5d   :  { %v3386_v15 = vpop.xlane.xlu1 %3385 }
0x1f5e   :  { %5329 = vrcp.f32 %v3386_v15 }
0x1f68   :  { %v5330_v48 = vpop.eup %5329 }
0x1f69   :  { %v3392_v42 = vrot.slane %v5330_v48, %v5828_v33  ;;  %v3396_v17 = vrot.slane %v5330_v48, %v5831_v34 }
0x1f6b   :  { %v3399_v45 = vmul.f32 %v5326_v54, %v3392_v42  ;;  %v3400_v47 = vmul.f32 %v5328_v30, %v3396_v17  ;;  %v6634_v30 = vld [vmem:[%s6776_s16] ss:$0 sm:$0xff]  ;;  %s5573_s16 = smov 10  }
0x1f6d   :  { %3405 = vperm.xlu0 %5162, %v3399_v45  }
0x1f71   :  { %3410 = vperm.xlu0 %5162, %v3400_v47  }
0x1fec   :  { %v3406_v13 = vpop.permute.xlu0 %3405 }
0x1fed   :  { %v3413_v40 = vmul.f32 %v3406_v13, %v6489_v60 }
0x1fef   :  { %v3415_v32 = vsel %vm507_vm9, %v3413_v40, 0.0 }
0x1ff0   :  { %v3416_v16 = vrot.slane %v3415_v32, 4  ;;  %v3411_v31 = vpop.permute.xlu0 %3410 }
0x1ff1   :  { %v3414_v57 = vmul.f32 %v3411_v31, %v6493_v62  ;;  %v6628_v62 = vld [vmem:[%s6775_s15] ss:$0 sm:$0xff]  ;;  %s5572_s15 = smov 9  }
0x1ff2   :  { %v3417_v41 = vadd.f32 %v3416_v16, %v3415_v32 }
0x1ff3   :  { %v3422_v19 = vsel %vm507_vm9, %v3414_v57, 0.0 }
0x1ff4   :  { %v3418_v36 = vrot.slane %v3417_v41, 2  ;;  %v3423_v51 = vrot.slane %v3422_v19, 4 }
0x1ff6   :  { %v3419_v44 = vadd.f32 %v3418_v36, %v3417_v41  ;;  %v3424_v14 = vadd.f32 %v3423_v51, %v3422_v19 }
0x1ff8   :  { %v3425_v20 = vrot.slane %v3424_v14, 2  ;;  %v3420_v61 = vrot.slane %v3419_v44, 1 }
0x1ffa   :  { %v3426_v43 = vadd.f32 %v3425_v20, %v3424_v14  ;;  %v3421_v58 = vadd.f32 %v3420_v61, %v3419_v44 }
0x1ffc   :  { %v3427_v50 = vrot.slane %v3426_v43, 1 }
0x1ffe   :  { %v3428_v23 = vadd.f32 %v3427_v50, %v3426_v43 }
0x2000   :  { %v3442_v60 = vsel %vm282_vm2, %v3428_v23, %v3421_v58 }
0x2001   :  { %4898 = vmatmul.mubr.msk.f32.vlgmr.msra.gmra.mrb[20].mxu1 %vm507_vm9, %v3442_v60 }
0x2002   :  { %5126 = vmatpush3.bf16.msra.mxu1 %v6599_v55  ;;  %4908 = vmatprep.mubr.msk.f32.mxu1 %vm5566_vm0, %v5567_v3 }
0x2003   :  { %5127 = vmatprep.subr.bf16.mxu1 %v5565_v2 }
0x2006   :  { %5129 = vmatpush3.bf16.msra.mxu1 %v6605_v7 }
0x2007   :  { %5136 = vmatprep.subr.bf16.mxu1 %v5565_v2 }
0x20d4   :  { %v3511_v22 = vpop.f32.mrb[20].mxu1 }
0x20d5   :  { %v3512_v29 = vadd.f32 %v6628_v62, %v3511_v22  ;;  %v4899_v54 = vpop.f32.mrb[21].mxu1 }
0x20d7   :  { %5331 = vtanh.f32 %v3512_v29 }
0x20e1   :  { %v5332_v26 = vpop.eup %5331 }
0x20e2   :  { %v3523_v56 = vmul.f32 %v5332_v26, %v6634_v30 }
0x20e4   :  { %v3525_v37 = vsel %vm3524_vm13, %v3523_v56, 0.0 }
0x20e5   :  { %3526 = vadd.xlane.f32.xlu0 %v3525_v37 }
0x2172   :  { %v3527_v39 = vpop.xlane.xlu0 %3526 }
0x2173   :  { %v3535_v35 = vadd.f32 %v6638_v59, %v3527_v39 }
0x2175   :  { %3537 = vrot.lane.b32.xlu1 %v3535_v35, %s5558_s26  ;;  %s5574_s26 = smov 11  }
0x21e7   :  { %v3538_v15 = vpop.permute.xlu1 %3537 }
0x21e8   :  { %3541 = vst.msk [vmem:[#allocation20] sm:$0x3] %vm3540_vm14, %v3538_v15 }
0x21ef   :  { %v3542_v48 = vld [vmem:[#allocation20] sm:$0x3] }
0x21f0   :  { %v3557_v42 = vrot.slane %v3542_v48, %v5831_v34  ;;  %v3549_v45 = vrot.slane %v3542_v48, %v5828_v33 }
0x21f2   :  { %3560 = vbcast.lane.b32.xlu1 %v3557_v42, 257  ;;  %3552 = vbcast.lane.b32.xlu0 %v3549_v45, 257 }
0x2264   :  { %v3561_v17 = vpop.permute.xlu1 %3560  ;;  %v3553_v47 = vpop.permute.xlu0 %3552 }
0x2265   :  { %v3563_v10 = vmul.f32 %v6534_v28, %v3561_v17  ;;  %v3562_v53 = vmul.f32 %v6534_v28, %v3553_v47 }
0x2267   :  { %v3565_v49 = vadd.f32 %v3563_v10, %v6557_v21  ;;  %v3564_v11 = vadd.f32 %v3562_v53, %v6551_v24 }
0x2269   :  { %v3567_v13 = vadd.f32 %v6548_v12, %v3565_v49  ;;  %v3566_v40 = vadd.f32 %v6548_v12, %v3564_v11 }
0x226b   :  { %5333 = vtanh.f32 %v3567_v13 }
0x226c   :  { %5335 = vtanh.f32 %v3566_v40 }
0x2275   :  { %v5334_v32 = vpop.eup %5333 }
0x2276   :  { %v5336_v16 = vpop.eup %5335  ;;  %v3571_v31 = vmul.f32 %v5334_v32, %v6571_v18 }
0x2277   :  { %v3570_v57 = vmul.f32 %v5336_v16, %v6571_v18 }
0x2278   :  { %3574 = vadd.xlane.f32.xlu0 %v3571_v31 }
0x2279   :  { %3572 = vadd.xlane.f32.xlu1 %v3570_v57 }
0x228a   :  { %3583 = vperm.xlu1 %5163, %v6575_v1  }
0x2305   :  { %v3575_v21 = vpop.xlane.xlu0 %3574 }
0x2306   :  { %v3573_v41 = vpop.xlane.xlu1 %3572 }
0x230a   :  { %v3584_v19 = vpop.permute.xlu1 %3583 }
0x230b   :  { %v3586_v24 = vadd.f32 %v3584_v19, %v3573_v41  ;;  %v3587_v36 = vadd.f32 %v3584_v19, %v3575_v21 }
0x230d   :  { %v3593_v51 = vrot.slane %v3586_v24, %v5819_v25  ;;  %v3597_v44 = vrot.slane %v3587_v36, %v5819_v25 }
0x230f   :  { %v3598_v14 = vsel %vm282_vm2, %v3597_v44, %v3593_v51 }
0x2310   :  { %v3600_v20 = vsel %vm161_vm12, %v3598_v14, -inf }
0x2311   :  { %3601 = vmax.xlane.f32.xlu0 %v3600_v20 }
0x239e   :  { %v3602_v61 = vpop.xlane.xlu0 %3601 }
0x239f   :  { %v3607_v43 = vrot.slane %v3602_v61, %v5828_v33  ;;  %v3611_v50 = vrot.slane %v3602_v61, %v5831_v34 }
0x23a1   :  { %v3614_v58 = vsub.f32 %v3586_v24, %v3607_v43  ;;  %v3615_v23 = vsub.f32 %v3587_v36, %v3611_v50 }
0x23a3   :  { %v3616_v60 = vmul.f32 1.442695, %v3614_v58  ;;  %v3618_v22 = vmul.f32 1.442695, %v3615_v23 }
0x23a5   :  { %5337 = vpow2.f32 %v3616_v60 }
0x23a6   :  { %5339 = vpow2.f32 %v3618_v22 }
0x23af   :  { %v5338_v29 = vpop.eup %5337 }
0x23b0   :  { %v5340_v54 = vpop.eup %5339  ;;  %3623 = vperm.xlu0 %5162, %v5338_v29  }
0x23b1   :  { %3626 = vperm.xlu1 %5163, %v5340_v54  }
0x242f   :  { %v3624_v26 = vpop.permute.xlu0 %3623 }
0x2430   :  { %v3627_v56 = vpop.permute.xlu1 %3626  ;;  %v3631_v37 = vrot.slane %v3624_v26, %v5819_v25 }
0x2431   :  { %v3635_v39 = vrot.slane %v3627_v56, %v5819_v25 }
0x2433   :  { %v3636_v35 = vsel %vm282_vm2, %v3635_v39, %v3631_v37 }
0x2434   :  { %v3638_v15 = vsel %vm161_vm12, %v3636_v35, 0.0 }
0x2435   :  { %3639 = vadd.xlane.f32.xlu1 %v3638_v15 }
0x24c2   :  { %v3640_v48 = vpop.xlane.xlu1 %3639 }
0x24c3   :  { %5341 = vrcp.f32 %v3640_v48 }
0x24cd   :  { %v5342_v42 = vpop.eup %5341 }
0x24ce   :  { %v3646_v45 = vrot.slane %v5342_v42, %v5828_v33  ;;  %v3650_v47 = vrot.slane %v5342_v42, %v5831_v34 }
0x24d0   :  { %v3653_v17 = vmul.f32 %v5338_v29, %v3646_v45  ;;  %v3654_v10 = vmul.f32 %v5340_v54, %v3650_v47 }
0x24d2   :  { %3660 = vperm.xlu0 %5162, %v3653_v17  }
0x24d6   :  { %3665 = vperm.xlu0 %5162, %v3654_v10  }
0x2551   :  { %v3661_v53 = vpop.permute.xlu0 %3660 }
0x2552   :  { %v3668_v49 = vmul.f32 %v3661_v53, %v6495_v27 }
0x2554   :  { %v3670_v11 = vsel %vm507_vm9, %v3668_v49, 0.0 }
0x2555   :  { %v3671_v13 = vrot.slane %v3670_v11, 4  ;;  %v3666_v40 = vpop.permute.xlu0 %3665 }
0x2556   :  { %v3669_v32 = vmul.f32 %v3666_v40, %v6501_v63 }
0x2557   :  { %v3672_v16 = vadd.f32 %v3671_v13, %v3670_v11 }
0x2558   :  { %v3677_v31 = vsel %vm507_vm9, %v3669_v32, 0.0 }
0x2559   :  { %v3673_v57 = vrot.slane %v3672_v16, 2  ;;  %v3678_v41 = vrot.slane %v3677_v31, 4 }
0x255b   :  { %v3674_v21 = vadd.f32 %v3673_v57, %v3672_v16  ;;  %v3679_v19 = vadd.f32 %v3678_v41, %v3677_v31 }
0x255d   :  { %v3680_v24 = vrot.slane %v3679_v19, 2  ;;  %v3675_v36 = vrot.slane %v3674_v21, 1 }
0x255f   :  { %v3681_v51 = vadd.f32 %v3680_v24, %v3679_v19  ;;  %v3676_v14 = vadd.f32 %v3675_v36, %v3674_v21 }
0x2561   :  { %v3682_v44 = vrot.slane %v3681_v51, 1 }
0x2563   :  { %v3683_v20 = vadd.f32 %v3682_v44, %v3681_v51 }
0x2565   :  { %v3697_v27 = vsel %vm282_vm2, %v3683_v20, %v3676_v14 }
0x2566   :  { %4909 = vmatmul.mubr.msk.f32.vlgmr.msra.gmra.mrb[22].mxu1 %vm507_vm9, %v3697_v27 }
0x2567   :  { %5138 = vmatpush3.bf16.msra.mxu1 %v6599_v55  ;;  %4930 = vmatprep.mubr.msk.f32.mxu1 %vm5566_vm0, %v5567_v3  ;;  %vm4048_vm0 = vcmask 83024  }
0x2568   :  { %5139 = vmatprep.subr.bf16.mxu1 %v5565_v2 }
0x256b   :  { %5141 = vmatpush3.bf16.msra.mxu1 %v6605_v7 }
0x2639   :  { %v3766_v63 = vpop.f32.mrb[22].mxu1 }
0x263a   :  { %v3767_v61 = vadd.f32 %v6628_v62, %v3766_v63  ;;  %v4910_v43 = vpop.f32.mrb[23].mxu1 }
0x263c   :  { %5343 = vtanh.f32 %v3767_v61 }
0x2646   :  { %v5344_v50 = vpop.eup %5343 }
0x2647   :  { %v3778_v58 = vmul.f32 %v5344_v50, %v6634_v30 }
0x2649   :  { %v3779_v23 = vsel %vm3524_vm13, %v3778_v58, 0.0 }
0x264a   :  { %3780 = vadd.xlane.f32.xlu0 %v3779_v23 }
0x26d7   :  { %v3781_v60 = vpop.xlane.xlu0 %3780 }
0x26d8   :  { %v3789_v55 = vadd.f32 %v6638_v59, %v3781_v60 }
0x26da   :  { %3791 = vrot.lane.b32.xlu1 %v3789_v55, %s5572_s15 }
0x274c   :  { %v3792_v2 = vpop.permute.xlu1 %3791 }
0x274d   :  { %3795 = vst.msk [vmem:[#allocation20] sm:$0x3] %vm3794_vm15, %v3792_v2 }
0x2754   :  { %v3796_v3 = vld [vmem:[#allocation20] sm:$0x3] }
0x2755   :  { %v3811_v7 = vrot.slane %v3796_v3, %v5831_v34  ;;  %v3803_v22 = vrot.slane %v3796_v3, %v5828_v33 }
0x2757   :  { %3814 = vbcast.lane.b32.xlu0 %v3811_v7, 258  ;;  %3806 = vbcast.lane.b32.xlu1 %v3803_v22, 258 }
0x27c9   :  { %v3815_v29 = vpop.permute.xlu0 %3814  ;;  %v3807_v54 = vpop.permute.xlu1 %3806 }
0x27ca   :  { %v3817_v26 = vmul.f32 %v6534_v28, %v3815_v29  ;;  %v3816_v56 = vmul.f32 %v6534_v28, %v3807_v54 }
0x27cc   :  { %v3819_v37 = vadd.f32 %v3817_v26, %v6559_v8  ;;  %v3818_v39 = vadd.f32 %v3816_v56, %v6554_v52 }
0x27ce   :  { %v3821_v35 = vadd.f32 %v6548_v12, %v3819_v37  ;;  %v3820_v15 = vadd.f32 %v6548_v12, %v3818_v39 }
0x27d0   :  { %5345 = vtanh.f32 %v3821_v35 }
0x27d1   :  { %5347 = vtanh.f32 %v3820_v15 }
0x27da   :  { %v5346_v48 = vpop.eup %5345 }
0x27db   :  { %v5348_v42 = vpop.eup %5347  ;;  %v3825_v45 = vmul.f32 %v5346_v48, %v6571_v18 }
0x27dc   :  { %v3824_v17 = vmul.f32 %v5348_v42, %v6571_v18 }
0x27dd   :  { %3828 = vadd.xlane.f32.xlu0 %v3825_v45 }
0x27de   :  { %3826 = vadd.xlane.f32.xlu1 %v3824_v17 }
0x27ef   :  { %3837 = vperm.xlu1 %5163, %v6575_v1  }
0x286a   :  { %v3829_v8 = vpop.xlane.xlu0 %3828 }
0x286b   :  { %v3827_v47 = vpop.xlane.xlu1 %3826 }
0x286f   :  { %v3838_v10 = vpop.permute.xlu1 %3837 }
0x2870   :  { %v3840_v52 = vadd.f32 %v3838_v10, %v3827_v47  ;;  %v3841_v53 = vadd.f32 %v3838_v10, %v3829_v8 }
0x2872   :  { %v3847_v49 = vrot.slane %v3840_v52, %v5819_v25  ;;  %v3851_v11 = vrot.slane %v3841_v53, %v5819_v25 }
0x2874   :  { %v3852_v13 = vsel %vm282_vm2, %v3851_v11, %v3847_v49 }
0x2875   :  { %v3854_v40 = vsel %vm161_vm12, %v3852_v13, -inf }
0x2876   :  { %3855 = vmax.xlane.f32.xlu0 %v3854_v40 }
0x2903   :  { %v3856_v32 = vpop.xlane.xlu0 %3855 }
0x2904   :  { %v3861_v16 = vrot.slane %v3856_v32, %v5828_v33  ;;  %v3865_v31 = vrot.slane %v3856_v32, %v5831_v34 }
0x2906   :  { %v3868_v57 = vsub.f32 %v3840_v52, %v3861_v16  ;;  %v3869_v41 = vsub.f32 %v3841_v53, %v3865_v31 }
0x2908   :  { %v3870_v21 = vmul.f32 1.442695, %v3868_v57  ;;  %v3872_v19 = vmul.f32 1.442695, %v3869_v41 }
0x290a   :  { %5349 = vpow2.f32 %v3870_v21 }
0x290b   :  { %5351 = vpow2.f32 %v3872_v19 }
0x2914   :  { %v5350_v24 = vpop.eup %5349 }
0x2915   :  { %v5352_v36 = vpop.eup %5351  ;;  %3877 = vperm.xlu1 %5163, %v5350_v24  }
0x2916   :  { %3880 = vperm.xlu0 %5162, %v5352_v36  }
0x2994   :  { %v3878_v51 = vpop.permute.xlu1 %3877 }
0x2995   :  { %v3881_v44 = vpop.permute.xlu0 %3880  ;;  %v3885_v14 = vrot.slane %v3878_v51, %v5819_v25 }
0x2996   :  { %v3889_v20 = vrot.slane %v3881_v44, %v5819_v25 }
0x2998   :  { %v3890_v27 = vsel %vm282_vm2, %v3889_v20, %v3885_v14 }
0x2999   :  { %v3892_v63 = vsel %vm161_vm12, %v3890_v27, 0.0 }
0x299a   :  { %3893 = vadd.xlane.f32.xlu1 %v3892_v63 }
0x2a27   :  { %v3894_v61 = vpop.xlane.xlu1 %3893 }
0x2a28   :  { %5353 = vrcp.f32 %v3894_v61 }
0x2a32   :  { %v5354_v43 = vpop.eup %5353 }
0x2a33   :  { %v3900_v50 = vrot.slane %v5354_v43, %v5828_v33  ;;  %v3904_v23 = vrot.slane %v5354_v43, %v5831_v34 }
0x2a35   :  { %v3907_v58 = vmul.f32 %v5350_v24, %v3900_v50  ;;  %v3908_v60 = vmul.f32 %v5352_v36, %v3904_v23 }
0x2a37   :  { %3914 = vperm.xlu0 %5162, %v3907_v58  }
0x2a3b   :  { %3919 = vperm.xlu0 %5162, %v3908_v60  }
0x2ab6   :  { %v3915_v55 = vpop.permute.xlu0 %3914 }
0x2ab7   :  { %v3922_v2 = vmul.f32 %v3915_v55, %v6505_v0 }
0x2ab9   :  { %v3924_v3 = vsel %vm507_vm9, %v3922_v2, 0.0 }
0x2aba   :  { %v3925_v7 = vrot.slane %v3924_v3, 4  ;;  %v3920_v22 = vpop.permute.xlu0 %3919 }
0x2abb   :  { %v3923_v29 = vmul.f32 %v3920_v22, %v6509_v4 }
0x2abc   :  { %v3926_v54 = vadd.f32 %v3925_v7, %v3924_v3 }
0x2abd   :  { %v3931_v26 = vsel %vm507_vm9, %v3923_v29, 0.0 }
0x2abe   :  { %v3927_v56 = vrot.slane %v3926_v54, 2  ;;  %v3932_v37 = vrot.slane %v3931_v26, 4 }
0x2ac0   :  { %v3928_v39 = vadd.f32 %v3927_v56, %v3926_v54  ;;  %v3933_v35 = vadd.f32 %v3932_v37, %v3931_v26 }
0x2ac2   :  { %v3934_v15 = vrot.slane %v3933_v35, 2  ;;  %v3929_v48 = vrot.slane %v3928_v39, 1 }
0x2ac4   :  { %v3935_v42 = vadd.f32 %v3934_v15, %v3933_v35  ;;  %v3930_v17 = vadd.f32 %v3929_v48, %v3928_v39 }
0x2ac6   :  { %v3936_v45 = vrot.slane %v3935_v42, 1 }
0x2ac8   :  { %v3937_v47 = vadd.f32 %v3936_v45, %v3935_v42 }
0x2aca   :  { %v3951_v0 = vsel %vm282_vm2, %v3937_v47, %v3930_v17 }
0x2acb   :  { %4920 = vmatmul.mubr.msk.f32.vlgmr.msra.gmra.mrb[32].mxu0 %vm507_vm9, %v3951_v0 }
0x2b9e   :  { %v4020_v8 = vpop.f32.mrb[32].mxu0 }
0x2b9f   :  { %v4021_v4 = vadd.f32 %v6628_v62, %v4020_v8  ;;  %v4921_v10 = vpop.f32.mrb[33].mxu0 }
0x2ba1   :  { %5355 = vtanh.f32 %v4021_v4 }
0x2bab   :  { %v5356_v52 = vpop.eup %5355 }
0x2bac   :  { %v4032_v53 = vmul.f32 %v5356_v52, %v6634_v30 }
0x2bae   :  { %v4033_v49 = vsel %vm3524_vm13, %v4032_v53, 0.0 }
0x2baf   :  { %4034 = vadd.xlane.f32.xlu0 %v4033_v49 }
0x2c3c   :  { %v4035_v11 = vpop.xlane.xlu0 %4034 }
0x2c3d   :  { %v4043_v13 = vadd.f32 %v6638_v59, %v4035_v11 }
0x2c3f   :  { %4045 = vrot.lane.b32.xlu1 %v4043_v13, %s5573_s16 }
0x2cb1   :  { %v4046_v40 = vpop.permute.xlu1 %4045 }
0x2cb2   :  { %4049 = vst.msk [vmem:[#allocation20] sm:$0x3] %vm4048_vm0, %v4046_v40 }
0x2cb9   :  { %v4050_v32 = vld [vmem:[#allocation20] sm:$0x3] }
0x2cba   :  { %v4057_v16 = vrot.slane %v4050_v32, %v5828_v33  ;;  %v4065_v31 = vrot.slane %v4050_v32, %v5831_v34 }
0x2cbc   :  { %4060 = vbcast.lane.b32.xlu1 %v4057_v16, 259 }
0x2cc0   :  { %4068 = vbcast.lane.b32.xlu1 %v4065_v31, 259 }
0x2d2e   :  { %v4061_v57 = vpop.permute.xlu1 %4060 }
0x2d2f   :  { %v4070_v41 = vmul.f32 %v6534_v28, %v4061_v57 }
0x2d31   :  { %v4072_v21 = vadd.f32 %v4070_v41, %v6562_v6 }
0x2d32   :  { %v4069_v19 = vpop.permute.xlu1 %4068 }
0x2d33   :  { %v4074_v24 = vadd.f32 %v6548_v12, %v4072_v21  ;;  %v4071_v36 = vmul.f32 %v6534_v28, %v4069_v19 }
0x2d35   :  { %5357 = vtanh.f32 %v4074_v24  ;;  %v4073_v51 = vadd.f32 %v4071_v36, %v6566_v9 }
0x2d37   :  { %v4075_v44 = vadd.f32 %v6548_v12, %v4073_v51 }
0x2d39   :  { %5359 = vtanh.f32 %v4075_v44 }
0x2d3f   :  { %v5358_v14 = vpop.eup %5357 }
0x2d40   :  { %v4078_v20 = vmul.f32 %v5358_v14, %v6571_v18 }
0x2d42   :  { %4080 = vadd.xlane.f32.xlu0 %v4078_v20 }
0x2d43   :  { %v5360_v27 = vpop.eup %5359 }
0x2d44   :  { %v4079_v63 = vmul.f32 %v5360_v27, %v6571_v18 }
0x2d46   :  { %4082 = vadd.xlane.f32.xlu1 %v4079_v63 }
0x2d58   :  { %4091 = vperm.xlu0 %5162, %v6575_v1  }
0x2dcf   :  { %v4081_v6 = vpop.xlane.xlu0 %4080 }
0x2dd3   :  { %v4083_v61 = vpop.xlane.xlu1 %4082 }
0x2dd7   :  { %v4092_v43 = vpop.permute.xlu0 %4091 }
0x2dd8   :  { %v4094_v28 = vadd.f32 %v4092_v43, %v4081_v6  ;;  %v4095_v50 = vadd.f32 %v4092_v43, %v4083_v61 }
0x2dda   :  { %v4101_v9 = vrot.slane %v4094_v28, %v5819_v25  ;;  %v4105_v12 = vrot.slane %v4095_v50, %v5819_v25 }
0x2ddc   :  { %v4106_v58 = vsel %vm282_vm2, %v4105_v12, %v4101_v9 }
0x2ddd   :  { %v4108_v23 = vsel %vm161_vm12, %v4106_v58, -inf }
0x2dde   :  { %4109 = vmax.xlane.f32.xlu0 %v4108_v23 }
0x2e6b   :  { %v4110_v60 = vpop.xlane.xlu0 %4109 }
0x2e6c   :  { %v4115_v18 = vrot.slane %v4110_v60, %v5828_v33  ;;  %v4119_v55 = vrot.slane %v4110_v60, %v5831_v34 }
0x2e6e   :  { %v4122_v1 = vsub.f32 %v4094_v28, %v4115_v18  ;;  %v4123_v2 = vsub.f32 %v4095_v50, %v4119_v55 }
0x2e70   :  { %v4124_v3 = vmul.f32 1.442695, %v4122_v1  ;;  %v4126_v7 = vmul.f32 1.442695, %v4123_v2 }
0x2e72   :  { %5361 = vpow2.f32 %v4124_v3 }
0x2e73   :  { %5363 = vpow2.f32 %v4126_v7 }
0x2e7c   :  { %v5362_v22 = vpop.eup %5361 }
0x2e7d   :  { %4131 = vperm.xlu1 %5163, %v5362_v22   ;;  %v5364_v29 = vpop.eup %5363 }
0x2e81   :  { %4134 = vperm.xlu1 %5163, %v5364_v29  }
0x2efc   :  { %v4132_v54 = vpop.permute.xlu1 %4131 }
0x2efd   :  { %v4139_v56 = vrot.slane %v4132_v54, %v5819_v25 }
0x2f00   :  { %v4135_v26 = vpop.permute.xlu1 %4134 }
0x2f01   :  { %v4143_v37 = vrot.slane %v4135_v26, %v5819_v25 }
0x2f03   :  { %v4144_v39 = vsel %vm282_vm2, %v4143_v37, %v4139_v56 }
0x2f04   :  { %v4146_v35 = vsel %vm161_vm12, %v4144_v39, 0.0 }
0x2f05   :  { %4147 = vadd.xlane.f32.xlu0 %v4146_v35 }
0x2f92   :  { %v4148_v15 = vpop.xlane.xlu0 %4147 }
0x2f93   :  { %5365 = vrcp.f32 %v4148_v15 }
0x2f9d   :  { %v5366_v48 = vpop.eup %5365 }
0x2f9e   :  { %v4158_v42 = vrot.slane %v5366_v48, %v5831_v34  ;;  %v4154_v45 = vrot.slane %v5366_v48, %v5828_v33 }
0x2fa0   :  { %v4162_v17 = vmul.f32 %v5364_v29, %v4158_v42  ;;  %v4161_v47 = vmul.f32 %v5362_v22, %v4154_v45 }
0x2fa2   :  { %4173 = vperm.xlu0 %5162, %v4162_v17   ;;  %4168 = vperm.xlu1 %5163, %v4161_v47  }
0x3021   :  { %v4174_v0 = vpop.permute.xlu0 %4173  ;;  %v4169_v8 = vpop.permute.xlu1 %4168 }
0x3022   :  { %v4177_v25 = vmul.f32 %v4174_v0, %v6517_v5  ;;  %v4176_v4 = vmul.f32 %v4169_v8, %v6513_v38 }
0x3024   :  { %v4185_v10 = vsel %vm507_vm9, %v4177_v25, 0.0  ;;  %v4178_v52 = vsel %vm507_vm9, %v4176_v4, 0.0 }
0x3025   :  { %v4186_v53 = vrot.slane %v4185_v10, 4  ;;  %v4179_v49 = vrot.slane %v4178_v52, 4 }
0x3027   :  { %v4187_v11 = vadd.f32 %v4186_v53, %v4185_v10  ;;  %v4180_v34 = vadd.f32 %v4179_v49, %v4178_v52 }
0x3029   :  { %v4188_v13 = vrot.slane %v4187_v11, 2  ;;  %v4181_v33 = vrot.slane %v4180_v34, 2 }
0x302b   :  { %v4189_v40 = vadd.f32 %v4188_v13, %v4187_v11  ;;  %v4182_v32 = vadd.f32 %v4181_v33, %v4180_v34 }
0x302d   :  { %v4190_v16 = vrot.slane %v4189_v40, 1  ;;  %v4183_v31 = vrot.slane %v4182_v32, 1 }
0x302f   :  { %v4191_v57 = vadd.f32 %v4190_v16, %v4189_v40  ;;  %v4184_v41 = vadd.f32 %v4183_v31, %v4182_v32 }
0x3031   :  { %v4205_v5 = vsel %vm282_vm2, %v4191_v57, %v4184_v41 }
0x3032   :  { %4931 = vmatmul.mubr.msk.f32.vlgmr.msra.gmra.mrb[24].mxu1 %vm507_vm9, %v4205_v5 }
0x3105   :  { %v4274_v38 = vpop.f32.mrb[24].mxu1 }
0x3106   :  { %v4275_v21 = vadd.f32 %v6628_v62, %v4274_v38  ;;  %v4932_v19 = vpop.f32.mrb[25].mxu1 }
0x3108   :  { %5367 = vtanh.f32 %v4275_v21 }
0x3112   :  { %v5368_v24 = vpop.eup %5367 }
0x3113   :  { %v4286_v36 = vmul.f32 %v5368_v24, %v6634_v30 }
0x3115   :  { %v4287_v51 = vsel %vm3524_vm13, %v4286_v36, 0.0 }
0x3116   :  { %4288 = vadd.xlane.f32.xlu1 %v4287_v51 }
0x31a3   :  { %v4289_v44 = vpop.xlane.xlu1 %4288 }
0x31a4   :  { %v4297_v14 = vadd.f32 %v6638_v59, %v4289_v44 }
0x31a6   :  { %4299 = vrot.lane.b32.xlu0 %v4297_v14, %s5574_s26 }
0x31aa   :  { %2387 = vrot.lane.b32.xlu0 %v6422_v46, %s5569_s22 }
0x3218   :  { %v4300_v62 = vpop.permute.xlu0 %4299 }
0x3219   :  { %4303 = vst.msk [vmem:[#allocation20] sm:$0x3] %vm4302_vm1, %v4300_v62 }
0x321a   :  { %5535 = shalt.err (!%p5532_p4)
}
0x321b   :  { %s5536_s24 = scalar_lea.hbm %s6777_s18, 32 }
0x321c   :  { %p5537_p5 = scmp.ne.s32.totalorder %s6777_s18, %s5536_s24  ;;  %p5540_p6 = scmp.lt.u32.totalorder %s5536_s24, %s6777_s18 }
0x321e   :  { %p5542_p7 = pnand %p5540_p6, %p5537_p5 }
0x3220   :  { %5545 = shalt.err (!%p5542_p7)
}
0x3221   :  { %4313 = dma.vmem_to_hbm [thread:$0]  %s4311_s9, 32, %s6777_s18, [#allocation10]   ;;  %v2388_v46 = vpop.permute.xlu0 %2387 }
0x3222   :  { %5554 = dma.done.wait [#allocation10], 32  }
0x3223   :  { %5555 = vsyncadd [#allocation10], 4294967264 }
0x3224   :  { %4317 = vsyncpa [#allocation9], 1 }
0x3225   :  { %4318 = vsyncpa [#allocation12], 1 }
0x3226   :  { %4319 = vsyncpa [#allocation15], 1 }
0x3227   :  { %4320 = vsyncpa [#allocation18], 1 }
0x3228   :  { %4321 = vsyncpa [#allocation10], 1 }

</bundles_post_ra>
